<compile_context>
chip_gen: v6e
topology: v6e:2x2x1
jax: 0.10.0
libtpu: 0.0.40
codegen_flags: <defaults>
</compile_context>

<pallas_src>
import functools
import math

import jax
import jax.numpy as jnp
from jax import lax
from jax.experimental import pallas as pl
from jax.experimental.pallas import tpu as pltpu


# ----------------------------------------------------------------------------
# Fused Pallas kernel: all LSTM layers (bidirectional) + NER/SA heads
# ----------------------------------------------------------------------------
def nersa_kernel(*refs, num_layers, hidden, seq_len, batch):
    H, T, B, L = hidden, seq_len, batch, num_layers
    n_in = 5 + 4 * L + 5

    mask_ref, x_ref, xr_ref, h0_ref, c0_ref = refs[:5]
    layer_refs = refs[5:5 + 4 * L]
    wner_a_ref, wner_b_ref, bner_ref, wsa_ref, bsa_ref = refs[5 + 4 * L:n_in]
    ner_ref, sa_ref = refs[n_in], refs[n_in + 1]
    gx_ref, z_ref, zr_ref = refs[n_in + 2:]

    # Short sequences: full unroll; long sequences: partial unroll (code size).
    unroll_steps = True if T <= 16 else 8

    for layer in range(L):
        a_ref = layer_refs[4 * layer + 0]        # (In, 8H)  acts on time-order input
        b_ref = layer_refs[4 * layer + 1]        # (In, 8H)  acts on time-reversed input
        whh_ref = layer_refs[4 * layer + 2]      # (2H, 8H)  block-diag recurrent weights
        bias_ref = layer_refs[4 * layer + 3]     # (1, 8H)

        if layer == 0:
            in_a = x_ref[...]                    # (T*B, E)   x(t)
            in_b = xr_ref[...]                   # (T*B, E)   x(T-1-t)
        else:
            in_a = z_ref[...]                    # (T*B, 2H)  [hf(t)     | hb(T-1-t)]
            in_b = zr_ref[...]                   # (T*B, 2H)  [hf(T-1-t) | hb(t)]

        # Hoisted input projection for all timesteps and both directions.
        # gx row t holds (interleaved gates) fwd gates for time t and bwd gates
        # for time T-1-t, so the time loop does a single contiguous row load.
        gx_ref[...] = (
            jnp.dot(in_a, a_ref[...], preferred_element_type=jnp.float32)
            + jnp.dot(in_b, b_ref[...], preferred_element_type=jnp.float32)
            + bias_ref[...])

        whh = whh_ref[...]                       # (2H, 8H)
        h0 = h0_ref[layer]                       # (B, 2H)  [fwd | bwd]
        c0 = c0_ref[layer]                       # (B, 2H)

        def timestep(t, carry):
            h_prev, c_prev = carry               # register-resident (B, 2H)
            row = t * B
            gx = gx_ref[pl.ds(row, B), :]        # (B, 8H) dense load
            m = mask_ref[pl.ds(row, B), :]       # (B, 2H) 0/1 validity

            g = gx + jnp.dot(h_prev, whh, preferred_element_type=jnp.float32)

            # interleaved gate layout: [i_f i_b | f_f f_b | g_f g_b | o_f o_b]
            i_g = jax.nn.sigmoid(g[:, 0 * H:2 * H])
            f_g = jax.nn.sigmoid(g[:, 2 * H:4 * H])
            g_g = jnp.tanh(g[:, 4 * H:6 * H])
            o_g = jax.nn.sigmoid(g[:, 6 * H:8 * H])

            c_new = f_g * c_prev + i_g * g_g
            h_new = o_g * jnp.tanh(c_new)

            out = m * h_new                      # zero outputs at padded slots
            z_ref[pl.ds(row, B), :] = out                    # scan order
            zr_ref[pl.ds((T - 1 - t) * B, B), :] = out       # reversed scan order

            h_sel = h_prev + m * (h_new - h_prev)            # freeze padded state
            c_sel = c_prev + m * (c_new - c_prev)
            return (h_sel, c_sel)

        lax.fori_loop(0, T, timestep, (h0, c0), unroll=unroll_steps)

    # ------------------------------------------------------------------ heads
    # Time-ordered y[s] = [ z[s, 0:H] | zr[s, H:2H] ]; never materialized.
    z_v = z_ref[...]                             # (T*B, 2H)
    zr_v = zr_ref[...]

    # NER head on every timestep (lane-dense padded class dim = 128).
    ner_ref[...] = (
        jnp.dot(z_v, wner_a_ref[...], preferred_element_type=jnp.float32)
        + jnp.dot(zr_v, wner_b_ref[...], preferred_element_type=jnp.float32)
        + bner_ref[...])

    # Mean-pool over padded time (matches torch .mean(dim=1) on padded output).
    # Sum over time of both halves of z equals the sum of the time-ordered y.
    def pool_step(t, acc):
        return acc + z_ref[pl.ds(t * B, B), :]

    pooled = lax.fori_loop(0, T, pool_step,
                           jnp.zeros((B, 2 * H), jnp.float32), unroll=True)
    pooled = pooled * jnp.float32(1.0 / T)
    sa_ref[...] = (jnp.dot(pooled, wsa_ref[...],
                           preferred_element_type=jnp.float32) + bsa_ref[...])


# ----------------------------------------------------------------------------
# Wrapper
# ----------------------------------------------------------------------------
def nersa_forward(params, inputs, text_lengths, *, num_layers, hidden, max_len,
                  num_ner, num_sa):
    B = inputs.shape[0]
    T = int(max_len)                 # static -> jit-friendly, no host sync
    H = hidden

    emb = jnp.take(params["embedding"], inputs, axis=0)               # (B, S, E)
    x_tbe = jnp.transpose(emb[:, :T, :], (1, 0, 2)).astype(jnp.float32)  # (T, B, E)
    E = x_tbe.shape[-1]
    x = x_tbe.reshape(T * B, E)
    x_rev = jnp.flip(x_tbe, axis=0).reshape(T * B, E)

    # Hoisted validity masks (shared by every layer): fwd lanes use t < len,
    # bwd lanes use (T-1-t) < len (the backward half of scan step t handles
    # time index T-1-t).
    lens = text_lengths.astype(jnp.int32)
    t_idx = jnp.arange(T, dtype=jnp.int32)
    m_f = (t_idx[:, None] < lens[None, :]).astype(jnp.float32)        # (T, B)
    m_b = ((T - 1 - t_idx)[:, None] < lens[None, :]).astype(jnp.float32)
    mask = jnp.concatenate(
        [jnp.broadcast_to(m_f[:, :, None], (T, B, H)),
         jnp.broadcast_to(m_b[:, :, None], (T, B, H))],
        axis=2).reshape(T * B, 2 * H)

    cls_pad = params["bner"].shape[1]            # 128 (lane-dense)

    args = [mask, x, x_rev, params["h0"], params["c0"]]
    for (a_mat, b_mat, whh_blk, bias) in params["lstm"]:
        args += [a_mat, b_mat, whh_blk, bias]
    args += [params["wner_a"], params["wner_b"], params["bner"],
             params["wsa"], params["bsa"]]

    def full_spec(a):
        nd = a.ndim
        return pl.BlockSpec(tuple(a.shape), lambda i, _n=nd: (0,) * _n)

    in_specs = [full_spec(a) for a in args]

    kernel = functools.partial(nersa_kernel, num_layers=num_layers, hidden=H,
                               seq_len=T, batch=B)

    ner_flat, sa_p = pl.pallas_call(
        kernel,
        out_shape=(jax.ShapeDtypeStruct((T * B, cls_pad), jnp.float32),
                   jax.ShapeDtypeStruct((B, cls_pad), jnp.float32)),
        grid_spec=pltpu.PrefetchScalarGridSpec(
            num_scalar_prefetch=0,
            grid=(1,),
            in_specs=in_specs,
            out_specs=[pl.BlockSpec((T * B, cls_pad), lambda i: (0, 0)),
                       pl.BlockSpec((B, cls_pad), lambda i: (0, 0))],
            scratch_shapes=[
                pltpu.VMEM((T * B, 8 * H), jnp.float32),   # hoisted input gates
                pltpu.VMEM((T * B, 2 * H), jnp.float32),   # z  : scan-order activations
                pltpu.VMEM((T * B, 2 * H), jnp.float32),   # zr : reversed scan order
            ]),
        compiler_params=pltpu.CompilerParams(
            dimension_semantics=("arbitrary",),
            vmem_limit_bytes=64 * 1024 * 1024),
    )(*args)

    ner = jnp.transpose(ner_flat.reshape(T, B, cls_pad)[:, :, :num_ner],
                        (1, 0, 2))               # (B, T, num_NER)
    sa = sa_p[:, :num_sa]                        # (B, num_SA)
    return ner, sa


# ----------------------------------------------------------------------------
# Parameter construction (deterministic) with kernel-friendly packing
# ----------------------------------------------------------------------------
def init_params(key, vocab, emb_dim, hidden, num_layers, num_ner, num_sa, batch,
                cls_pad=128):
    H = hidden
    keys = iter(jax.random.split(key, 16 + 8 * num_layers))
    p = {}
    p["embedding"] = jax.random.normal(next(keys), (vocab, emb_dim), jnp.float32)

    def put(dst, r0, r1, src_t, direction):
        # src_t: (r1-r0, 4H) with torch gate order i,f,g,o; scatter gate blocks
        # into interleaved columns [i_f i_b | f_f f_b | g_f g_b | o_f o_b].
        for q in range(4):
            col = (2 * q + direction) * H
            dst = dst.at[r0:r1, col:col + H].set(src_t[:, q * H:(q + 1) * H])
        return dst

    k = 1.0 / math.sqrt(H)
    p["lstm"] = []
    for layer in range(num_layers):
        in_size = emb_dim if layer == 0 else 2 * H
        wih, whh, bias = [], [], []
        for _d in range(2):                       # 0 = forward, 1 = backward
            wih_d = jax.random.uniform(next(keys), (4 * H, in_size),
                                       jnp.float32, -k, k)
            whh_d = jax.random.uniform(next(keys), (4 * H, H),
                                       jnp.float32, -k, k)
            bih_d = jax.random.uniform(next(keys), (4 * H,), jnp.float32, -k, k)
            bhh_d = jax.random.uniform(next(keys), (4 * H,), jnp.float32, -k, k)
            wih.append(wih_d.T)                   # (in_size, 4H)
            whh.append(whh_d.T)                   # (H, 4H)
            bias.append(bih_d + bhh_d)            # (4H,)

        # Block-diagonal recurrent matrix: rows 0:H act on h_fwd, rows H:2H on h_bwd.
        whh_blk = jnp.zeros((2 * H, 8 * H), jnp.float32)
        whh_blk = put(whh_blk, 0, H, whh[0], 0)
        whh_blk = put(whh_blk, H, 2 * H, whh[1], 1)

        b_packed = jnp.zeros((1, 8 * H), jnp.float32)
        for d in range(2):
            for q in range(4):
                col = (2 * q + d) * H
                b_packed = b_packed.at[0, col:col + H].set(
                    bias[d][q * H:(q + 1) * H])

        if layer == 0:
            # in_a = x(t), in_b = x(T-1-t)
            a_mat = put(jnp.zeros((in_size, 8 * H), jnp.float32), 0, in_size, wih[0], 0)
            b_mat = put(jnp.zeros((in_size, 8 * H), jnp.float32), 0, in_size, wih[1], 1)
        else:
            # in_a = z  : [hf(t)     | hb(T-1-t)]
            # in_b = zr : [hf(T-1-t) | hb(t)]
            a_mat = jnp.zeros((2 * H, 8 * H), jnp.float32)
            b_mat = jnp.zeros((2 * H, 8 * H), jnp.float32)
            a_mat = put(a_mat, 0, H, wih[0][0:H, :], 0)        # hf(t)     -> fwd gates
            a_mat = put(a_mat, H, 2 * H, wih[1][H:2 * H, :], 1)  # hb(T-1-t) -> bwd gates
            b_mat = put(b_mat, 0, H, wih[1][0:H, :], 1)        # hf(T-1-t) -> bwd gates
            b_mat = put(b_mat, H, 2 * H, wih[0][H:2 * H, :], 0)  # hb(t)     -> fwd gates

        p["lstm"].append((a_mat, b_mat, whh_blk, b_packed))

    # h0 / c0: xavier-normal over (2L, B, H), repacked to (L, B, 2H) [fwd | bwd].
    std = math.sqrt(2.0 / (batch * H + 2 * num_layers * H))
    h0 = std * jax.random.normal(next(keys),
                                 (2 * num_layers, batch, H), jnp.float32)
    c0 = std * jax.random.normal(next(keys),
                                 (2 * num_layers, batch, H), jnp.float32)
    p["h0"] = jnp.concatenate([h0[0::2], h0[1::2]], axis=2)
    p["c0"] = jnp.concatenate([c0[0::2], c0[1::2]], axis=2)

    # Heads: class dims zero-padded to 128 lanes. NER weight split so the two
    # GEMMs pick the fwd half from z and the bwd half from zr.
    kf = 1.0 / math.sqrt(2 * H)
    wner = jax.random.uniform(next(keys), (num_ner, 2 * H), jnp.float32, -kf, kf)
    bner = jax.random.uniform(next(keys), (num_ner,), jnp.float32, -kf, kf)
    wsa = jax.random.uniform(next(keys), (num_sa, 2 * H), jnp.float32, -kf, kf)
    bsa = jax.random.uniform(next(keys), (num_sa,), jnp.float32, -kf, kf)

    wner_t = jnp.zeros((2 * H, cls_pad), jnp.float32).at[:, :num_ner].set(wner.T)
    p["wner_a"] = wner_t.at[H:2 * H, :].set(0.0)   # acts on z  (hf half)
    p["wner_b"] = wner_t.at[0:H, :].set(0.0)       # acts on zr (hb half)
    p["bner"] = jnp.zeros((1, cls_pad), jnp.float32).at[0, :num_ner].set(bner)
    p["wsa"] = jnp.zeros((2 * H, cls_pad), jnp.float32).at[:, :num_sa].set(wsa.T)
    p["bsa"] = jnp.zeros((1, cls_pad), jnp.float32).at[0, :num_sa].set(bsa)
    return p


# ----------------------------------------------------------------------------
if __name__ == "__main__":
    BATCH = 4
    SEQ = 8
    VOCAB = 50
    EMB_DIM = 32
    HIDDEN = 32
    NUM_LAYERS = 2
    NUM_NER = 5
    NUM_SA = 3

    key = jax.random.PRNGKey(0)
    k_params, k_tok = jax.random.split(key)

    params = init_params(k_params, VOCAB, EMB_DIM, HIDDEN, NUM_LAYERS,
                         NUM_NER, NUM_SA, BATCH)

    inputs = jax.random.randint(k_tok, (BATCH, SEQ), 0, VOCAB, dtype=jnp.int32)
    lengths_list = [8, 5, 3, 6]
    text_lengths = jnp.array(lengths_list, dtype=jnp.int32)
    max_len = max(lengths_list)          # static -> single jit compile

    fwd = jax.jit(functools.partial(
        nersa_forward, num_layers=NUM_LAYERS, hidden=HIDDEN, max_len=max_len,
        num_ner=NUM_NER, num_sa=NUM_SA))

    ner_logits, sa_logits = fwd(params, inputs, text_lengths)
    jax.block_until_ready((ner_logits, sa_logits))

    assert ner_logits.shape == (BATCH, max_len, NUM_NER)
    assert sa_logits.shape == (BATCH, NUM_SA)
    assert bool(jnp.all(jnp.isfinite(ner_logits)))
    assert bool(jnp.all(jnp.isfinite(sa_logits)))
    print("KERNEL_OK")
</pallas_src>

<mosaic_0001>
module attributes {stable_mosaic.version = 11 : i64} {
  func.func @nersa_kernel(%arg0: i32, %arg1: memref<32x64xf32, #tpu.memory_space<vmem>>, %arg2: memref<32x32xf32, #tpu.memory_space<vmem>>, %arg3: memref<32x32xf32, #tpu.memory_space<vmem>>, %arg4: memref<2x4x64xf32, #tpu.memory_space<vmem>>, %arg5: memref<2x4x64xf32, #tpu.memory_space<vmem>>, %arg6: memref<32x256xf32, #tpu.memory_space<vmem>>, %arg7: memref<32x256xf32, #tpu.memory_space<vmem>>, %arg8: memref<64x256xf32, #tpu.memory_space<vmem>>, %arg9: memref<1x256xf32, #tpu.memory_space<vmem>>, %arg10: memref<64x256xf32, #tpu.memory_space<vmem>>, %arg11: memref<64x256xf32, #tpu.memory_space<vmem>>, %arg12: memref<64x256xf32, #tpu.memory_space<vmem>>, %arg13: memref<1x256xf32, #tpu.memory_space<vmem>>, %arg14: memref<64x128xf32, #tpu.memory_space<vmem>>, %arg15: memref<64x128xf32, #tpu.memory_space<vmem>>, %arg16: memref<1x128xf32, #tpu.memory_space<vmem>>, %arg17: memref<64x128xf32, #tpu.memory_space<vmem>>, %arg18: memref<1x128xf32, #tpu.memory_space<vmem>>, %arg19: memref<32x128xf32, #tpu.memory_space<vmem>>, %arg20: memref<4x128xf32, #tpu.memory_space<vmem>>, %arg21: memref<32x256xf32, #tpu.memory_space<vmem>>, %arg22: memref<32x64xf32, #tpu.memory_space<vmem>>, %arg23: memref<32x64xf32, #tpu.memory_space<vmem>>) attributes {dimension_semantics = [#tpu.dimension_semantics<arbitrary>], iteration_bounds = array<i64: 1>, scalar_prefetch = 0 : i64, scratch_operands = 3 : i64, tpu.core_type = #tpu.core_type<tc>, window_params = [{pipeline_mode = #tpu.pipeline_mode<synchronous>, transform_indices = @transform_0, window_bounds = array<i64: 32, 64>}, {pipeline_mode = #tpu.pipeline_mode<synchronous>, transform_indices = @transform_1, window_bounds = array<i64: 32, 32>}, {pipeline_mode = #tpu.pipeline_mode<synchronous>, transform_indices = @transform_2, window_bounds = array<i64: 32, 32>}, {pipeline_mode = #tpu.pipeline_mode<synchronous>, transform_indices = @transform_3, window_bounds = array<i64: 2, 4, 64>}, {pipeline_mode = #tpu.pipeline_mode<synchronous>, transform_indices = @transform_4, window_bounds = array<i64: 2, 4, 64>}, {pipeline_mode = #tpu.pipeline_mode<synchronous>, transform_indices = @transform_5, window_bounds = array<i64: 32, 256>}, {pipeline_mode = #tpu.pipeline_mode<synchronous>, transform_indices = @transform_6, window_bounds = array<i64: 32, 256>}, {pipeline_mode = #tpu.pipeline_mode<synchronous>, transform_indices = @transform_7, window_bounds = array<i64: 64, 256>}, {pipeline_mode = #tpu.pipeline_mode<synchronous>, transform_indices = @transform_8, window_bounds = array<i64: 1, 256>}, {pipeline_mode = #tpu.pipeline_mode<synchronous>, transform_indices = @transform_9, window_bounds = array<i64: 64, 256>}, {pipeline_mode = #tpu.pipeline_mode<synchronous>, transform_indices = @transform_10, window_bounds = array<i64: 64, 256>}, {pipeline_mode = #tpu.pipeline_mode<synchronous>, transform_indices = @transform_11, window_bounds = array<i64: 64, 256>}, {pipeline_mode = #tpu.pipeline_mode<synchronous>, transform_indices = @transform_12, window_bounds = array<i64: 1, 256>}, {pipeline_mode = #tpu.pipeline_mode<synchronous>, transform_indices = @transform_13, window_bounds = array<i64: 64, 128>}, {pipeline_mode = #tpu.pipeline_mode<synchronous>, transform_indices = @transform_14, window_bounds = array<i64: 64, 128>}, {pipeline_mode = #tpu.pipeline_mode<synchronous>, transform_indices = @transform_15, window_bounds = array<i64: 1, 128>}, {pipeline_mode = #tpu.pipeline_mode<synchronous>, transform_indices = @transform_16, window_bounds = array<i64: 64, 128>}, {pipeline_mode = #tpu.pipeline_mode<synchronous>, transform_indices = @transform_17, window_bounds = array<i64: 1, 128>}, {pipeline_mode = #tpu.pipeline_mode<synchronous>, transform_indices = @transform_18, window_bounds = array<i64: 32, 128>}, {pipeline_mode = #tpu.pipeline_mode<synchronous>, transform_indices = @transform_19, window_bounds = array<i64: 4, 128>}]} {
    %c0 = arith.constant 0 : index
    %c0_0 = arith.constant 0 : index
    %0 = vector.load %arg2[%c0, %c0_0] : memref<32x32xf32, #tpu.memory_space<vmem>>, vector<32x32xf32>
    %c0_1 = arith.constant 0 : index
    %c0_2 = arith.constant 0 : index
    %1 = vector.load %arg3[%c0_1, %c0_2] : memref<32x32xf32, #tpu.memory_space<vmem>>, vector<32x32xf32>
    %c0_3 = arith.constant 0 : index
    %c0_4 = arith.constant 0 : index
    %2 = vector.load %arg6[%c0_3, %c0_4] : memref<32x256xf32, #tpu.memory_space<vmem>>, vector<32x256xf32>
    %cst = arith.constant dense<0.000000e+00> : vector<32x256xf32>
    %3 = tpu.matmul %0, %2, %cst {dimension_numbers = #tpu.dot_dimension_numbers<[1], [0], [0], [1], [0, 0, 1, 1], [], []>} : vector<32x32xf32>, vector<32x256xf32>, vector<32x256xf32> -> vector<32x256xf32>
    %c0_5 = arith.constant 0 : index
    %c0_6 = arith.constant 0 : index
    %4 = vector.load %arg7[%c0_5, %c0_6] : memref<32x256xf32, #tpu.memory_space<vmem>>, vector<32x256xf32>
    %cst_7 = arith.constant dense<0.000000e+00> : vector<32x256xf32>
    %5 = tpu.matmul %1, %4, %cst_7 {dimension_numbers = #tpu.dot_dimension_numbers<[1], [0], [0], [1], [0, 0, 1, 1], [], []>} : vector<32x32xf32>, vector<32x256xf32>, vector<32x256xf32> -> vector<32x256xf32>
    %6 = arith.addf %3, %5 : vector<32x256xf32>
    %c0_8 = arith.constant 0 : index
    %c0_9 = arith.constant 0 : index
    %7 = vector.load %arg9[%c0_8, %c0_9] : memref<1x256xf32, #tpu.memory_space<vmem>>, vector<1x256xf32>
    %8 = vector.broadcast %7 : vector<1x256xf32> to vector<32x256xf32>
    %9 = arith.addf %6, %8 : vector<32x256xf32>
    %c0_10 = arith.constant 0 : index
    %c0_11 = arith.constant 0 : index
    %10 = vector.load %arg21[%c0_10, %c0_11] : memref<32x256xf32, #tpu.memory_space<vmem>>, vector<32x256xf32>
    tpu.vector_store %arg21[%c0_10, %c0_11], %9 {strides = array<i32>} : memref<32x256xf32, #tpu.memory_space<vmem>>, vector<32x256xf32>,
    %c0_12 = arith.constant 0 : index
    %c0_13 = arith.constant 0 : index
    %11 = vector.load %arg8[%c0_12, %c0_13] : memref<64x256xf32, #tpu.memory_space<vmem>>, vector<64x256xf32>
    %c0_14 = arith.constant 0 : index
    %c0_15 = arith.constant 0 : index
    %c0_16 = arith.constant 0 : index
    %12 = vector.load %arg4[%c0_14, %c0_15, %c0_16] : memref<2x4x64xf32, #tpu.memory_space<vmem>>, vector<1x4x64xf32>
    %13 = vector.shape_cast %12 : vector<1x4x64xf32> to vector<4x64xf32>
    %c0_17 = arith.constant 0 : index
    %c0_18 = arith.constant 0 : index
    %c0_19 = arith.constant 0 : index
    %14 = vector.load %arg5[%c0_17, %c0_18, %c0_19] : memref<2x4x64xf32, #tpu.memory_space<vmem>>, vector<1x4x64xf32>
    %15 = vector.shape_cast %14 : vector<1x4x64xf32> to vector<4x64xf32>
    %c0_i32 = arith.constant 0 : i32
    %c4_i32 = arith.constant 4 : i32
    %16 = arith.muli %c0_i32, %c4_i32 : i32
    %17 = arith.index_cast %16 : i32 to index
    %c0_20 = arith.constant 0 : index
    %18 = vector.load %arg21[%17, %c0_20] : memref<32x256xf32, #tpu.memory_space<vmem>>, vector<4x256xf32>
    %19 = arith.index_cast %16 : i32 to index
    %c0_21 = arith.constant 0 : index
    %20 = vector.load %arg1[%19, %c0_21] : memref<32x64xf32, #tpu.memory_space<vmem>>, vector<4x64xf32>
    %cst_22 = arith.constant dense<0.000000e+00> : vector<4x256xf32>
    %21 = tpu.matmul %13, %11, %cst_22 {dimension_numbers = #tpu.dot_dimension_numbers<[1], [0], [0], [1], [0, 0, 1, 1], [], []>} : vector<4x64xf32>, vector<64x256xf32>, vector<4x256xf32> -> vector<4x256xf32>
    %22 = arith.addf %18, %21 : vector<4x256xf32>
    %23 = vector.extract_strided_slice %22 {offsets = [0, 0], sizes = [4, 64], strides = [1, 1]} : vector<4x256xf32> to vector<4x64xf32>
    %24 = arith.negf %23 : vector<4x64xf32>
    %25 = math.exp %24 : vector<4x64xf32>
    %cst_23 = arith.constant 1.000000e+00 : f32
    %26 = vector.broadcast %cst_23 : f32 to vector<4x64xf32>
    %27 = arith.addf %26, %25 : vector<4x64xf32>
    %28 = arith.divf %26, %27 : vector<4x64xf32>
    %29 = vector.extract_strided_slice %22 {offsets = [0, 64], sizes = [4, 64], strides = [1, 1]} : vector<4x256xf32> to vector<4x64xf32>
    %30 = arith.negf %29 : vector<4x64xf32>
    %31 = math.exp %30 : vector<4x64xf32>
    %cst_24 = arith.constant 1.000000e+00 : f32
    %32 = vector.broadcast %cst_24 : f32 to vector<4x64xf32>
    %33 = arith.addf %32, %31 : vector<4x64xf32>
    %34 = arith.divf %32, %33 : vector<4x64xf32>
    %35 = vector.extract_strided_slice %22 {offsets = [0, 128], sizes = [4, 64], strides = [1, 1]} : vector<4x256xf32> to vector<4x64xf32>
    %36 = math.tanh %35 : vector<4x64xf32>
    %37 = vector.extract_strided_slice %22 {offsets = [0, 192], sizes = [4, 64], strides = [1, 1]} : vector<4x256xf32> to vector<4x64xf32>
    %38 = arith.negf %37 : vector<4x64xf32>
    %39 = math.exp %38 : vector<4x64xf32>
    %cst_25 = arith.constant 1.000000e+00 : f32
    %40 = vector.broadcast %cst_25 : f32 to vector<4x64xf32>
    %41 = arith.addf %40, %39 : vector<4x64xf32>
    %42 = arith.divf %40, %41 : vector<4x64xf32>
    %43 = arith.mulf %34, %15 : vector<4x64xf32>
    %44 = arith.mulf %28, %36 : vector<4x64xf32>
    %45 = arith.addf %43, %44 : vector<4x64xf32>
    %46 = math.tanh %45 : vector<4x64xf32>
    %47 = arith.mulf %42, %46 : vector<4x64xf32>
    %48 = arith.mulf %20, %47 : vector<4x64xf32>
    %49 = arith.index_cast %16 : i32 to index
    %c0_26 = arith.constant 0 : index
    %50 = vector.load %arg22[%49, %c0_26] : memref<32x64xf32, #tpu.memory_space<vmem>>, vector<4x64xf32>
    tpu.vector_store %arg22[%49, %c0_26], %48 {strides = array<i32>} : memref<32x64xf32, #tpu.memory_space<vmem>>, vector<4x64xf32>,
    %c7_i32 = arith.constant 7 : i32
    %51 = arith.subi %c7_i32, %c0_i32 : i32
    %c4_i32_27 = arith.constant 4 : i32
    %52 = arith.muli %51, %c4_i32_27 : i32
    %53 = arith.index_cast %52 : i32 to index
    %c0_28 = arith.constant 0 : index
    %54 = vector.load %arg23[%53, %c0_28] : memref<32x64xf32, #tpu.memory_space<vmem>>, vector<4x64xf32>
    tpu.vector_store %arg23[%53, %c0_28], %48 {strides = array<i32>} : memref<32x64xf32, #tpu.memory_space<vmem>>, vector<4x64xf32>,
    %55 = arith.subf %47, %13 : vector<4x64xf32>
    %56 = arith.mulf %20, %55 : vector<4x64xf32>
    %57 = arith.addf %13, %56 : vector<4x64xf32>
    %58 = arith.subf %45, %15 : vector<4x64xf32>
    %59 = arith.mulf %20, %58 : vector<4x64xf32>
    %60 = arith.addf %15, %59 : vector<4x64xf32>
    %c1_i32 = arith.constant 1 : i32
    %c4_i32_29 = arith.constant 4 : i32
    %61 = arith.muli %c1_i32, %c4_i32_29 : i32
    %62 = arith.index_cast %61 : i32 to index
    %c0_30 = arith.constant 0 : index
    %63 = vector.load %arg21[%62, %c0_30] : memref<32x256xf32, #tpu.memory_space<vmem>>, vector<4x256xf32>
    %64 = arith.index_cast %61 : i32 to index
    %c0_31 = arith.constant 0 : index
    %65 = vector.load %arg1[%64, %c0_31] : memref<32x64xf32, #tpu.memory_space<vmem>>, vector<4x64xf32>
    %cst_32 = arith.constant dense<0.000000e+00> : vector<4x256xf32>
    %66 = tpu.matmul %57, %11, %cst_32 {dimension_numbers = #tpu.dot_dimension_numbers<[1], [0], [0], [1], [0, 0, 1, 1], [], []>} : vector<4x64xf32>, vector<64x256xf32>, vector<4x256xf32> -> vector<4x256xf32>
    %67 = arith.addf %63, %66 : vector<4x256xf32>
    %68 = vector.extract_strided_slice %67 {offsets = [0, 0], sizes = [4, 64], strides = [1, 1]} : vector<4x256xf32> to vector<4x64xf32>
    %69 = arith.negf %68 : vector<4x64xf32>
    %70 = math.exp %69 : vector<4x64xf32>
    %cst_33 = arith.constant 1.000000e+00 : f32
    %71 = vector.broadcast %cst_33 : f32 to vector<4x64xf32>
    %72 = arith.addf %71, %70 : vector<4x64xf32>
    %73 = arith.divf %71, %72 : vector<4x64xf32>
    %74 = vector.extract_strided_slice %67 {offsets = [0, 64], sizes = [4, 64], strides = [1, 1]} : vector<4x256xf32> to vector<4x64xf32>
    %75 = arith.negf %74 : vector<4x64xf32>
    %76 = math.exp %75 : vector<4x64xf32>
    %cst_34 = arith.constant 1.000000e+00 : f32
    %77 = vector.broadcast %cst_34 : f32 to vector<4x64xf32>
    %78 = arith.addf %77, %76 : vector<4x64xf32>
    %79 = arith.divf %77, %78 : vector<4x64xf32>
    %80 = vector.extract_strided_slice %67 {offsets = [0, 128], sizes = [4, 64], strides = [1, 1]} : vector<4x256xf32> to vector<4x64xf32>
    %81 = math.tanh %80 : vector<4x64xf32>
    %82 = vector.extract_strided_slice %67 {offsets = [0, 192], sizes = [4, 64], strides = [1, 1]} : vector<4x256xf32> to vector<4x64xf32>
    %83 = arith.negf %82 : vector<4x64xf32>
    %84 = math.exp %83 : vector<4x64xf32>
    %cst_35 = arith.constant 1.000000e+00 : f32
    %85 = vector.broadcast %cst_35 : f32 to vector<4x64xf32>
    %86 = arith.addf %85, %84 : vector<4x64xf32>
    %87 = arith.divf %85, %86 : vector<4x64xf32>
    %88 = arith.mulf %79, %60 : vector<4x64xf32>
    %89 = arith.mulf %73, %81 : vector<4x64xf32>
    %90 = arith.addf %88, %89 : vector<4x64xf32>
    %91 = math.tanh %90 : vector<4x64xf32>
    %92 = arith.mulf %87, %91 : vector<4x64xf32>
    %93 = arith.mulf %65, %92 : vector<4x64xf32>
    %94 = arith.index_cast %61 : i32 to index
    %c0_36 = arith.constant 0 : index
    %95 = vector.load %arg22[%94, %c0_36] : memref<32x64xf32, #tpu.memory_space<vmem>>, vector<4x64xf32>
    tpu.vector_store %arg22[%94, %c0_36], %93 {strides = array<i32>} : memref<32x64xf32, #tpu.memory_space<vmem>>, vector<4x64xf32>,
    %c7_i32_37 = arith.constant 7 : i32
    %96 = arith.subi %c7_i32_37, %c1_i32 : i32
    %c4_i32_38 = arith.constant 4 : i32
    %97 = arith.muli %96, %c4_i32_38 : i32
    %98 = arith.index_cast %97 : i32 to index
    %c0_39 = arith.constant 0 : index
    %99 = vector.load %arg23[%98, %c0_39] : memref<32x64xf32, #tpu.memory_space<vmem>>, vector<4x64xf32>
    tpu.vector_store %arg23[%98, %c0_39], %93 {strides = array<i32>} : memref<32x64xf32, #tpu.memory_space<vmem>>, vector<4x64xf32>,
    %100 = arith.subf %92, %57 : vector<4x64xf32>
    %101 = arith.mulf %65, %100 : vector<4x64xf32>
    %102 = arith.addf %57, %101 : vector<4x64xf32>
    %103 = arith.subf %90, %60 : vector<4x64xf32>
    %104 = arith.mulf %65, %103 : vector<4x64xf32>
    %105 = arith.addf %60, %104 : vector<4x64xf32>
    %c2_i32 = arith.constant 2 : i32
    %c4_i32_40 = arith.constant 4 : i32
    %106 = arith.muli %c2_i32, %c4_i32_40 : i32
    %107 = arith.index_cast %106 : i32 to index
    %c0_41 = arith.constant 0 : index
    %108 = vector.load %arg21[%107, %c0_41] : memref<32x256xf32, #tpu.memory_space<vmem>>, vector<4x256xf32>
    %109 = arith.index_cast %106 : i32 to index
    %c0_42 = arith.constant 0 : index
    %110 = vector.load %arg1[%109, %c0_42] : memref<32x64xf32, #tpu.memory_space<vmem>>, vector<4x64xf32>
    %cst_43 = arith.constant dense<0.000000e+00> : vector<4x256xf32>
    %111 = tpu.matmul %102, %11, %cst_43 {dimension_numbers = #tpu.dot_dimension_numbers<[1], [0], [0], [1], [0, 0, 1, 1], [], []>} : vector<4x64xf32>, vector<64x256xf32>, vector<4x256xf32> -> vector<4x256xf32>
    %112 = arith.addf %108, %111 : vector<4x256xf32>
    %113 = vector.extract_strided_slice %112 {offsets = [0, 0], sizes = [4, 64], strides = [1, 1]} : vector<4x256xf32> to vector<4x64xf32>
    %114 = arith.negf %113 : vector<4x64xf32>
    %115 = math.exp %114 : vector<4x64xf32>
    %cst_44 = arith.constant 1.000000e+00 : f32
    %116 = vector.broadcast %cst_44 : f32 to vector<4x64xf32>
    %117 = arith.addf %116, %115 : vector<4x64xf32>
    %118 = arith.divf %116, %117 : vector<4x64xf32>
    %119 = vector.extract_strided_slice %112 {offsets = [0, 64], sizes = [4, 64], strides = [1, 1]} : vector<4x256xf32> to vector<4x64xf32>
    %120 = arith.negf %119 : vector<4x64xf32>
    %121 = math.exp %120 : vector<4x64xf32>
    %cst_45 = arith.constant 1.000000e+00 : f32
    %122 = vector.broadcast %cst_45 : f32 to vector<4x64xf32>
    %123 = arith.addf %122, %121 : vector<4x64xf32>
    %124 = arith.divf %122, %123 : vector<4x64xf32>
    %125 = vector.extract_strided_slice %112 {offsets = [0, 128], sizes = [4, 64], strides = [1, 1]} : vector<4x256xf32> to vector<4x64xf32>
    %126 = math.tanh %125 : vector<4x64xf32>
    %127 = vector.extract_strided_slice %112 {offsets = [0, 192], sizes = [4, 64], strides = [1, 1]} : vector<4x256xf32> to vector<4x64xf32>
    %128 = arith.negf %127 : vector<4x64xf32>
    %129 = math.exp %128 : vector<4x64xf32>
    %cst_46 = arith.constant 1.000000e+00 : f32
    %130 = vector.broadcast %cst_46 : f32 to vector<4x64xf32>
    %131 = arith.addf %130, %129 : vector<4x64xf32>
    %132 = arith.divf %130, %131 : vector<4x64xf32>
    %133 = arith.mulf %124, %105 : vector<4x64xf32>
    %134 = arith.mulf %118, %126 : vector<4x64xf32>
    %135 = arith.addf %133, %134 : vector<4x64xf32>
    %136 = math.tanh %135 : vector<4x64xf32>
    %137 = arith.mulf %132, %136 : vector<4x64xf32>
    %138 = arith.mulf %110, %137 : vector<4x64xf32>
    %139 = arith.index_cast %106 : i32 to index
    %c0_47 = arith.constant 0 : index
    %140 = vector.load %arg22[%139, %c0_47] : memref<32x64xf32, #tpu.memory_space<vmem>>, vector<4x64xf32>
    tpu.vector_store %arg22[%139, %c0_47], %138 {strides = array<i32>} : memref<32x64xf32, #tpu.memory_space<vmem>>, vector<4x64xf32>,
    %c7_i32_48 = arith.constant 7 : i32
    %141 = arith.subi %c7_i32_48, %c2_i32 : i32
    %c4_i32_49 = arith.constant 4 : i32
    %142 = arith.muli %141, %c4_i32_49 : i32
    %143 = arith.index_cast %142 : i32 to index
    %c0_50 = arith.constant 0 : index
    %144 = vector.load %arg23[%143, %c0_50] : memref<32x64xf32, #tpu.memory_space<vmem>>, vector<4x64xf32>
    tpu.vector_store %arg23[%143, %c0_50], %138 {strides = array<i32>} : memref<32x64xf32, #tpu.memory_space<vmem>>, vector<4x64xf32>,
    %145 = arith.subf %137, %102 : vector<4x64xf32>
    %146 = arith.mulf %110, %145 : vector<4x64xf32>
    %147 = arith.addf %102, %146 : vector<4x64xf32>
    %148 = arith.subf %135, %105 : vector<4x64xf32>
    %149 = arith.mulf %110, %148 : vector<4x64xf32>
    %150 = arith.addf %105, %149 : vector<4x64xf32>
    %c3_i32 = arith.constant 3 : i32
    %c4_i32_51 = arith.constant 4 : i32
    %151 = arith.muli %c3_i32, %c4_i32_51 : i32
    %152 = arith.index_cast %151 : i32 to index
    %c0_52 = arith.constant 0 : index
    %153 = vector.load %arg21[%152, %c0_52] : memref<32x256xf32, #tpu.memory_space<vmem>>, vector<4x256xf32>
    %154 = arith.index_cast %151 : i32 to index
    %c0_53 = arith.constant 0 : index
    %155 = vector.load %arg1[%154, %c0_53] : memref<32x64xf32, #tpu.memory_space<vmem>>, vector<4x64xf32>
    %cst_54 = arith.constant dense<0.000000e+00> : vector<4x256xf32>
    %156 = tpu.matmul %147, %11, %cst_54 {dimension_numbers = #tpu.dot_dimension_numbers<[1], [0], [0], [1], [0, 0, 1, 1], [], []>} : vector<4x64xf32>, vector<64x256xf32>, vector<4x256xf32> -> vector<4x256xf32>
    %157 = arith.addf %153, %156 : vector<4x256xf32>
    %158 = vector.extract_strided_slice %157 {offsets = [0, 0], sizes = [4, 64], strides = [1, 1]} : vector<4x256xf32> to vector<4x64xf32>
    %159 = arith.negf %158 : vector<4x64xf32>
    %160 = math.exp %159 : vector<4x64xf32>
    %cst_55 = arith.constant 1.000000e+00 : f32
    %161 = vector.broadcast %cst_55 : f32 to vector<4x64xf32>
    %162 = arith.addf %161, %160 : vector<4x64xf32>
    %163 = arith.divf %161, %162 : vector<4x64xf32>
    %164 = vector.extract_strided_slice %157 {offsets = [0, 64], sizes = [4, 64], strides = [1, 1]} : vector<4x256xf32> to vector<4x64xf32>
    %165 = arith.negf %164 : vector<4x64xf32>
    %166 = math.exp %165 : vector<4x64xf32>
    %cst_56 = arith.constant 1.000000e+00 : f32
    %167 = vector.broadcast %cst_56 : f32 to vector<4x64xf32>
    %168 = arith.addf %167, %166 : vector<4x64xf32>
    %169 = arith.divf %167, %168 : vector<4x64xf32>
    %170 = vector.extract_strided_slice %157 {offsets = [0, 128], sizes = [4, 64], strides = [1, 1]} : vector<4x256xf32> to vector<4x64xf32>
    %171 = math.tanh %170 : vector<4x64xf32>
    %172 = vector.extract_strided_slice %157 {offsets = [0, 192], sizes = [4, 64], strides = [1, 1]} : vector<4x256xf32> to vector<4x64xf32>
    %173 = arith.negf %172 : vector<4x64xf32>
    %174 = math.exp %173 : vector<4x64xf32>
    %cst_57 = arith.constant 1.000000e+00 : f32
    %175 = vector.broadcast %cst_57 : f32 to vector<4x64xf32>
    %176 = arith.addf %175, %174 : vector<4x64xf32>
    %177 = arith.divf %175, %176 : vector<4x64xf32>
    %178 = arith.mulf %169, %150 : vector<4x64xf32>
    %179 = arith.mulf %163, %171 : vector<4x64xf32>
    %180 = arith.addf %178, %179 : vector<4x64xf32>
    %181 = math.tanh %180 : vector<4x64xf32>
    %182 = arith.mulf %177, %181 : vector<4x64xf32>
    %183 = arith.mulf %155, %182 : vector<4x64xf32>
    %184 = arith.index_cast %151 : i32 to index
    %c0_58 = arith.constant 0 : index
    %185 = vector.load %arg22[%184, %c0_58] : memref<32x64xf32, #tpu.memory_space<vmem>>, vector<4x64xf32>
    tpu.vector_store %arg22[%184, %c0_58], %183 {strides = array<i32>} : memref<32x64xf32, #tpu.memory_space<vmem>>, vector<4x64xf32>,
    %c7_i32_59 = arith.constant 7 : i32
    %186 = arith.subi %c7_i32_59, %c3_i32 : i32
    %c4_i32_60 = arith.constant 4 : i32
    %187 = arith.muli %186, %c4_i32_60 : i32
    %188 = arith.index_cast %187 : i32 to index
    %c0_61 = arith.constant 0 : index
    %189 = vector.load %arg23[%188, %c0_61] : memref<32x64xf32, #tpu.memory_space<vmem>>, vector<4x64xf32>
    tpu.vector_store %arg23[%188, %c0_61], %183 {strides = array<i32>} : memref<32x64xf32, #tpu.memory_space<vmem>>, vector<4x64xf32>,
    %190 = arith.subf %182, %147 : vector<4x64xf32>
    %191 = arith.mulf %155, %190 : vector<4x64xf32>
    %192 = arith.addf %147, %191 : vector<4x64xf32>
    %193 = arith.subf %180, %150 : vector<4x64xf32>
    %194 = arith.mulf %155, %193 : vector<4x64xf32>
    %195 = arith.addf %150, %194 : vector<4x64xf32>
    %c4_i32_62 = arith.constant 4 : i32
    %c4_i32_63 = arith.constant 4 : i32
    %196 = arith.muli %c4_i32_62, %c4_i32_63 : i32
    %197 = arith.index_cast %196 : i32 to index
    %c0_64 = arith.constant 0 : index
    %198 = vector.load %arg21[%197, %c0_64] : memref<32x256xf32, #tpu.memory_space<vmem>>, vector<4x256xf32>
    %199 = arith.index_cast %196 : i32 to index
    %c0_65 = arith.constant 0 : index
    %200 = vector.load %arg1[%199, %c0_65] : memref<32x64xf32, #tpu.memory_space<vmem>>, vector<4x64xf32>
    %cst_66 = arith.constant dense<0.000000e+00> : vector<4x256xf32>
    %201 = tpu.matmul %192, %11, %cst_66 {dimension_numbers = #tpu.dot_dimension_numbers<[1], [0], [0], [1], [0, 0, 1, 1], [], []>} : vector<4x64xf32>, vector<64x256xf32>, vector<4x256xf32> -> vector<4x256xf32>
    %202 = arith.addf %198, %201 : vector<4x256xf32>
    %203 = vector.extract_strided_slice %202 {offsets = [0, 0], sizes = [4, 64], strides = [1, 1]} : vector<4x256xf32> to vector<4x64xf32>
    %204 = arith.negf %203 : vector<4x64xf32>
    %205 = math.exp %204 : vector<4x64xf32>
    %cst_67 = arith.constant 1.000000e+00 : f32
    %206 = vector.broadcast %cst_67 : f32 to vector<4x64xf32>
    %207 = arith.addf %206, %205 : vector<4x64xf32>
    %208 = arith.divf %206, %207 : vector<4x64xf32>
    %209 = vector.extract_strided_slice %202 {offsets = [0, 64], sizes = [4, 64], strides = [1, 1]} : vector<4x256xf32> to vector<4x64xf32>
    %210 = arith.negf %209 : vector<4x64xf32>
    %211 = math.exp %210 : vector<4x64xf32>
    %cst_68 = arith.constant 1.000000e+00 : f32
    %212 = vector.broadcast %cst_68 : f32 to vector<4x64xf32>
    %213 = arith.addf %212, %211 : vector<4x64xf32>
    %214 = arith.divf %212, %213 : vector<4x64xf32>
    %215 = vector.extract_strided_slice %202 {offsets = [0, 128], sizes = [4, 64], strides = [1, 1]} : vector<4x256xf32> to vector<4x64xf32>
    %216 = math.tanh %215 : vector<4x64xf32>
    %217 = vector.extract_strided_slice %202 {offsets = [0, 192], sizes = [4, 64], strides = [1, 1]} : vector<4x256xf32> to vector<4x64xf32>
    %218 = arith.negf %217 : vector<4x64xf32>
    %219 = math.exp %218 : vector<4x64xf32>
    %cst_69 = arith.constant 1.000000e+00 : f32
    %220 = vector.broadcast %cst_69 : f32 to vector<4x64xf32>
    %221 = arith.addf %220, %219 : vector<4x64xf32>
    %222 = arith.divf %220, %221 : vector<4x64xf32>
    %223 = arith.mulf %214, %195 : vector<4x64xf32>
    %224 = arith.mulf %208, %216 : vector<4x64xf32>
    %225 = arith.addf %223, %224 : vector<4x64xf32>
    %226 = math.tanh %225 : vector<4x64xf32>
    %227 = arith.mulf %222, %226 : vector<4x64xf32>
    %228 = arith.mulf %200, %227 : vector<4x64xf32>
    %229 = arith.index_cast %196 : i32 to index
    %c0_70 = arith.constant 0 : index
    %230 = vector.load %arg22[%229, %c0_70] : memref<32x64xf32, #tpu.memory_space<vmem>>, vector<4x64xf32>
    tpu.vector_store %arg22[%229, %c0_70], %228 {strides = array<i32>} : memref<32x64xf32, #tpu.memory_space<vmem>>, vector<4x64xf32>,
    %c7_i32_71 = arith.constant 7 : i32
    %231 = arith.subi %c7_i32_71, %c4_i32_62 : i32
    %c4_i32_72 = arith.constant 4 : i32
    %232 = arith.muli %231, %c4_i32_72 : i32
    %233 = arith.index_cast %232 : i32 to index
    %c0_73 = arith.constant 0 : index
    %234 = vector.load %arg23[%233, %c0_73] : memref<32x64xf32, #tpu.memory_space<vmem>>, vector<4x64xf32>
    tpu.vector_store %arg23[%233, %c0_73], %228 {strides = array<i32>} : memref<32x64xf32, #tpu.memory_space<vmem>>, vector<4x64xf32>,
    %235 = arith.subf %227, %192 : vector<4x64xf32>
    %236 = arith.mulf %200, %235 : vector<4x64xf32>
    %237 = arith.addf %192, %236 : vector<4x64xf32>
    %238 = arith.subf %225, %195 : vector<4x64xf32>
    %239 = arith.mulf %200, %238 : vector<4x64xf32>
    %240 = arith.addf %195, %239 : vector<4x64xf32>
    %c5_i32 = arith.constant 5 : i32
    %c4_i32_74 = arith.constant 4 : i32
    %241 = arith.muli %c5_i32, %c4_i32_74 : i32
    %242 = arith.index_cast %241 : i32 to index
    %c0_75 = arith.constant 0 : index
    %243 = vector.load %arg21[%242, %c0_75] : memref<32x256xf32, #tpu.memory_space<vmem>>, vector<4x256xf32>
    %244 = arith.index_cast %241 : i32 to index
    %c0_76 = arith.constant 0 : index
    %245 = vector.load %arg1[%244, %c0_76] : memref<32x64xf32, #tpu.memory_space<vmem>>, vector<4x64xf32>
    %cst_77 = arith.constant dense<0.000000e+00> : vector<4x256xf32>
    %246 = tpu.matmul %237, %11, %cst_77 {dimension_numbers = #tpu.dot_dimension_numbers<[1], [0], [0], [1], [0, 0, 1, 1], [], []>} : vector<4x64xf32>, vector<64x256xf32>, vector<4x256xf32> -> vector<4x256xf32>
    %247 = arith.addf %243, %246 : vector<4x256xf32>
    %248 = vector.extract_strided_slice %247 {offsets = [0, 0], sizes = [4, 64], strides = [1, 1]} : vector<4x256xf32> to vector<4x64xf32>
    %249 = arith.negf %248 : vector<4x64xf32>
    %250 = math.exp %249 : vector<4x64xf32>
    %cst_78 = arith.constant 1.000000e+00 : f32
    %251 = vector.broadcast %cst_78 : f32 to vector<4x64xf32>
    %252 = arith.addf %251, %250 : vector<4x64xf32>
    %253 = arith.divf %251, %252 : vector<4x64xf32>
    %254 = vector.extract_strided_slice %247 {offsets = [0, 64], sizes = [4, 64], strides = [1, 1]} : vector<4x256xf32> to vector<4x64xf32>
    %255 = arith.negf %254 : vector<4x64xf32>
    %256 = math.exp %255 : vector<4x64xf32>
    %cst_79 = arith.constant 1.000000e+00 : f32
    %257 = vector.broadcast %cst_79 : f32 to vector<4x64xf32>
    %258 = arith.addf %257, %256 : vector<4x64xf32>
    %259 = arith.divf %257, %258 : vector<4x64xf32>
    %260 = vector.extract_strided_slice %247 {offsets = [0, 128], sizes = [4, 64], strides = [1, 1]} : vector<4x256xf32> to vector<4x64xf32>
    %261 = math.tanh %260 : vector<4x64xf32>
    %262 = vector.extract_strided_slice %247 {offsets = [0, 192], sizes = [4, 64], strides = [1, 1]} : vector<4x256xf32> to vector<4x64xf32>
    %263 = arith.negf %262 : vector<4x64xf32>
    %264 = math.exp %263 : vector<4x64xf32>
    %cst_80 = arith.constant 1.000000e+00 : f32
    %265 = vector.broadcast %cst_80 : f32 to vector<4x64xf32>
    %266 = arith.addf %265, %264 : vector<4x64xf32>
    %267 = arith.divf %265, %266 : vector<4x64xf32>
    %268 = arith.mulf %259, %240 : vector<4x64xf32>
    %269 = arith.mulf %253, %261 : vector<4x64xf32>
    %270 = arith.addf %268, %269 : vector<4x64xf32>
    %271 = math.tanh %270 : vector<4x64xf32>
    %272 = arith.mulf %267, %271 : vector<4x64xf32>
    %273 = arith.mulf %245, %272 : vector<4x64xf32>
    %274 = arith.index_cast %241 : i32 to index
    %c0_81 = arith.constant 0 : index
    %275 = vector.load %arg22[%274, %c0_81] : memref<32x64xf32, #tpu.memory_space<vmem>>, vector<4x64xf32>
    tpu.vector_store %arg22[%274, %c0_81], %273 {strides = array<i32>} : memref<32x64xf32, #tpu.memory_space<vmem>>, vector<4x64xf32>,
    %c7_i32_82 = arith.constant 7 : i32
    %276 = arith.subi %c7_i32_82, %c5_i32 : i32
    %c4_i32_83 = arith.constant 4 : i32
    %277 = arith.muli %276, %c4_i32_83 : i32
    %278 = arith.index_cast %277 : i32 to index
    %c0_84 = arith.constant 0 : index
    %279 = vector.load %arg23[%278, %c0_84] : memref<32x64xf32, #tpu.memory_space<vmem>>, vector<4x64xf32>
    tpu.vector_store %arg23[%278, %c0_84], %273 {strides = array<i32>} : memref<32x64xf32, #tpu.memory_space<vmem>>, vector<4x64xf32>,
    %280 = arith.subf %272, %237 : vector<4x64xf32>
    %281 = arith.mulf %245, %280 : vector<4x64xf32>
    %282 = arith.addf %237, %281 : vector<4x64xf32>
    %283 = arith.subf %270, %240 : vector<4x64xf32>
    %284 = arith.mulf %245, %283 : vector<4x64xf32>
    %285 = arith.addf %240, %284 : vector<4x64xf32>
    %c6_i32 = arith.constant 6 : i32
    %c4_i32_85 = arith.constant 4 : i32
    %286 = arith.muli %c6_i32, %c4_i32_85 : i32
    %287 = arith.index_cast %286 : i32 to index
    %c0_86 = arith.constant 0 : index
    %288 = vector.load %arg21[%287, %c0_86] : memref<32x256xf32, #tpu.memory_space<vmem>>, vector<4x256xf32>
    %289 = arith.index_cast %286 : i32 to index
    %c0_87 = arith.constant 0 : index
    %290 = vector.load %arg1[%289, %c0_87] : memref<32x64xf32, #tpu.memory_space<vmem>>, vector<4x64xf32>
    %cst_88 = arith.constant dense<0.000000e+00> : vector<4x256xf32>
    %291 = tpu.matmul %282, %11, %cst_88 {dimension_numbers = #tpu.dot_dimension_numbers<[1], [0], [0], [1], [0, 0, 1, 1], [], []>} : vector<4x64xf32>, vector<64x256xf32>, vector<4x256xf32> -> vector<4x256xf32>
    %292 = arith.addf %288, %291 : vector<4x256xf32>
    %293 = vector.extract_strided_slice %292 {offsets = [0, 0], sizes = [4, 64], strides = [1, 1]} : vector<4x256xf32> to vector<4x64xf32>
    %294 = arith.negf %293 : vector<4x64xf32>
    %295 = math.exp %294 : vector<4x64xf32>
    %cst_89 = arith.constant 1.000000e+00 : f32
    %296 = vector.broadcast %cst_89 : f32 to vector<4x64xf32>
    %297 = arith.addf %296, %295 : vector<4x64xf32>
    %298 = arith.divf %296, %297 : vector<4x64xf32>
    %299 = vector.extract_strided_slice %292 {offsets = [0, 64], sizes = [4, 64], strides = [1, 1]} : vector<4x256xf32> to vector<4x64xf32>
    %300 = arith.negf %299 : vector<4x64xf32>
    %301 = math.exp %300 : vector<4x64xf32>
    %cst_90 = arith.constant 1.000000e+00 : f32
    %302 = vector.broadcast %cst_90 : f32 to vector<4x64xf32>
    %303 = arith.addf %302, %301 : vector<4x64xf32>
    %304 = arith.divf %302, %303 : vector<4x64xf32>
    %305 = vector.extract_strided_slice %292 {offsets = [0, 128], sizes = [4, 64], strides = [1, 1]} : vector<4x256xf32> to vector<4x64xf32>
    %306 = math.tanh %305 : vector<4x64xf32>
    %307 = vector.extract_strided_slice %292 {offsets = [0, 192], sizes = [4, 64], strides = [1, 1]} : vector<4x256xf32> to vector<4x64xf32>
    %308 = arith.negf %307 : vector<4x64xf32>
    %309 = math.exp %308 : vector<4x64xf32>
    %cst_91 = arith.constant 1.000000e+00 : f32
    %310 = vector.broadcast %cst_91 : f32 to vector<4x64xf32>
    %311 = arith.addf %310, %309 : vector<4x64xf32>
    %312 = arith.divf %310, %311 : vector<4x64xf32>
    %313 = arith.mulf %304, %285 : vector<4x64xf32>
    %314 = arith.mulf %298, %306 : vector<4x64xf32>
    %315 = arith.addf %313, %314 : vector<4x64xf32>
    %316 = math.tanh %315 : vector<4x64xf32>
    %317 = arith.mulf %312, %316 : vector<4x64xf32>
    %318 = arith.mulf %290, %317 : vector<4x64xf32>
    %319 = arith.index_cast %286 : i32 to index
    %c0_92 = arith.constant 0 : index
    %320 = vector.load %arg22[%319, %c0_92] : memref<32x64xf32, #tpu.memory_space<vmem>>, vector<4x64xf32>
    tpu.vector_store %arg22[%319, %c0_92], %318 {strides = array<i32>} : memref<32x64xf32, #tpu.memory_space<vmem>>, vector<4x64xf32>,
    %c7_i32_93 = arith.constant 7 : i32
    %321 = arith.subi %c7_i32_93, %c6_i32 : i32
    %c4_i32_94 = arith.constant 4 : i32
    %322 = arith.muli %321, %c4_i32_94 : i32
    %323 = arith.index_cast %322 : i32 to index
    %c0_95 = arith.constant 0 : index
    %324 = vector.load %arg23[%323, %c0_95] : memref<32x64xf32, #tpu.memory_space<vmem>>, vector<4x64xf32>
    tpu.vector_store %arg23[%323, %c0_95], %318 {strides = array<i32>} : memref<32x64xf32, #tpu.memory_space<vmem>>, vector<4x64xf32>,
    %325 = arith.subf %317, %282 : vector<4x64xf32>
    %326 = arith.mulf %290, %325 : vector<4x64xf32>
    %327 = arith.addf %282, %326 : vector<4x64xf32>
    %328 = arith.subf %315, %285 : vector<4x64xf32>
    %329 = arith.mulf %290, %328 : vector<4x64xf32>
    %330 = arith.addf %285, %329 : vector<4x64xf32>
    %c7_i32_96 = arith.constant 7 : i32
    %c4_i32_97 = arith.constant 4 : i32
    %331 = arith.muli %c7_i32_96, %c4_i32_97 : i32
    %332 = arith.index_cast %331 : i32 to index
    %c0_98 = arith.constant 0 : index
    %333 = vector.load %arg21[%332, %c0_98] : memref<32x256xf32, #tpu.memory_space<vmem>>, vector<4x256xf32>
    %334 = arith.index_cast %331 : i32 to index
    %c0_99 = arith.constant 0 : index
    %335 = vector.load %arg1[%334, %c0_99] : memref<32x64xf32, #tpu.memory_space<vmem>>, vector<4x64xf32>
    %cst_100 = arith.constant dense<0.000000e+00> : vector<4x256xf32>
    %336 = tpu.matmul %327, %11, %cst_100 {dimension_numbers = #tpu.dot_dimension_numbers<[1], [0], [0], [1], [0, 0, 1, 1], [], []>} : vector<4x64xf32>, vector<64x256xf32>, vector<4x256xf32> -> vector<4x256xf32>
    %337 = arith.addf %333, %336 : vector<4x256xf32>
    %338 = vector.extract_strided_slice %337 {offsets = [0, 0], sizes = [4, 64], strides = [1, 1]} : vector<4x256xf32> to vector<4x64xf32>
    %339 = arith.negf %338 : vector<4x64xf32>
    %340 = math.exp %339 : vector<4x64xf32>
    %cst_101 = arith.constant 1.000000e+00 : f32
    %341 = vector.broadcast %cst_101 : f32 to vector<4x64xf32>
    %342 = arith.addf %341, %340 : vector<4x64xf32>
    %343 = arith.divf %341, %342 : vector<4x64xf32>
    %344 = vector.extract_strided_slice %337 {offsets = [0, 64], sizes = [4, 64], strides = [1, 1]} : vector<4x256xf32> to vector<4x64xf32>
    %345 = arith.negf %344 : vector<4x64xf32>
    %346 = math.exp %345 : vector<4x64xf32>
    %cst_102 = arith.constant 1.000000e+00 : f32
    %347 = vector.broadcast %cst_102 : f32 to vector<4x64xf32>
    %348 = arith.addf %347, %346 : vector<4x64xf32>
    %349 = arith.divf %347, %348 : vector<4x64xf32>
    %350 = vector.extract_strided_slice %337 {offsets = [0, 128], sizes = [4, 64], strides = [1, 1]} : vector<4x256xf32> to vector<4x64xf32>
    %351 = math.tanh %350 : vector<4x64xf32>
    %352 = vector.extract_strided_slice %337 {offsets = [0, 192], sizes = [4, 64], strides = [1, 1]} : vector<4x256xf32> to vector<4x64xf32>
    %353 = arith.negf %352 : vector<4x64xf32>
    %354 = math.exp %353 : vector<4x64xf32>
    %cst_103 = arith.constant 1.000000e+00 : f32
    %355 = vector.broadcast %cst_103 : f32 to vector<4x64xf32>
    %356 = arith.addf %355, %354 : vector<4x64xf32>
    %357 = arith.divf %355, %356 : vector<4x64xf32>
    %358 = arith.mulf %349, %330 : vector<4x64xf32>
    %359 = arith.mulf %343, %351 : vector<4x64xf32>
    %360 = arith.addf %358, %359 : vector<4x64xf32>
    %361 = math.tanh %360 : vector<4x64xf32>
    %362 = arith.mulf %357, %361 : vector<4x64xf32>
    %363 = arith.mulf %335, %362 : vector<4x64xf32>
    %364 = arith.index_cast %331 : i32 to index
    %c0_104 = arith.constant 0 : index
    %365 = vector.load %arg22[%364, %c0_104] : memref<32x64xf32, #tpu.memory_space<vmem>>, vector<4x64xf32>
    tpu.vector_store %arg22[%364, %c0_104], %363 {strides = array<i32>} : memref<32x64xf32, #tpu.memory_space<vmem>>, vector<4x64xf32>,
    %c7_i32_105 = arith.constant 7 : i32
    %366 = arith.subi %c7_i32_105, %c7_i32_96 : i32
    %c4_i32_106 = arith.constant 4 : i32
    %367 = arith.muli %366, %c4_i32_106 : i32
    %368 = arith.index_cast %367 : i32 to index
    %c0_107 = arith.constant 0 : index
    %369 = vector.load %arg23[%368, %c0_107] : memref<32x64xf32, #tpu.memory_space<vmem>>, vector<4x64xf32>
    tpu.vector_store %arg23[%368, %c0_107], %363 {strides = array<i32>} : memref<32x64xf32, #tpu.memory_space<vmem>>, vector<4x64xf32>,
    %370 = arith.subf %362, %327 : vector<4x64xf32>
    %371 = arith.mulf %335, %370 : vector<4x64xf32>
    %372 = arith.addf %327, %371 : vector<4x64xf32>
    %373 = arith.subf %360, %330 : vector<4x64xf32>
    %374 = arith.mulf %335, %373 : vector<4x64xf32>
    %375 = arith.addf %330, %374 : vector<4x64xf32>
    %c8_i32 = arith.constant 8 : i32
    %c0_108 = arith.constant 0 : index
    %c0_109 = arith.constant 0 : index
    %376 = vector.load %arg22[%c0_108, %c0_109] : memref<32x64xf32, #tpu.memory_space<vmem>>, vector<32x64xf32>
    %c0_110 = arith.constant 0 : index
    %c0_111 = arith.constant 0 : index
    %377 = vector.load %arg23[%c0_110, %c0_111] : memref<32x64xf32, #tpu.memory_space<vmem>>, vector<32x64xf32>
    %c0_112 = arith.constant 0 : index
    %c0_113 = arith.constant 0 : index
    %378 = vector.load %arg10[%c0_112, %c0_113] : memref<64x256xf32, #tpu.memory_space<vmem>>, vector<64x256xf32>
    %cst_114 = arith.constant dense<0.000000e+00> : vector<32x256xf32>
    %379 = tpu.matmul %376, %378, %cst_114 {dimension_numbers = #tpu.dot_dimension_numbers<[1], [0], [0], [1], [0, 0, 1, 1], [], []>} : vector<32x64xf32>, vector<64x256xf32>, vector<32x256xf32> -> vector<32x256xf32>
    %c0_115 = arith.constant 0 : index
    %c0_116 = arith.constant 0 : index
    %380 = vector.load %arg11[%c0_115, %c0_116] : memref<64x256xf32, #tpu.memory_space<vmem>>, vector<64x256xf32>
    %cst_117 = arith.constant dense<0.000000e+00> : vector<32x256xf32>
    %381 = tpu.matmul %377, %380, %cst_117 {dimension_numbers = #tpu.dot_dimension_numbers<[1], [0], [0], [1], [0, 0, 1, 1], [], []>} : vector<32x64xf32>, vector<64x256xf32>, vector<32x256xf32> -> vector<32x256xf32>
    %382 = arith.addf %379, %381 : vector<32x256xf32>
    %c0_118 = arith.constant 0 : index
    %c0_119 = arith.constant 0 : index
    %383 = vector.load %arg13[%c0_118, %c0_119] : memref<1x256xf32, #tpu.memory_space<vmem>>, vector<1x256xf32>
    %384 = vector.broadcast %383 : vector<1x256xf32> to vector<32x256xf32>
    %385 = arith.addf %382, %384 : vector<32x256xf32>
    %c0_120 = arith.constant 0 : index
    %c0_121 = arith.constant 0 : index
    %386 = vector.load %arg21[%c0_120, %c0_121] : memref<32x256xf32, #tpu.memory_space<vmem>>, vector<32x256xf32>
    tpu.vector_store %arg21[%c0_120, %c0_121], %385 {strides = array<i32>} : memref<32x256xf32, #tpu.memory_space<vmem>>, vector<32x256xf32>,
    %c0_122 = arith.constant 0 : index
    %c0_123 = arith.constant 0 : index
    %387 = vector.load %arg12[%c0_122, %c0_123] : memref<64x256xf32, #tpu.memory_space<vmem>>, vector<64x256xf32>
    %c1 = arith.constant 1 : index
    %c0_124 = arith.constant 0 : index
    %c0_125 = arith.constant 0 : index
    %388 = vector.load %arg4[%c1, %c0_124, %c0_125] : memref<2x4x64xf32, #tpu.memory_space<vmem>>, vector<1x4x64xf32>
    %389 = vector.shape_cast %388 : vector<1x4x64xf32> to vector<4x64xf32>
    %c1_126 = arith.constant 1 : index
    %c0_127 = arith.constant 0 : index
    %c0_128 = arith.constant 0 : index
    %390 = vector.load %arg5[%c1_126, %c0_127, %c0_128] : memref<2x4x64xf32, #tpu.memory_space<vmem>>, vector<1x4x64xf32>
    %391 = vector.shape_cast %390 : vector<1x4x64xf32> to vector<4x64xf32>
    %c0_i32_129 = arith.constant 0 : i32
    %c4_i32_130 = arith.constant 4 : i32
    %392 = arith.muli %c0_i32_129, %c4_i32_130 : i32
    %393 = arith.index_cast %392 : i32 to index
    %c0_131 = arith.constant 0 : index
    %394 = vector.load %arg21[%393, %c0_131] : memref<32x256xf32, #tpu.memory_space<vmem>>, vector<4x256xf32>
    %395 = arith.index_cast %392 : i32 to index
    %c0_132 = arith.constant 0 : index
    %396 = vector.load %arg1[%395, %c0_132] : memref<32x64xf32, #tpu.memory_space<vmem>>, vector<4x64xf32>
    %cst_133 = arith.constant dense<0.000000e+00> : vector<4x256xf32>
    %397 = tpu.matmul %389, %387, %cst_133 {dimension_numbers = #tpu.dot_dimension_numbers<[1], [0], [0], [1], [0, 0, 1, 1], [], []>} : vector<4x64xf32>, vector<64x256xf32>, vector<4x256xf32> -> vector<4x256xf32>
    %398 = arith.addf %394, %397 : vector<4x256xf32>
    %399 = vector.extract_strided_slice %398 {offsets = [0, 0], sizes = [4, 64], strides = [1, 1]} : vector<4x256xf32> to vector<4x64xf32>
    %400 = arith.negf %399 : vector<4x64xf32>
    %401 = math.exp %400 : vector<4x64xf32>
    %cst_134 = arith.constant 1.000000e+00 : f32
    %402 = vector.broadcast %cst_134 : f32 to vector<4x64xf32>
    %403 = arith.addf %402, %401 : vector<4x64xf32>
    %404 = arith.divf %402, %403 : vector<4x64xf32>
    %405 = vector.extract_strided_slice %398 {offsets = [0, 64], sizes = [4, 64], strides = [1, 1]} : vector<4x256xf32> to vector<4x64xf32>
    %406 = arith.negf %405 : vector<4x64xf32>
    %407 = math.exp %406 : vector<4x64xf32>
    %cst_135 = arith.constant 1.000000e+00 : f32
    %408 = vector.broadcast %cst_135 : f32 to vector<4x64xf32>
    %409 = arith.addf %408, %407 : vector<4x64xf32>
    %410 = arith.divf %408, %409 : vector<4x64xf32>
    %411 = vector.extract_strided_slice %398 {offsets = [0, 128], sizes = [4, 64], strides = [1, 1]} : vector<4x256xf32> to vector<4x64xf32>
    %412 = math.tanh %411 : vector<4x64xf32>
    %413 = vector.extract_strided_slice %398 {offsets = [0, 192], sizes = [4, 64], strides = [1, 1]} : vector<4x256xf32> to vector<4x64xf32>
    %414 = arith.negf %413 : vector<4x64xf32>
    %415 = math.exp %414 : vector<4x64xf32>
    %cst_136 = arith.constant 1.000000e+00 : f32
    %416 = vector.broadcast %cst_136 : f32 to vector<4x64xf32>
    %417 = arith.addf %416, %415 : vector<4x64xf32>
    %418 = arith.divf %416, %417 : vector<4x64xf32>
    %419 = arith.mulf %410, %391 : vector<4x64xf32>
    %420 = arith.mulf %404, %412 : vector<4x64xf32>
    %421 = arith.addf %419, %420 : vector<4x64xf32>
    %422 = math.tanh %421 : vector<4x64xf32>
    %423 = arith.mulf %418, %422 : vector<4x64xf32>
    %424 = arith.mulf %396, %423 : vector<4x64xf32>
    %425 = arith.index_cast %392 : i32 to index
    %c0_137 = arith.constant 0 : index
    %426 = vector.load %arg22[%425, %c0_137] : memref<32x64xf32, #tpu.memory_space<vmem>>, vector<4x64xf32>
    tpu.vector_store %arg22[%425, %c0_137], %424 {strides = array<i32>} : memref<32x64xf32, #tpu.memory_space<vmem>>, vector<4x64xf32>,
    %c7_i32_138 = arith.constant 7 : i32
    %427 = arith.subi %c7_i32_138, %c0_i32_129 : i32
    %c4_i32_139 = arith.constant 4 : i32
    %428 = arith.muli %427, %c4_i32_139 : i32
    %429 = arith.index_cast %428 : i32 to index
    %c0_140 = arith.constant 0 : index
    %430 = vector.load %arg23[%429, %c0_140] : memref<32x64xf32, #tpu.memory_space<vmem>>, vector<4x64xf32>
    tpu.vector_store %arg23[%429, %c0_140], %424 {strides = array<i32>} : memref<32x64xf32, #tpu.memory_space<vmem>>, vector<4x64xf32>,
    %431 = arith.subf %423, %389 : vector<4x64xf32>
    %432 = arith.mulf %396, %431 : vector<4x64xf32>
    %433 = arith.addf %389, %432 : vector<4x64xf32>
    %434 = arith.subf %421, %391 : vector<4x64xf32>
    %435 = arith.mulf %396, %434 : vector<4x64xf32>
    %436 = arith.addf %391, %435 : vector<4x64xf32>
    %c1_i32_141 = arith.constant 1 : i32
    %c4_i32_142 = arith.constant 4 : i32
    %437 = arith.muli %c1_i32_141, %c4_i32_142 : i32
    %438 = arith.index_cast %437 : i32 to index
    %c0_143 = arith.constant 0 : index
    %439 = vector.load %arg21[%438, %c0_143] : memref<32x256xf32, #tpu.memory_space<vmem>>, vector<4x256xf32>
    %440 = arith.index_cast %437 : i32 to index
    %c0_144 = arith.constant 0 : index
    %441 = vector.load %arg1[%440, %c0_144] : memref<32x64xf32, #tpu.memory_space<vmem>>, vector<4x64xf32>
    %cst_145 = arith.constant dense<0.000000e+00> : vector<4x256xf32>
    %442 = tpu.matmul %433, %387, %cst_145 {dimension_numbers = #tpu.dot_dimension_numbers<[1], [0], [0], [1], [0, 0, 1, 1], [], []>} : vector<4x64xf32>, vector<64x256xf32>, vector<4x256xf32> -> vector<4x256xf32>
    %443 = arith.addf %439, %442 : vector<4x256xf32>
    %444 = vector.extract_strided_slice %443 {offsets = [0, 0], sizes = [4, 64], strides = [1, 1]} : vector<4x256xf32> to vector<4x64xf32>
    %445 = arith.negf %444 : vector<4x64xf32>
    %446 = math.exp %445 : vector<4x64xf32>
    %cst_146 = arith.constant 1.000000e+00 : f32
    %447 = vector.broadcast %cst_146 : f32 to vector<4x64xf32>
    %448 = arith.addf %447, %446 : vector<4x64xf32>
    %449 = arith.divf %447, %448 : vector<4x64xf32>
    %450 = vector.extract_strided_slice %443 {offsets = [0, 64], sizes = [4, 64], strides = [1, 1]} : vector<4x256xf32> to vector<4x64xf32>
    %451 = arith.negf %450 : vector<4x64xf32>
    %452 = math.exp %451 : vector<4x64xf32>
    %cst_147 = arith.constant 1.000000e+00 : f32
    %453 = vector.broadcast %cst_147 : f32 to vector<4x64xf32>
    %454 = arith.addf %453, %452 : vector<4x64xf32>
    %455 = arith.divf %453, %454 : vector<4x64xf32>
    %456 = vector.extract_strided_slice %443 {offsets = [0, 128], sizes = [4, 64], strides = [1, 1]} : vector<4x256xf32> to vector<4x64xf32>
    %457 = math.tanh %456 : vector<4x64xf32>
    %458 = vector.extract_strided_slice %443 {offsets = [0, 192], sizes = [4, 64], strides = [1, 1]} : vector<4x256xf32> to vector<4x64xf32>
    %459 = arith.negf %458 : vector<4x64xf32>
    %460 = math.exp %459 : vector<4x64xf32>
    %cst_148 = arith.constant 1.000000e+00 : f32
    %461 = vector.broadcast %cst_148 : f32 to vector<4x64xf32>
    %462 = arith.addf %461, %460 : vector<4x64xf32>
    %463 = arith.divf %461, %462 : vector<4x64xf32>
    %464 = arith.mulf %455, %436 : vector<4x64xf32>
    %465 = arith.mulf %449, %457 : vector<4x64xf32>
    %466 = arith.addf %464, %465 : vector<4x64xf32>
    %467 = math.tanh %466 : vector<4x64xf32>
    %468 = arith.mulf %463, %467 : vector<4x64xf32>
    %469 = arith.mulf %441, %468 : vector<4x64xf32>
    %470 = arith.index_cast %437 : i32 to index
    %c0_149 = arith.constant 0 : index
    %471 = vector.load %arg22[%470, %c0_149] : memref<32x64xf32, #tpu.memory_space<vmem>>, vector<4x64xf32>
    tpu.vector_store %arg22[%470, %c0_149], %469 {strides = array<i32>} : memref<32x64xf32, #tpu.memory_space<vmem>>, vector<4x64xf32>,
    %c7_i32_150 = arith.constant 7 : i32
    %472 = arith.subi %c7_i32_150, %c1_i32_141 : i32
    %c4_i32_151 = arith.constant 4 : i32
    %473 = arith.muli %472, %c4_i32_151 : i32
    %474 = arith.index_cast %473 : i32 to index
    %c0_152 = arith.constant 0 : index
    %475 = vector.load %arg23[%474, %c0_152] : memref<32x64xf32, #tpu.memory_space<vmem>>, vector<4x64xf32>
    tpu.vector_store %arg23[%474, %c0_152], %469 {strides = array<i32>} : memref<32x64xf32, #tpu.memory_space<vmem>>, vector<4x64xf32>,
    %476 = arith.subf %468, %433 : vector<4x64xf32>
    %477 = arith.mulf %441, %476 : vector<4x64xf32>
    %478 = arith.addf %433, %477 : vector<4x64xf32>
    %479 = arith.subf %466, %436 : vector<4x64xf32>
    %480 = arith.mulf %441, %479 : vector<4x64xf32>
    %481 = arith.addf %436, %480 : vector<4x64xf32>
    %c2_i32_153 = arith.constant 2 : i32
    %c4_i32_154 = arith.constant 4 : i32
    %482 = arith.muli %c2_i32_153, %c4_i32_154 : i32
    %483 = arith.index_cast %482 : i32 to index
    %c0_155 = arith.constant 0 : index
    %484 = vector.load %arg21[%483, %c0_155] : memref<32x256xf32, #tpu.memory_space<vmem>>, vector<4x256xf32>
    %485 = arith.index_cast %482 : i32 to index
    %c0_156 = arith.constant 0 : index
    %486 = vector.load %arg1[%485, %c0_156] : memref<32x64xf32, #tpu.memory_space<vmem>>, vector<4x64xf32>
    %cst_157 = arith.constant dense<0.000000e+00> : vector<4x256xf32>
    %487 = tpu.matmul %478, %387, %cst_157 {dimension_numbers = #tpu.dot_dimension_numbers<[1], [0], [0], [1], [0, 0, 1, 1], [], []>} : vector<4x64xf32>, vector<64x256xf32>, vector<4x256xf32> -> vector<4x256xf32>
    %488 = arith.addf %484, %487 : vector<4x256xf32>
    %489 = vector.extract_strided_slice %488 {offsets = [0, 0], sizes = [4, 64], strides = [1, 1]} : vector<4x256xf32> to vector<4x64xf32>
    %490 = arith.negf %489 : vector<4x64xf32>
    %491 = math.exp %490 : vector<4x64xf32>
    %cst_158 = arith.constant 1.000000e+00 : f32
    %492 = vector.broadcast %cst_158 : f32 to vector<4x64xf32>
    %493 = arith.addf %492, %491 : vector<4x64xf32>
    %494 = arith.divf %492, %493 : vector<4x64xf32>
    %495 = vector.extract_strided_slice %488 {offsets = [0, 64], sizes = [4, 64], strides = [1, 1]} : vector<4x256xf32> to vector<4x64xf32>
    %496 = arith.negf %495 : vector<4x64xf32>
    %497 = math.exp %496 : vector<4x64xf32>
    %cst_159 = arith.constant 1.000000e+00 : f32
    %498 = vector.broadcast %cst_159 : f32 to vector<4x64xf32>
    %499 = arith.addf %498, %497 : vector<4x64xf32>
    %500 = arith.divf %498, %499 : vector<4x64xf32>
    %501 = vector.extract_strided_slice %488 {offsets = [0, 128], sizes = [4, 64], strides = [1, 1]} : vector<4x256xf32> to vector<4x64xf32>
    %502 = math.tanh %501 : vector<4x64xf32>
    %503 = vector.extract_strided_slice %488 {offsets = [0, 192], sizes = [4, 64], strides = [1, 1]} : vector<4x256xf32> to vector<4x64xf32>
    %504 = arith.negf %503 : vector<4x64xf32>
    %505 = math.exp %504 : vector<4x64xf32>
    %cst_160 = arith.constant 1.000000e+00 : f32
    %506 = vector.broadcast %cst_160 : f32 to vector<4x64xf32>
    %507 = arith.addf %506, %505 : vector<4x64xf32>
    %508 = arith.divf %506, %507 : vector<4x64xf32>
    %509 = arith.mulf %500, %481 : vector<4x64xf32>
    %510 = arith.mulf %494, %502 : vector<4x64xf32>
    %511 = arith.addf %509, %510 : vector<4x64xf32>
    %512 = math.tanh %511 : vector<4x64xf32>
    %513 = arith.mulf %508, %512 : vector<4x64xf32>
    %514 = arith.mulf %486, %513 : vector<4x64xf32>
    %515 = arith.index_cast %482 : i32 to index
    %c0_161 = arith.constant 0 : index
    %516 = vector.load %arg22[%515, %c0_161] : memref<32x64xf32, #tpu.memory_space<vmem>>, vector<4x64xf32>
    tpu.vector_store %arg22[%515, %c0_161], %514 {strides = array<i32>} : memref<32x64xf32, #tpu.memory_space<vmem>>, vector<4x64xf32>,
    %c7_i32_162 = arith.constant 7 : i32
    %517 = arith.subi %c7_i32_162, %c2_i32_153 : i32
    %c4_i32_163 = arith.constant 4 : i32
    %518 = arith.muli %517, %c4_i32_163 : i32
    %519 = arith.index_cast %518 : i32 to index
    %c0_164 = arith.constant 0 : index
    %520 = vector.load %arg23[%519, %c0_164] : memref<32x64xf32, #tpu.memory_space<vmem>>, vector<4x64xf32>
    tpu.vector_store %arg23[%519, %c0_164], %514 {strides = array<i32>} : memref<32x64xf32, #tpu.memory_space<vmem>>, vector<4x64xf32>,
    %521 = arith.subf %513, %478 : vector<4x64xf32>
    %522 = arith.mulf %486, %521 : vector<4x64xf32>
    %523 = arith.addf %478, %522 : vector<4x64xf32>
    %524 = arith.subf %511, %481 : vector<4x64xf32>
    %525 = arith.mulf %486, %524 : vector<4x64xf32>
    %526 = arith.addf %481, %525 : vector<4x64xf32>
    %c3_i32_165 = arith.constant 3 : i32
    %c4_i32_166 = arith.constant 4 : i32
    %527 = arith.muli %c3_i32_165, %c4_i32_166 : i32
    %528 = arith.index_cast %527 : i32 to index
    %c0_167 = arith.constant 0 : index
    %529 = vector.load %arg21[%528, %c0_167] : memref<32x256xf32, #tpu.memory_space<vmem>>, vector<4x256xf32>
    %530 = arith.index_cast %527 : i32 to index
    %c0_168 = arith.constant 0 : index
    %531 = vector.load %arg1[%530, %c0_168] : memref<32x64xf32, #tpu.memory_space<vmem>>, vector<4x64xf32>
    %cst_169 = arith.constant dense<0.000000e+00> : vector<4x256xf32>
    %532 = tpu.matmul %523, %387, %cst_169 {dimension_numbers = #tpu.dot_dimension_numbers<[1], [0], [0], [1], [0, 0, 1, 1], [], []>} : vector<4x64xf32>, vector<64x256xf32>, vector<4x256xf32> -> vector<4x256xf32>
    %533 = arith.addf %529, %532 : vector<4x256xf32>
    %534 = vector.extract_strided_slice %533 {offsets = [0, 0], sizes = [4, 64], strides = [1, 1]} : vector<4x256xf32> to vector<4x64xf32>
    %535 = arith.negf %534 : vector<4x64xf32>
    %536 = math.exp %535 : vector<4x64xf32>
    %cst_170 = arith.constant 1.000000e+00 : f32
    %537 = vector.broadcast %cst_170 : f32 to vector<4x64xf32>
    %538 = arith.addf %537, %536 : vector<4x64xf32>
    %539 = arith.divf %537, %538 : vector<4x64xf32>
    %540 = vector.extract_strided_slice %533 {offsets = [0, 64], sizes = [4, 64], strides = [1, 1]} : vector<4x256xf32> to vector<4x64xf32>
    %541 = arith.negf %540 : vector<4x64xf32>
    %542 = math.exp %541 : vector<4x64xf32>
    %cst_171 = arith.constant 1.000000e+00 : f32
    %543 = vector.broadcast %cst_171 : f32 to vector<4x64xf32>
    %544 = arith.addf %543, %542 : vector<4x64xf32>
    %545 = arith.divf %543, %544 : vector<4x64xf32>
    %546 = vector.extract_strided_slice %533 {offsets = [0, 128], sizes = [4, 64], strides = [1, 1]} : vector<4x256xf32> to vector<4x64xf32>
    %547 = math.tanh %546 : vector<4x64xf32>
    %548 = vector.extract_strided_slice %533 {offsets = [0, 192], sizes = [4, 64], strides = [1, 1]} : vector<4x256xf32> to vector<4x64xf32>
    %549 = arith.negf %548 : vector<4x64xf32>
    %550 = math.exp %549 : vector<4x64xf32>
    %cst_172 = arith.constant 1.000000e+00 : f32
    %551 = vector.broadcast %cst_172 : f32 to vector<4x64xf32>
    %552 = arith.addf %551, %550 : vector<4x64xf32>
    %553 = arith.divf %551, %552 : vector<4x64xf32>
    %554 = arith.mulf %545, %526 : vector<4x64xf32>
    %555 = arith.mulf %539, %547 : vector<4x64xf32>
    %556 = arith.addf %554, %555 : vector<4x64xf32>
    %557 = math.tanh %556 : vector<4x64xf32>
    %558 = arith.mulf %553, %557 : vector<4x64xf32>
    %559 = arith.mulf %531, %558 : vector<4x64xf32>
    %560 = arith.index_cast %527 : i32 to index
    %c0_173 = arith.constant 0 : index
    %561 = vector.load %arg22[%560, %c0_173] : memref<32x64xf32, #tpu.memory_space<vmem>>, vector<4x64xf32>
    tpu.vector_store %arg22[%560, %c0_173], %559 {strides = array<i32>} : memref<32x64xf32, #tpu.memory_space<vmem>>, vector<4x64xf32>,
    %c7_i32_174 = arith.constant 7 : i32
    %562 = arith.subi %c7_i32_174, %c3_i32_165 : i32
    %c4_i32_175 = arith.constant 4 : i32
    %563 = arith.muli %562, %c4_i32_175 : i32
    %564 = arith.index_cast %563 : i32 to index
    %c0_176 = arith.constant 0 : index
    %565 = vector.load %arg23[%564, %c0_176] : memref<32x64xf32, #tpu.memory_space<vmem>>, vector<4x64xf32>
    tpu.vector_store %arg23[%564, %c0_176], %559 {strides = array<i32>} : memref<32x64xf32, #tpu.memory_space<vmem>>, vector<4x64xf32>,
    %566 = arith.subf %558, %523 : vector<4x64xf32>
    %567 = arith.mulf %531, %566 : vector<4x64xf32>
    %568 = arith.addf %523, %567 : vector<4x64xf32>
    %569 = arith.subf %556, %526 : vector<4x64xf32>
    %570 = arith.mulf %531, %569 : vector<4x64xf32>
    %571 = arith.addf %526, %570 : vector<4x64xf32>
    %c4_i32_177 = arith.constant 4 : i32
    %c4_i32_178 = arith.constant 4 : i32
    %572 = arith.muli %c4_i32_177, %c4_i32_178 : i32
    %573 = arith.index_cast %572 : i32 to index
    %c0_179 = arith.constant 0 : index
    %574 = vector.load %arg21[%573, %c0_179] : memref<32x256xf32, #tpu.memory_space<vmem>>, vector<4x256xf32>
    %575 = arith.index_cast %572 : i32 to index
    %c0_180 = arith.constant 0 : index
    %576 = vector.load %arg1[%575, %c0_180] : memref<32x64xf32, #tpu.memory_space<vmem>>, vector<4x64xf32>
    %cst_181 = arith.constant dense<0.000000e+00> : vector<4x256xf32>
    %577 = tpu.matmul %568, %387, %cst_181 {dimension_numbers = #tpu.dot_dimension_numbers<[1], [0], [0], [1], [0, 0, 1, 1], [], []>} : vector<4x64xf32>, vector<64x256xf32>, vector<4x256xf32> -> vector<4x256xf32>
    %578 = arith.addf %574, %577 : vector<4x256xf32>
    %579 = vector.extract_strided_slice %578 {offsets = [0, 0], sizes = [4, 64], strides = [1, 1]} : vector<4x256xf32> to vector<4x64xf32>
    %580 = arith.negf %579 : vector<4x64xf32>
    %581 = math.exp %580 : vector<4x64xf32>
    %cst_182 = arith.constant 1.000000e+00 : f32
    %582 = vector.broadcast %cst_182 : f32 to vector<4x64xf32>
    %583 = arith.addf %582, %581 : vector<4x64xf32>
    %584 = arith.divf %582, %583 : vector<4x64xf32>
    %585 = vector.extract_strided_slice %578 {offsets = [0, 64], sizes = [4, 64], strides = [1, 1]} : vector<4x256xf32> to vector<4x64xf32>
    %586 = arith.negf %585 : vector<4x64xf32>
    %587 = math.exp %586 : vector<4x64xf32>
    %cst_183 = arith.constant 1.000000e+00 : f32
    %588 = vector.broadcast %cst_183 : f32 to vector<4x64xf32>
    %589 = arith.addf %588, %587 : vector<4x64xf32>
    %590 = arith.divf %588, %589 : vector<4x64xf32>
    %591 = vector.extract_strided_slice %578 {offsets = [0, 128], sizes = [4, 64], strides = [1, 1]} : vector<4x256xf32> to vector<4x64xf32>
    %592 = math.tanh %591 : vector<4x64xf32>
    %593 = vector.extract_strided_slice %578 {offsets = [0, 192], sizes = [4, 64], strides = [1, 1]} : vector<4x256xf32> to vector<4x64xf32>
    %594 = arith.negf %593 : vector<4x64xf32>
    %595 = math.exp %594 : vector<4x64xf32>
    %cst_184 = arith.constant 1.000000e+00 : f32
    %596 = vector.broadcast %cst_184 : f32 to vector<4x64xf32>
    %597 = arith.addf %596, %595 : vector<4x64xf32>
    %598 = arith.divf %596, %597 : vector<4x64xf32>
    %599 = arith.mulf %590, %571 : vector<4x64xf32>
    %600 = arith.mulf %584, %592 : vector<4x64xf32>
    %601 = arith.addf %599, %600 : vector<4x64xf32>
    %602 = math.tanh %601 : vector<4x64xf32>
    %603 = arith.mulf %598, %602 : vector<4x64xf32>
    %604 = arith.mulf %576, %603 : vector<4x64xf32>
    %605 = arith.index_cast %572 : i32 to index
    %c0_185 = arith.constant 0 : index
    %606 = vector.load %arg22[%605, %c0_185] : memref<32x64xf32, #tpu.memory_space<vmem>>, vector<4x64xf32>
    tpu.vector_store %arg22[%605, %c0_185], %604 {strides = array<i32>} : memref<32x64xf32, #tpu.memory_space<vmem>>, vector<4x64xf32>,
    %c7_i32_186 = arith.constant 7 : i32
    %607 = arith.subi %c7_i32_186, %c4_i32_177 : i32
    %c4_i32_187 = arith.constant 4 : i32
    %608 = arith.muli %607, %c4_i32_187 : i32
    %609 = arith.index_cast %608 : i32 to index
    %c0_188 = arith.constant 0 : index
    %610 = vector.load %arg23[%609, %c0_188] : memref<32x64xf32, #tpu.memory_space<vmem>>, vector<4x64xf32>
    tpu.vector_store %arg23[%609, %c0_188], %604 {strides = array<i32>} : memref<32x64xf32, #tpu.memory_space<vmem>>, vector<4x64xf32>,
    %611 = arith.subf %603, %568 : vector<4x64xf32>
    %612 = arith.mulf %576, %611 : vector<4x64xf32>
    %613 = arith.addf %568, %612 : vector<4x64xf32>
    %614 = arith.subf %601, %571 : vector<4x64xf32>
    %615 = arith.mulf %576, %614 : vector<4x64xf32>
    %616 = arith.addf %571, %615 : vector<4x64xf32>
    %c5_i32_189 = arith.constant 5 : i32
    %c4_i32_190 = arith.constant 4 : i32
    %617 = arith.muli %c5_i32_189, %c4_i32_190 : i32
    %618 = arith.index_cast %617 : i32 to index
    %c0_191 = arith.constant 0 : index
    %619 = vector.load %arg21[%618, %c0_191] : memref<32x256xf32, #tpu.memory_space<vmem>>, vector<4x256xf32>
    %620 = arith.index_cast %617 : i32 to index
    %c0_192 = arith.constant 0 : index
    %621 = vector.load %arg1[%620, %c0_192] : memref<32x64xf32, #tpu.memory_space<vmem>>, vector<4x64xf32>
    %cst_193 = arith.constant dense<0.000000e+00> : vector<4x256xf32>
    %622 = tpu.matmul %613, %387, %cst_193 {dimension_numbers = #tpu.dot_dimension_numbers<[1], [0], [0], [1], [0, 0, 1, 1], [], []>} : vector<4x64xf32>, vector<64x256xf32>, vector<4x256xf32> -> vector<4x256xf32>
    %623 = arith.addf %619, %622 : vector<4x256xf32>
    %624 = vector.extract_strided_slice %623 {offsets = [0, 0], sizes = [4, 64], strides = [1, 1]} : vector<4x256xf32> to vector<4x64xf32>
    %625 = arith.negf %624 : vector<4x64xf32>
    %626 = math.exp %625 : vector<4x64xf32>
    %cst_194 = arith.constant 1.000000e+00 : f32
    %627 = vector.broadcast %cst_194 : f32 to vector<4x64xf32>
    %628 = arith.addf %627, %626 : vector<4x64xf32>
    %629 = arith.divf %627, %628 : vector<4x64xf32>
    %630 = vector.extract_strided_slice %623 {offsets = [0, 64], sizes = [4, 64], strides = [1, 1]} : vector<4x256xf32> to vector<4x64xf32>
    %631 = arith.negf %630 : vector<4x64xf32>
    %632 = math.exp %631 : vector<4x64xf32>
    %cst_195 = arith.constant 1.000000e+00 : f32
    %633 = vector.broadcast %cst_195 : f32 to vector<4x64xf32>
    %634 = arith.addf %633, %632 : vector<4x64xf32>
    %635 = arith.divf %633, %634 : vector<4x64xf32>
    %636 = vector.extract_strided_slice %623 {offsets = [0, 128], sizes = [4, 64], strides = [1, 1]} : vector<4x256xf32> to vector<4x64xf32>
    %637 = math.tanh %636 : vector<4x64xf32>
    %638 = vector.extract_strided_slice %623 {offsets = [0, 192], sizes = [4, 64], strides = [1, 1]} : vector<4x256xf32> to vector<4x64xf32>
    %639 = arith.negf %638 : vector<4x64xf32>
    %640 = math.exp %639 : vector<4x64xf32>
    %cst_196 = arith.constant 1.000000e+00 : f32
    %641 = vector.broadcast %cst_196 : f32 to vector<4x64xf32>
    %642 = arith.addf %641, %640 : vector<4x64xf32>
    %643 = arith.divf %641, %642 : vector<4x64xf32>
    %644 = arith.mulf %635, %616 : vector<4x64xf32>
    %645 = arith.mulf %629, %637 : vector<4x64xf32>
    %646 = arith.addf %644, %645 : vector<4x64xf32>
    %647 = math.tanh %646 : vector<4x64xf32>
    %648 = arith.mulf %643, %647 : vector<4x64xf32>
    %649 = arith.mulf %621, %648 : vector<4x64xf32>
    %650 = arith.index_cast %617 : i32 to index
    %c0_197 = arith.constant 0 : index
    %651 = vector.load %arg22[%650, %c0_197] : memref<32x64xf32, #tpu.memory_space<vmem>>, vector<4x64xf32>
    tpu.vector_store %arg22[%650, %c0_197], %649 {strides = array<i32>} : memref<32x64xf32, #tpu.memory_space<vmem>>, vector<4x64xf32>,
    %c7_i32_198 = arith.constant 7 : i32
    %652 = arith.subi %c7_i32_198, %c5_i32_189 : i32
    %c4_i32_199 = arith.constant 4 : i32
    %653 = arith.muli %652, %c4_i32_199 : i32
    %654 = arith.index_cast %653 : i32 to index
    %c0_200 = arith.constant 0 : index
    %655 = vector.load %arg23[%654, %c0_200] : memref<32x64xf32, #tpu.memory_space<vmem>>, vector<4x64xf32>
    tpu.vector_store %arg23[%654, %c0_200], %649 {strides = array<i32>} : memref<32x64xf32, #tpu.memory_space<vmem>>, vector<4x64xf32>,
    %656 = arith.subf %648, %613 : vector<4x64xf32>
    %657 = arith.mulf %621, %656 : vector<4x64xf32>
    %658 = arith.addf %613, %657 : vector<4x64xf32>
    %659 = arith.subf %646, %616 : vector<4x64xf32>
    %660 = arith.mulf %621, %659 : vector<4x64xf32>
    %661 = arith.addf %616, %660 : vector<4x64xf32>
    %c6_i32_201 = arith.constant 6 : i32
    %c4_i32_202 = arith.constant 4 : i32
    %662 = arith.muli %c6_i32_201, %c4_i32_202 : i32
    %663 = arith.index_cast %662 : i32 to index
    %c0_203 = arith.constant 0 : index
    %664 = vector.load %arg21[%663, %c0_203] : memref<32x256xf32, #tpu.memory_space<vmem>>, vector<4x256xf32>
    %665 = arith.index_cast %662 : i32 to index
    %c0_204 = arith.constant 0 : index
    %666 = vector.load %arg1[%665, %c0_204] : memref<32x64xf32, #tpu.memory_space<vmem>>, vector<4x64xf32>
    %cst_205 = arith.constant dense<0.000000e+00> : vector<4x256xf32>
    %667 = tpu.matmul %658, %387, %cst_205 {dimension_numbers = #tpu.dot_dimension_numbers<[1], [0], [0], [1], [0, 0, 1, 1], [], []>} : vector<4x64xf32>, vector<64x256xf32>, vector<4x256xf32> -> vector<4x256xf32>
    %668 = arith.addf %664, %667 : vector<4x256xf32>
    %669 = vector.extract_strided_slice %668 {offsets = [0, 0], sizes = [4, 64], strides = [1, 1]} : vector<4x256xf32> to vector<4x64xf32>
    %670 = arith.negf %669 : vector<4x64xf32>
    %671 = math.exp %670 : vector<4x64xf32>
    %cst_206 = arith.constant 1.000000e+00 : f32
    %672 = vector.broadcast %cst_206 : f32 to vector<4x64xf32>
    %673 = arith.addf %672, %671 : vector<4x64xf32>
    %674 = arith.divf %672, %673 : vector<4x64xf32>
    %675 = vector.extract_strided_slice %668 {offsets = [0, 64], sizes = [4, 64], strides = [1, 1]} : vector<4x256xf32> to vector<4x64xf32>
    %676 = arith.negf %675 : vector<4x64xf32>
    %677 = math.exp %676 : vector<4x64xf32>
    %cst_207 = arith.constant 1.000000e+00 : f32
    %678 = vector.broadcast %cst_207 : f32 to vector<4x64xf32>
    %679 = arith.addf %678, %677 : vector<4x64xf32>
    %680 = arith.divf %678, %679 : vector<4x64xf32>
    %681 = vector.extract_strided_slice %668 {offsets = [0, 128], sizes = [4, 64], strides = [1, 1]} : vector<4x256xf32> to vector<4x64xf32>
    %682 = math.tanh %681 : vector<4x64xf32>
    %683 = vector.extract_strided_slice %668 {offsets = [0, 192], sizes = [4, 64], strides = [1, 1]} : vector<4x256xf32> to vector<4x64xf32>
    %684 = arith.negf %683 : vector<4x64xf32>
    %685 = math.exp %684 : vector<4x64xf32>
    %cst_208 = arith.constant 1.000000e+00 : f32
    %686 = vector.broadcast %cst_208 : f32 to vector<4x64xf32>
    %687 = arith.addf %686, %685 : vector<4x64xf32>
    %688 = arith.divf %686, %687 : vector<4x64xf32>
    %689 = arith.mulf %680, %661 : vector<4x64xf32>
    %690 = arith.mulf %674, %682 : vector<4x64xf32>
    %691 = arith.addf %689, %690 : vector<4x64xf32>
    %692 = math.tanh %691 : vector<4x64xf32>
    %693 = arith.mulf %688, %692 : vector<4x64xf32>
    %694 = arith.mulf %666, %693 : vector<4x64xf32>
    %695 = arith.index_cast %662 : i32 to index
    %c0_209 = arith.constant 0 : index
    %696 = vector.load %arg22[%695, %c0_209] : memref<32x64xf32, #tpu.memory_space<vmem>>, vector<4x64xf32>
    tpu.vector_store %arg22[%695, %c0_209], %694 {strides = array<i32>} : memref<32x64xf32, #tpu.memory_space<vmem>>, vector<4x64xf32>,
    %c7_i32_210 = arith.constant 7 : i32
    %697 = arith.subi %c7_i32_210, %c6_i32_201 : i32
    %c4_i32_211 = arith.constant 4 : i32
    %698 = arith.muli %697, %c4_i32_211 : i32
    %699 = arith.index_cast %698 : i32 to index
    %c0_212 = arith.constant 0 : index
    %700 = vector.load %arg23[%699, %c0_212] : memref<32x64xf32, #tpu.memory_space<vmem>>, vector<4x64xf32>
    tpu.vector_store %arg23[%699, %c0_212], %694 {strides = array<i32>} : memref<32x64xf32, #tpu.memory_space<vmem>>, vector<4x64xf32>,
    %701 = arith.subf %693, %658 : vector<4x64xf32>
    %702 = arith.mulf %666, %701 : vector<4x64xf32>
    %703 = arith.addf %658, %702 : vector<4x64xf32>
    %704 = arith.subf %691, %661 : vector<4x64xf32>
    %705 = arith.mulf %666, %704 : vector<4x64xf32>
    %706 = arith.addf %661, %705 : vector<4x64xf32>
    %c7_i32_213 = arith.constant 7 : i32
    %c4_i32_214 = arith.constant 4 : i32
    %707 = arith.muli %c7_i32_213, %c4_i32_214 : i32
    %708 = arith.index_cast %707 : i32 to index
    %c0_215 = arith.constant 0 : index
    %709 = vector.load %arg21[%708, %c0_215] : memref<32x256xf32, #tpu.memory_space<vmem>>, vector<4x256xf32>
    %710 = arith.index_cast %707 : i32 to index
    %c0_216 = arith.constant 0 : index
    %711 = vector.load %arg1[%710, %c0_216] : memref<32x64xf32, #tpu.memory_space<vmem>>, vector<4x64xf32>
    %cst_217 = arith.constant dense<0.000000e+00> : vector<4x256xf32>
    %712 = tpu.matmul %703, %387, %cst_217 {dimension_numbers = #tpu.dot_dimension_numbers<[1], [0], [0], [1], [0, 0, 1, 1], [], []>} : vector<4x64xf32>, vector<64x256xf32>, vector<4x256xf32> -> vector<4x256xf32>
    %713 = arith.addf %709, %712 : vector<4x256xf32>
    %714 = vector.extract_strided_slice %713 {offsets = [0, 0], sizes = [4, 64], strides = [1, 1]} : vector<4x256xf32> to vector<4x64xf32>
    %715 = arith.negf %714 : vector<4x64xf32>
    %716 = math.exp %715 : vector<4x64xf32>
    %cst_218 = arith.constant 1.000000e+00 : f32
    %717 = vector.broadcast %cst_218 : f32 to vector<4x64xf32>
    %718 = arith.addf %717, %716 : vector<4x64xf32>
    %719 = arith.divf %717, %718 : vector<4x64xf32>
    %720 = vector.extract_strided_slice %713 {offsets = [0, 64], sizes = [4, 64], strides = [1, 1]} : vector<4x256xf32> to vector<4x64xf32>
    %721 = arith.negf %720 : vector<4x64xf32>
    %722 = math.exp %721 : vector<4x64xf32>
    %cst_219 = arith.constant 1.000000e+00 : f32
    %723 = vector.broadcast %cst_219 : f32 to vector<4x64xf32>
    %724 = arith.addf %723, %722 : vector<4x64xf32>
    %725 = arith.divf %723, %724 : vector<4x64xf32>
    %726 = vector.extract_strided_slice %713 {offsets = [0, 128], sizes = [4, 64], strides = [1, 1]} : vector<4x256xf32> to vector<4x64xf32>
    %727 = math.tanh %726 : vector<4x64xf32>
    %728 = vector.extract_strided_slice %713 {offsets = [0, 192], sizes = [4, 64], strides = [1, 1]} : vector<4x256xf32> to vector<4x64xf32>
    %729 = arith.negf %728 : vector<4x64xf32>
    %730 = math.exp %729 : vector<4x64xf32>
    %cst_220 = arith.constant 1.000000e+00 : f32
    %731 = vector.broadcast %cst_220 : f32 to vector<4x64xf32>
    %732 = arith.addf %731, %730 : vector<4x64xf32>
    %733 = arith.divf %731, %732 : vector<4x64xf32>
    %734 = arith.mulf %725, %706 : vector<4x64xf32>
    %735 = arith.mulf %719, %727 : vector<4x64xf32>
    %736 = arith.addf %734, %735 : vector<4x64xf32>
    %737 = math.tanh %736 : vector<4x64xf32>
    %738 = arith.mulf %733, %737 : vector<4x64xf32>
    %739 = arith.mulf %711, %738 : vector<4x64xf32>
    %740 = arith.index_cast %707 : i32 to index
    %c0_221 = arith.constant 0 : index
    %741 = vector.load %arg22[%740, %c0_221] : memref<32x64xf32, #tpu.memory_space<vmem>>, vector<4x64xf32>
    tpu.vector_store %arg22[%740, %c0_221], %739 {strides = array<i32>} : memref<32x64xf32, #tpu.memory_space<vmem>>, vector<4x64xf32>,
    %c7_i32_222 = arith.constant 7 : i32
    %742 = arith.subi %c7_i32_222, %c7_i32_213 : i32
    %c4_i32_223 = arith.constant 4 : i32
    %743 = arith.muli %742, %c4_i32_223 : i32
    %744 = arith.index_cast %743 : i32 to index
    %c0_224 = arith.constant 0 : index
    %745 = vector.load %arg23[%744, %c0_224] : memref<32x64xf32, #tpu.memory_space<vmem>>, vector<4x64xf32>
    tpu.vector_store %arg23[%744, %c0_224], %739 {strides = array<i32>} : memref<32x64xf32, #tpu.memory_space<vmem>>, vector<4x64xf32>,
    %746 = arith.subf %738, %703 : vector<4x64xf32>
    %747 = arith.mulf %711, %746 : vector<4x64xf32>
    %748 = arith.addf %703, %747 : vector<4x64xf32>
    %749 = arith.subf %736, %706 : vector<4x64xf32>
    %750 = arith.mulf %711, %749 : vector<4x64xf32>
    %751 = arith.addf %706, %750 : vector<4x64xf32>
    %c8_i32_225 = arith.constant 8 : i32
    %c0_226 = arith.constant 0 : index
    %c0_227 = arith.constant 0 : index
    %752 = vector.load %arg22[%c0_226, %c0_227] : memref<32x64xf32, #tpu.memory_space<vmem>>, vector<32x64xf32>
    %c0_228 = arith.constant 0 : index
    %c0_229 = arith.constant 0 : index
    %753 = vector.load %arg23[%c0_228, %c0_229] : memref<32x64xf32, #tpu.memory_space<vmem>>, vector<32x64xf32>
    %c0_230 = arith.constant 0 : index
    %c0_231 = arith.constant 0 : index
    %754 = vector.load %arg14[%c0_230, %c0_231] : memref<64x128xf32, #tpu.memory_space<vmem>>, vector<64x128xf32>
    %cst_232 = arith.constant dense<0.000000e+00> : vector<32x128xf32>
    %755 = tpu.matmul %752, %754, %cst_232 {dimension_numbers = #tpu.dot_dimension_numbers<[1], [0], [0], [1], [0, 0, 1, 1], [], []>} : vector<32x64xf32>, vector<64x128xf32>, vector<32x128xf32> -> vector<32x128xf32>
    %c0_233 = arith.constant 0 : index
    %c0_234 = arith.constant 0 : index
    %756 = vector.load %arg15[%c0_233, %c0_234] : memref<64x128xf32, #tpu.memory_space<vmem>>, vector<64x128xf32>
    %cst_235 = arith.constant dense<0.000000e+00> : vector<32x128xf32>
    %757 = tpu.matmul %753, %756, %cst_235 {dimension_numbers = #tpu.dot_dimension_numbers<[1], [0], [0], [1], [0, 0, 1, 1], [], []>} : vector<32x64xf32>, vector<64x128xf32>, vector<32x128xf32> -> vector<32x128xf32>
    %758 = arith.addf %755, %757 : vector<32x128xf32>
    %c0_236 = arith.constant 0 : index
    %c0_237 = arith.constant 0 : index
    %759 = vector.load %arg16[%c0_236, %c0_237] : memref<1x128xf32, #tpu.memory_space<vmem>>, vector<1x128xf32>
    %760 = vector.broadcast %759 : vector<1x128xf32> to vector<32x128xf32>
    %761 = arith.addf %758, %760 : vector<32x128xf32>
    %c0_238 = arith.constant 0 : index
    %c0_239 = arith.constant 0 : index
    %762 = vector.load %arg19[%c0_238, %c0_239] : memref<32x128xf32, #tpu.memory_space<vmem>>, vector<32x128xf32>
    tpu.vector_store %arg19[%c0_238, %c0_239], %761 {strides = array<i32>} : memref<32x128xf32, #tpu.memory_space<vmem>>, vector<32x128xf32>,
    %cst_240 = arith.constant 0.000000e+00 : f32
    %763 = vector.broadcast %cst_240 : f32 to vector<4x64xf32>
    %c0_i32_241 = arith.constant 0 : i32
    %c4_i32_242 = arith.constant 4 : i32
    %764 = arith.muli %c0_i32_241, %c4_i32_242 : i32
    %765 = arith.index_cast %764 : i32 to index
    %c0_243 = arith.constant 0 : index
    %766 = vector.load %arg22[%765, %c0_243] : memref<32x64xf32, #tpu.memory_space<vmem>>, vector<4x64xf32>
    %767 = arith.addf %763, %766 : vector<4x64xf32>
    %c1_i32_244 = arith.constant 1 : i32
    %c4_i32_245 = arith.constant 4 : i32
    %768 = arith.muli %c1_i32_244, %c4_i32_245 : i32
    %769 = arith.index_cast %768 : i32 to index
    %c0_246 = arith.constant 0 : index
    %770 = vector.load %arg22[%769, %c0_246] : memref<32x64xf32, #tpu.memory_space<vmem>>, vector<4x64xf32>
    %771 = arith.addf %767, %770 : vector<4x64xf32>
    %c2_i32_247 = arith.constant 2 : i32
    %c4_i32_248 = arith.constant 4 : i32
    %772 = arith.muli %c2_i32_247, %c4_i32_248 : i32
    %773 = arith.index_cast %772 : i32 to index
    %c0_249 = arith.constant 0 : index
    %774 = vector.load %arg22[%773, %c0_249] : memref<32x64xf32, #tpu.memory_space<vmem>>, vector<4x64xf32>
    %775 = arith.addf %771, %774 : vector<4x64xf32>
    %c3_i32_250 = arith.constant 3 : i32
    %c4_i32_251 = arith.constant 4 : i32
    %776 = arith.muli %c3_i32_250, %c4_i32_251 : i32
    %777 = arith.index_cast %776 : i32 to index
    %c0_252 = arith.constant 0 : index
    %778 = vector.load %arg22[%777, %c0_252] : memref<32x64xf32, #tpu.memory_space<vmem>>, vector<4x64xf32>
    %779 = arith.addf %775, %778 : vector<4x64xf32>
    %c4_i32_253 = arith.constant 4 : i32
    %c4_i32_254 = arith.constant 4 : i32
    %780 = arith.muli %c4_i32_253, %c4_i32_254 : i32
    %781 = arith.index_cast %780 : i32 to index
    %c0_255 = arith.constant 0 : index
    %782 = vector.load %arg22[%781, %c0_255] : memref<32x64xf32, #tpu.memory_space<vmem>>, vector<4x64xf32>
    %783 = arith.addf %779, %782 : vector<4x64xf32>
    %c5_i32_256 = arith.constant 5 : i32
    %c4_i32_257 = arith.constant 4 : i32
    %784 = arith.muli %c5_i32_256, %c4_i32_257 : i32
    %785 = arith.index_cast %784 : i32 to index
    %c0_258 = arith.constant 0 : index
    %786 = vector.load %arg22[%785, %c0_258] : memref<32x64xf32, #tpu.memory_space<vmem>>, vector<4x64xf32>
    %787 = arith.addf %783, %786 : vector<4x64xf32>
    %c6_i32_259 = arith.constant 6 : i32
    %c4_i32_260 = arith.constant 4 : i32
    %788 = arith.muli %c6_i32_259, %c4_i32_260 : i32
    %789 = arith.index_cast %788 : i32 to index
    %c0_261 = arith.constant 0 : index
    %790 = vector.load %arg22[%789, %c0_261] : memref<32x64xf32, #tpu.memory_space<vmem>>, vector<4x64xf32>
    %791 = arith.addf %787, %790 : vector<4x64xf32>
    %c7_i32_262 = arith.constant 7 : i32
    %c4_i32_263 = arith.constant 4 : i32
    %792 = arith.muli %c7_i32_262, %c4_i32_263 : i32
    %793 = arith.index_cast %792 : i32 to index
    %c0_264 = arith.constant 0 : index
    %794 = vector.load %arg22[%793, %c0_264] : memref<32x64xf32, #tpu.memory_space<vmem>>, vector<4x64xf32>
    %795 = arith.addf %791, %794 : vector<4x64xf32>
    %c8_i32_265 = arith.constant 8 : i32
    %cst_266 = arith.constant 1.250000e-01 : f32
    %796 = vector.broadcast %cst_266 : f32 to vector<4x64xf32>
    %797 = arith.mulf %795, %796 : vector<4x64xf32>
    %c0_267 = arith.constant 0 : index
    %c0_268 = arith.constant 0 : index
    %798 = vector.load %arg17[%c0_267, %c0_268] : memref<64x128xf32, #tpu.memory_space<vmem>>, vector<64x128xf32>
    %cst_269 = arith.constant dense<0.000000e+00> : vector<4x128xf32>
    %799 = tpu.matmul %797, %798, %cst_269 {dimension_numbers = #tpu.dot_dimension_numbers<[1], [0], [0], [1], [0, 0, 1, 1], [], []>} : vector<4x64xf32>, vector<64x128xf32>, vector<4x128xf32> -> vector<4x128xf32>
    %c0_270 = arith.constant 0 : index
    %c0_271 = arith.constant 0 : index
    %800 = vector.load %arg18[%c0_270, %c0_271] : memref<1x128xf32, #tpu.memory_space<vmem>>, vector<1x128xf32>
    %801 = vector.broadcast %800 : vector<1x128xf32> to vector<4x128xf32>
    %802 = arith.addf %799, %801 : vector<4x128xf32>
    %c0_272 = arith.constant 0 : index
    %c0_273 = arith.constant 0 : index
    %803 = vector.load %arg20[%c0_272, %c0_273] : memref<4x128xf32, #tpu.memory_space<vmem>>, vector<4x128xf32>
    tpu.vector_store %arg20[%c0_272, %c0_273], %802 {strides = array<i32>} : memref<4x128xf32, #tpu.memory_space<vmem>>, vector<4x128xf32>,
    return
  }
  func.func @transform_0(%arg0: i32) -> (i32, i32) {
    %c0_i32 = arith.constant 0 : i32
    %c0_i32_0 = arith.constant 0 : i32
    %c0_i32_1 = arith.constant 0 : i32
    return %c0_i32, %c0_i32_0 : i32, i32
  }
  func.func @transform_1(%arg0: i32) -> (i32, i32) {
    %c0_i32 = arith.constant 0 : i32
    %c0_i32_0 = arith.constant 0 : i32
    %c0_i32_1 = arith.constant 0 : i32
    return %c0_i32, %c0_i32_0 : i32, i32
  }
  func.func @transform_2(%arg0: i32) -> (i32, i32) {
    %c0_i32 = arith.constant 0 : i32
    %c0_i32_0 = arith.constant 0 : i32
    %c0_i32_1 = arith.constant 0 : i32
    return %c0_i32, %c0_i32_0 : i32, i32
  }
  func.func @transform_3(%arg0: i32) -> (i32, i32, i32) {
    %c0_i32 = arith.constant 0 : i32
    %c0_i32_0 = arith.constant 0 : i32
    %c0_i32_1 = arith.constant 0 : i32
    %c0_i32_2 = arith.constant 0 : i32
    return %c0_i32, %c0_i32_0, %c0_i32_1 : i32, i32, i32
  }
  func.func @transform_4(%arg0: i32) -> (i32, i32, i32) {
    %c0_i32 = arith.constant 0 : i32
    %c0_i32_0 = arith.constant 0 : i32
    %c0_i32_1 = arith.constant 0 : i32
    %c0_i32_2 = arith.constant 0 : i32
    return %c0_i32, %c0_i32_0, %c0_i32_1 : i32, i32, i32
  }
  func.func @transform_5(%arg0: i32) -> (i32, i32) {
    %c0_i32 = arith.constant 0 : i32
    %c0_i32_0 = arith.constant 0 : i32
    %c0_i32_1 = arith.constant 0 : i32
    return %c0_i32, %c0_i32_0 : i32, i32
  }
  func.func @transform_6(%arg0: i32) -> (i32, i32) {
    %c0_i32 = arith.constant 0 : i32
    %c0_i32_0 = arith.constant 0 : i32
    %c0_i32_1 = arith.constant 0 : i32
    return %c0_i32, %c0_i32_0 : i32, i32
  }
  func.func @transform_7(%arg0: i32) -> (i32, i32) {
    %c0_i32 = arith.constant 0 : i32
    %c0_i32_0 = arith.constant 0 : i32
    %c0_i32_1 = arith.constant 0 : i32
    return %c0_i32, %c0_i32_0 : i32, i32
  }
  func.func @transform_8(%arg0: i32) -> (i32, i32) {
    %c0_i32 = arith.constant 0 : i32
    %c0_i32_0 = arith.constant 0 : i32
    %c0_i32_1 = arith.constant 0 : i32
    return %c0_i32, %c0_i32_0 : i32, i32
  }
  func.func @transform_9(%arg0: i32) -> (i32, i32) {
    %c0_i32 = arith.constant 0 : i32
    %c0_i32_0 = arith.constant 0 : i32
    %c0_i32_1 = arith.constant 0 : i32
    return %c0_i32, %c0_i32_0 : i32, i32
  }
  func.func @transform_10(%arg0: i32) -> (i32, i32) {
    %c0_i32 = arith.constant 0 : i32
    %c0_i32_0 = arith.constant 0 : i32
    %c0_i32_1 = arith.constant 0 : i32
    return %c0_i32, %c0_i32_0 : i32, i32
  }
  func.func @transform_11(%arg0: i32) -> (i32, i32) {
    %c0_i32 = arith.constant 0 : i32
    %c0_i32_0 = arith.constant 0 : i32
    %c0_i32_1 = arith.constant 0 : i32
    return %c0_i32, %c0_i32_0 : i32, i32
  }
  func.func @transform_12(%arg0: i32) -> (i32, i32) {
    %c0_i32 = arith.constant 0 : i32
    %c0_i32_0 = arith.constant 0 : i32
    %c0_i32_1 = arith.constant 0 : i32
    return %c0_i32, %c0_i32_0 : i32, i32
  }
  func.func @transform_13(%arg0: i32) -> (i32, i32) {
    %c0_i32 = arith.constant 0 : i32
    %c0_i32_0 = arith.constant 0 : i32
    %c0_i32_1 = arith.constant 0 : i32
    return %c0_i32, %c0_i32_0 : i32, i32
  }
  func.func @transform_14(%arg0: i32) -> (i32, i32) {
    %c0_i32 = arith.constant 0 : i32
    %c0_i32_0 = arith.constant 0 : i32
    %c0_i32_1 = arith.constant 0 : i32
    return %c0_i32, %c0_i32_0 : i32, i32
  }
  func.func @transform_15(%arg0: i32) -> (i32, i32) {
    %c0_i32 = arith.constant 0 : i32
    %c0_i32_0 = arith.constant 0 : i32
    %c0_i32_1 = arith.constant 0 : i32
    return %c0_i32, %c0_i32_0 : i32, i32
  }
  func.func @transform_16(%arg0: i32) -> (i32, i32) {
    %c0_i32 = arith.constant 0 : i32
    %c0_i32_0 = arith.constant 0 : i32
    %c0_i32_1 = arith.constant 0 : i32
    return %c0_i32, %c0_i32_0 : i32, i32
  }
  func.func @transform_17(%arg0: i32) -> (i32, i32) {
    %c0_i32 = arith.constant 0 : i32
    %c0_i32_0 = arith.constant 0 : i32
    %c0_i32_1 = arith.constant 0 : i32
    return %c0_i32, %c0_i32_0 : i32, i32
  }
  func.func @transform_18(%arg0: i32) -> (i32, i32) {
    %c0_i32 = arith.constant 0 : i32
    %c0_i32_0 = arith.constant 0 : i32
    %c0_i32_1 = arith.constant 0 : i32
    return %c0_i32, %c0_i32_0 : i32, i32
  }
  func.func @transform_19(%arg0: i32) -> (i32, i32) {
    %c0_i32 = arith.constant 0 : i32
    %c0_i32_0 = arith.constant 0 : i32
    %c0_i32_1 = arith.constant 0 : i32
    return %c0_i32, %c0_i32_0 : i32, i32
  }
}

</mosaic_0001>

<bundles_post_ra>
// kernel: nersa_forward.1
= control target key start
LH: loop header
LB: loop body
LE: loop exit
PB: predicated region body
PF: predicated region fallthrough
CT: control target
= control target key end

     0   :  { %s4897_s0 = inlined_call_operand.vmem [shape: f32[32,64], index: 0, kind: input, shape index: {}]   ;;  %s4898_s1 = inlined_call_operand.vmem [shape: f32[32,32], index: 1, kind: input, shape index: {}]   ;;  %s4899_s2 = inlined_call_operand.vmem [shape: f32[32,32], index: 2, kind: input, shape index: {}]   ;;  %s4900_s3 = inlined_call_operand.hbm [shape: f32[2,4,64], index: 3, kind: input, shape index: {}]   ;;  %s4901_s4 = inlined_call_operand.hbm [shape: f32[2,4,64], index: 4, kind: input, shape index: {}]   ;;  %s4902_s5 = inlined_call_operand.vmem [shape: f32[32,256], index: 5, kind: input, shape index: {}]   ;;  %s4903_s6 = inlined_call_operand.vmem [shape: f32[32,256], index: 6, kind: input, shape index: {}]   ;;  %s4904_s7 = inlined_call_operand.vmem [shape: f32[64,256], index: 7, kind: input, shape index: {}]   ;;  %s4905_s8 = inlined_call_operand.vmem [shape: f32[1,256], index: 8, kind: input, shape index: {}]   ;;  %s4906_s9 = inlined_call_operand.vmem [shape: f32[64,256], index: 9, kind: input, shape index: {}]   ;;  %s4907_s10 = inlined_call_operand.vmem [shape: f32[64,256], index: 10, kind: input, shape index: {}]   ;;  %s4908_s11 = inlined_call_operand.vmem [shape: f32[64,256], index: 11, kind: input, shape index: {}]   ;;  %s4909_s12 = inlined_call_operand.vmem [shape: f32[1,256], index: 12, kind: input, shape index: {}]   ;;  %s4910_s13 = inlined_call_operand.vmem [shape: f32[64,128], index: 13, kind: input, shape index: {}]   ;;  %s4911_s14 = inlined_call_operand.hbm [shape: f32[64,128], index: 14, kind: input, shape index: {}]   ;;  %s4912_s15 = inlined_call_operand.hbm [shape: f32[1,128], index: 15, kind: input, shape index: {}]   ;;  %s4913_s16 = inlined_call_operand.vmem [shape: f32[64,128], index: 16, kind: input, shape index: {}]   ;;  %s4914_s17 = inlined_call_operand.hbm [shape: f32[1,128], index: 17, kind: input, shape index: {}]   ;;  %s4915_s18 = inlined_call_operand.vmem [shape: f32[32,128], index: 18, kind: output, shape index: {0}]   ;;  %s4916_s19 = inlined_call_operand.hbm [shape: f32[4,128], index: 19, kind: output, shape index: {1}]  }
   0x1   :  { %4920 = sst [smem:[#allocation19_spill]] %s4897_s0 }
   0x2   :  { %4921 = sst [smem:[#allocation20_spill]] %s4898_s1 }
   0x3   :  { %4922 = sst [smem:[#allocation21_spill]] %s4899_s2 }
   0x4   :  { %4923 = sst [smem:[#allocation22_spill]] %s4900_s3 }
   0x5   :  { %25 = vsyncpa [#allocation6], 0 }
   0x6   :  { %26 = vsyncpa [#allocation9], 0 }
   0x7   :  { %27 = vsyncpa [#allocation12], 0 }
   0x8   :  { %28 = vsyncpa [#allocation7], 0  ;;  %s3666_s0 = smov [#allocation8]   ;;  %s3667_s20 = smov [#allocation11]  }
   0x9   :  { %s52_s30 = sshll.u32 %s3666_s0, 4  ;;  %s95_s21 = sshll.u32 %s3667_s20, 4  ;;  %s53_s30 = int_to_ptr.vmem [resolvable:$true] %s52_s30  ;;  %s96_s21 = int_to_ptr.vmem [resolvable:$true] %s95_s21 }
   0xa   :  { %s3546_s1 = scalar_lea.vmem %s53_s30, 128  ;;  %p3551_p1 = scmp.lt.s32.totalorder %s53_s30, %s53_s30 }
   0xb   :  { %p3547_p0 = scmp.ne.s32.totalorder %s53_s30, %s3546_s1  ;;  %p3552_p2 = scmp.lt.s32.totalorder %s3546_s1, %s3546_s1 }
   0xd   :  { %p3553_p3 = por %p3552_p2, %p3551_p1 }
   0xf   :  { %p3554_p4 = pnand %p3553_p3, %p3547_p0 }
  0x11   :  { %3557 = shalt.err (!%p3554_p4)
}
  0x12   :  { %s3668_s22 = smov 64   ;;  %s3669_s2 = smov 4  }
  0x13   :  { %58 = dma.hbm_to_vmem [thread:$0]  %s4901_s4, 128, %s53_s30, [#allocation9], %s3668_s22, %s3668_s22, %s3669_s2  }
  0x14   :  { %s3566_s25 = scalar_lea.vmem %s96_s21, 16  ;;  %s3570_s3 = scalar_lea.vmem %s96_s21, 32 }
  0x15   :  { %p3567_p5 = scmp.ne.s32.totalorder %s96_s21, %s3566_s25  ;;  %p3571_p6 = scmp.lt.s32.totalorder %s96_s21, %s96_s21 }
  0x16   :  { %p3572_p7 = scmp.lt.s32.totalorder %s3570_s3, %s3566_s25 }
  0x18   :  { %p3573_p8 = por %p3572_p7, %p3571_p6 }
  0x1a   :  { %p3574_p9 = pnand %p3573_p8, %p3567_p5 }
  0x1c   :  { %3577 = shalt.err (!%p3574_p9)
}
  0x1d   :  { %98 = dma.hbm_to_vmem [thread:$0]  %s4912_s15, 16, %s96_s21, [#allocation12]  }
  0x1e   :  { %s3670_s28 = smov [#allocation5]   ;;  %s3671_s0 = smov [#allocation10]  }
  0x1f   :  { %s40_s29 = sshll.u32 %s3670_s28, 4  ;;  %s82_s20 = sshll.u32 %s3671_s0, 4  ;;  %s41_s29 = int_to_ptr.vmem [resolvable:$true] %s40_s29  ;;  %s83_s20 = int_to_ptr.vmem [resolvable:$true] %s82_s20 }
  0x20   :  { %s3586_s1 = scalar_lea.vmem %s41_s29, 128  ;;  %p3591_p11 = scmp.lt.s32.totalorder %s41_s29, %s41_s29 }
  0x21   :  { %p3587_p10 = scmp.ne.s32.totalorder %s41_s29, %s3586_s1  ;;  %p3592_p12 = scmp.lt.s32.totalorder %s3586_s1, %s3586_s1 }
  0x23   :  { %p3593_p13 = por %p3592_p12, %p3591_p11 }
  0x25   :  { %p3594_p0 = pnand %p3593_p13, %p3587_p10 }
  0x27   :  { %3597 = shalt.err (!%p3594_p0)
}
  0x28   :  { %s4924_s23 = sld [smem:[#allocation22_spill]]  ;;  %s3606_s15 = scalar_lea.vmem %s83_s20, 1024 }
  0x29   :  { %p3607_p1 = scmp.ne.s32.totalorder %s83_s20, %s3606_s15  ;;  %p3611_p2 = scmp.lt.s32.totalorder %s83_s20, %s83_s20 }
  0x2a   :  { %p3612_p3 = scmp.lt.s32.totalorder %s3606_s15, %s3606_s15 }
  0x2c   :  { %p3613_p4 = por %p3612_p3, %p3611_p2 }
  0x2e   :  { %46 = dma.hbm_to_vmem [thread:$0]  %s4924_s23, 128, %s41_s29, [#allocation6], %s3668_s22, %s3668_s22, %s3669_s2  }
  0x2f   :  { %p3614_p5 = pnand %p3613_p4, %p3607_p1 }
  0x31   :  { %3617 = shalt.err (!%p3614_p5)
}
  0x32   :  { %s3672_s21 = smov 128   ;;  %s3673_s24 = smov 8  }
  0x33   :  { %88 = dma.hbm_to_vmem [thread:$0]  %s4911_s14, 1024, %s83_s20, [#allocation9], %s3672_s21, %s3672_s21, %s3673_s24  }
  0x34   :  { %s3674_s26 = smov [#allocation13]  }
  0x35   :  { %s107_s27 = sshll.u32 %s3674_s26, 4  ;;  %s108_s27 = int_to_ptr.vmem [resolvable:$true] %s107_s27 }
  0x36   :  { %s3626_s28 = scalar_lea.vmem %s108_s27, 16  ;;  %s3630_s0 = scalar_lea.vmem %s108_s27, 32 }
  0x37   :  { %p3627_p6 = scmp.ne.s32.totalorder %s108_s27, %s3626_s28  ;;  %p3631_p7 = scmp.lt.s32.totalorder %s108_s27, %s108_s27 }
  0x38   :  { %p3632_p8 = scmp.lt.s32.totalorder %s3630_s0, %s3626_s28 }
  0x3a   :  { %p3633_p9 = por %p3632_p8, %p3631_p7 }
  0x3c   :  { %p3634_p10 = pnand %p3633_p9, %p3627_p6 }
  0x3e   :  { %3637 = shalt.err (!%p3634_p10)
}
  0x3f   :  { %110 = dma.hbm_to_vmem [thread:$0]  %s4914_s17, 16, %s108_s27, [#allocation12]  }
  0x40   :  { %3658 = dma.done.wait [#allocation6], 128  }
  0x41   :  { %3659 = vsyncadd [#allocation6], 4294967168 }
  0x42   :  { %3660 = dma.done.wait [#allocation9], 1152  }
  0x43   :  { %3661 = vsyncadd [#allocation9], 4294966144 }
  0x44   :  { %3662 = dma.done.wait [#allocation12], 32  }
  0x45   :  { %3663 = vsyncadd [#allocation12], 4294967264  ;;  %v3675_v0 = vmov 0.0   ;;  %v149_v1 = vld [vmem:[%s4903_s6 + $0x38] sm:$0xff]  ;;  %v148_v3 = vld [vmem:[%s4903_s6 + $0x30] sm:$0xff]  ;;  %s4925_s2 = sld [smem:[#allocation21_spill]]  ;;  %v355_v43 = vlaneseq }
  0x46   :  { %227 = vmatprep.mubr.f32.mxu0 %v3675_v0  ;;  %328 = vmatprep.mubr.f32.mxu1 %v3675_v0  ;;  %v141_v2 = vld [vmem:[%s4902_s5 + $0x38] sm:$0xff]  ;;  %v140_v4 = vld [vmem:[%s4902_s5 + $0x30] sm:$0xff]  ;;  %v147_v5 = vld [vmem:[%s4903_s6 + $0x28] sm:$0xff]  ;;  %vm150_vm0 = vcmask 261120   ;;  %s4926_s20 = sld [smem:[#allocation20_spill]]  ;;  %vm402_vm1 = vcmask 523264  }
  0x47   :  { %187 = vmatprep.subr.mxu0 %v149_v1  ;;  %288 = vmatprep.subr.mxu1 %v141_v2  ;;  %v139_v6 = vld [vmem:[%s4902_s5 + $0x28] sm:$0xff]  ;;  %v146_v7 = vld [vmem:[%s4903_s6 + $0x20] sm:$0xff]  ;;  %v145_v9 = vld [vmem:[%s4903_s6 + $0x18] sm:$0xff]  ;;  %v4028_v44 = vshrl.u32 %v355_v43, 7  ;;  %s4927_s21 = sld [smem:[#allocation19_spill]]  ;;  %vm510_vm2 = vcmask 519168  }
  0x48   :  { %188 = vmatpush1.msra.mxu0 %v148_v3  ;;  %289 = vmatpush1.msra.mxu1 %v140_v4  ;;  %v138_v8 = vld [vmem:[%s4902_s5 + $0x20] sm:$0xff]  ;;  %v137_v10 = vld [vmem:[%s4902_s5 + $0x18] sm:$0xff]  ;;  %v144_v11 = vld [vmem:[%s4903_s6 + $0x10] sm:$0xff]  ;;  %vm3676_vm3 = vmmov 0   ;;  %s3677_s3 = smov [#allocation14]  }
  0x49   :  { %189 = vmatprep.subr.mxu0 %v147_v5  ;;  %290 = vmatprep.subr.mxu1 %v139_v6  ;;  %v136_v12 = vld [vmem:[%s4902_s5 + $0x10] sm:$0xff]  ;;  %v143_v13 = vld [vmem:[%s4903_s6 + $0x8] sm:$0xff]  ;;  %v142_v15 = vld [vmem:[%s4903_s6] sm:$0xff]  ;;  %v357_v45 = vsub.s32 0, %v4028_v44  ;;  %v361_v47 = vsub.s32 1, %v4028_v44  ;;  %s3150_s26 = sshll.u32 %s3677_s3, 4  ;;  %s3151_s26 = int_to_ptr.vmem [resolvable:$true] %s3150_s26 }
  0x4a   :  { %190 = vmatpush1.msra.mxu0 %v146_v7  ;;  %291 = vmatpush1.msra.mxu1 %v138_v8  ;;  %v135_v14 = vld [vmem:[%s4902_s5 + $0x8] sm:$0xff]  ;;  %v134_v16 = vld [vmem:[%s4902_s5] sm:$0xff]  ;;  %v3856_v19 = vld [vmem:[%s4904_s7 + $0x78] sm:$0xff]  ;;  %s3638_s27 = scalar_lea.vmem %s3151_s26, 64  ;;  %p3643_p12 = scmp.lt.s32.totalorder %s3151_s26, %s3151_s26 }
  0x4b   :  { %191 = vmatprep.subr.mxu0 %v145_v9  ;;  %292 = vmatprep.subr.mxu1 %v137_v10  ;;  %v130_v17 = vld [vmem:[%s4925_s2] sm:$0xff]  ;;  %v3861_v20 = vld [vmem:[%s4904_s7 + $0x70] sm:$0xff]  ;;  %v3868_v21 = vld [vmem:[%s4904_s7 + $0x68] sm:$0xff]  ;;  %p3639_p11 = scmp.ne.s32.totalorder %s3151_s26, %s3638_s27  ;;  %p3644_p13 = scmp.lt.s32.totalorder %s3638_s27, %s3638_s27 }
  0x4c   :  { %192 = vmatpush1.msra.mxu0 %v144_v11  ;;  %293 = vmatpush1.msra.mxu1 %v136_v12  ;;  %v126_v18 = vld [vmem:[%s4926_s20] sm:$0xff]  ;;  %v127_v23 = vld [vmem:[%s4926_s20 + $0x8] sm:$0xff]  ;;  %v3888_v25 = vld [vmem:[%s4904_s7 + $0x58] sm:$0xff] }
  0x4d   :  { %193 = vmatprep.subr.mxu0 %v143_v13  ;;  %294 = vmatprep.subr.mxu1 %v135_v14  ;;  %v3875_v22 = vld [vmem:[%s4904_s7 + $0x60] sm:$0xff]  ;;  %v131_v24 = vld [vmem:[%s4925_s2 + $0x8] sm:$0xff]  ;;  %v3894_v26 = vld [vmem:[%s4904_s7 + $0x50] sm:$0xff]  ;;  %p3645_p0 = por %p3644_p13, %p3643_p12 }
  0x4e   :  { %194 = vmatpush1.msra.mxu0 %v142_v15  ;;  %295 = vmatpush1.msra.mxu1 %v134_v16  ;;  %v3902_v27 = vld [vmem:[%s4904_s7 + $0x48] sm:$0xff]  ;;  %v3909_v28 = vld [vmem:[%s4904_s7 + $0x40] sm:$0xff]  ;;  %v128_v29 = vld [vmem:[%s4926_s20 + $0x10] sm:$0xff] }
  0x4f   :  { %3163 = vmatmul.mubr.msk.f32.vlgmr.msra.gmra.mxu0 %vm150_vm0, %v130_v17  ;;  %3167 = vmatmul.mubr.msk.f32.vlgmr.msra.gmra.mxu1 %vm150_vm0, %v126_v18  ;;  %v132_v30 = vld [vmem:[%s4925_s2 + $0x10] sm:$0xff]  ;;  %v3922_v31 = vld [vmem:[%s4904_s7 + $0x38] sm:$0xff]  ;;  %v3936_v33 = vld [vmem:[%s4904_s7 + $0x28] sm:$0xff]  ;;  %p3646_p1 = pnand %p3645_p0, %p3639_p11 }
  0x50   :  { %422 = vmatprep.subr.mxu0 %v3856_v19  ;;  %233 = vmatprep.mubr.f32.mxu0 %v3675_v0  ;;  %v3929_v32 = vld [vmem:[%s4904_s7 + $0x30] sm:$0xff]  ;;  %v3943_v34 = vld [vmem:[%s4904_s7 + $0x20] sm:$0xff]  ;;  %v129_v35 = vld [vmem:[%s4926_s20 + $0x18] sm:$0xff] }
  0x51   :  { %423 = vmatpush1.msra.mxu0 %v3861_v20  ;;  %334 = vmatprep.mubr.f32.mxu1 %v3675_v0  ;;  %v133_v36 = vld [vmem:[%s4925_s2 + $0x18] sm:$0xff]  ;;  %v3963_v38 = vld [vmem:[%s4904_s7 + $0x10] sm:$0xff]  ;;  %v3970_v39 = vld [vmem:[%s4904_s7 + $0x8] sm:$0xff] }
  0x52   :  { %424 = vmatprep.subr.mxu0 %v3868_v21  ;;  %552 = vmatprep.subr.mxu1 %v3856_v19  ;;  %v3956_v37 = vld [vmem:[%s4904_s7 + $0x18] sm:$0xff]  ;;  %v3972_v40 = vld [vmem:[#allocation8] sm:$0xf]  ;;  %v3979_v41 = vld [vmem:[%s4904_s7] sm:$0xff] }
  0x53   :  { %425 = vmatpush1.msra.mxu0 %v3875_v22  ;;  %3168 = vmatmul.mubr.msk.f32.gmra.mxu1 %vm150_vm0, %v127_v23  ;;  %v3983_v42 = vld [vmem:[#allocation5] sm:$0xf] }
  0x54   :  { %3164 = vmatmul.mubr.msk.f32.gmra.mxu0 %vm150_vm0, %v131_v24  ;;  %426 = vmatprep.subr.mxu0 %v3888_v25  ;;  %v353_v46 = vld [vmem:[%s4905_s8] sm:$0x3] }
  0x55   :  { %427 = vmatpush1.msra.mxu0 %v3894_v26  ;;  %239 = vmatprep.mubr.f32.mxu0 %v3675_v0  ;;  %v358_v48 = vrot.slane %v353_v46, %v357_v45  ;;  %v362_v52 = vrot.slane %v353_v46, %v361_v47 }
  0x56   :  { %428 = vmatprep.subr.mxu0 %v3902_v27  ;;  %340 = vmatprep.mubr.f32.mxu1 %v3675_v0 }
  0x57   :  { %429 = vmatpush1.msra.mxu0 %v3909_v28  ;;  %3169 = vmatmul.mubr.msk.f32.gmra.mxu1 %vm150_vm0, %v128_v29 }
  0x58   :  { %3165 = vmatmul.mubr.msk.f32.gmra.mxu0 %vm150_vm0, %v132_v30  ;;  %430 = vmatprep.subr.mxu0 %v3922_v31 }
  0x59   :  { %431 = vmatpush1.msra.mxu0 %v3929_v32  ;;  %245 = vmatprep.mubr.f32.mxu0 %v3675_v0 }
  0x5a   :  { %432 = vmatprep.subr.mxu0 %v3936_v33  ;;  %346 = vmatprep.mubr.f32.mxu1 %v3675_v0 }
  0x5b   :  { %433 = vmatpush1.msra.mxu0 %v3943_v34  ;;  %3170 = vmatmul.mubr.msk.f32.gmra.mxu1 %vm150_vm0, %v129_v35 }
  0x5c   :  { %3166 = vmatmul.mubr.msk.f32.gmra.mxu0 %vm150_vm0, %v133_v36  ;;  %434 = vmatprep.subr.mxu0 %v3956_v37 }
  0x5d   :  { %435 = vmatpush1.msra.mxu0 %v3963_v38  ;;  %470 = vmatprep.mubr.f32.mxu0 %v3675_v0 }
  0x5e   :  { %436 = vmatprep.subr.mxu0 %v3970_v39  ;;  %493 = vrot.lane.b32.xlu0 %v3972_v40, %s3668_s22 }
  0x5f   :  { %437 = vmatpush1.msra.mxu0 %v3979_v41  ;;  %513 = vrot.lane.b32.xlu1 %v3983_v42, %s3668_s22 }
  0x60   :  { %3171 = vmatmul.mubr.msk.f32.vlgmr.msra.gmra.mxu0 %vm402_vm1, %v3983_v42  ;;  %553 = vmatpush1.msra.mxu1 %v3861_v20 }
  0x61   :  { %554 = vmatprep.subr.mxu1 %v3868_v21  ;;  %600 = vmatprep.mubr.f32.mxu1 %v3675_v0 }
  0x62   :  { %555 = vmatpush1.msra.mxu1 %v3875_v22  ;;  %692 = vmatprep.subr.mxu0 %v3856_v19 }
  0x63   :  { %556 = vmatprep.subr.mxu1 %v3888_v25  ;;  %693 = vmatpush1.msra.mxu0 %v3861_v20 }
  0x64   :  { %557 = vmatpush1.msra.mxu1 %v3894_v26  ;;  %694 = vmatprep.subr.mxu0 %v3868_v21 }
  0x65   :  { %558 = vmatprep.subr.mxu1 %v3902_v27  ;;  %695 = vmatpush1.msra.mxu0 %v3875_v22 }
  0x66   :  { %559 = vmatpush1.msra.mxu1 %v3909_v28  ;;  %696 = vmatprep.subr.mxu0 %v3888_v25 }
  0x67   :  { %560 = vmatprep.subr.mxu1 %v3922_v31  ;;  %697 = vmatpush1.msra.mxu0 %v3894_v26 }
  0x68   :  { %561 = vmatpush1.msra.mxu1 %v3929_v32  ;;  %698 = vmatprep.subr.mxu0 %v3902_v27 }
  0x69   :  { %562 = vmatprep.subr.mxu1 %v3936_v33  ;;  %699 = vmatpush1.msra.mxu0 %v3909_v28 }
  0x6a   :  { %563 = vmatpush1.msra.mxu1 %v3943_v34  ;;  %700 = vmatprep.subr.mxu0 %v3922_v31 }
  0x6b   :  { %564 = vmatprep.subr.mxu1 %v3956_v37  ;;  %701 = vmatpush1.msra.mxu0 %v3929_v32 }
  0x6c   :  { %565 = vmatpush1.msra.mxu1 %v3963_v38  ;;  %702 = vmatprep.subr.mxu0 %v3936_v33 }
  0x6d   :  { %566 = vmatprep.subr.mxu1 %v3970_v39  ;;  %703 = vmatpush1.msra.mxu0 %v3943_v34 }
  0x6e   :  { %567 = vmatpush1.msra.mxu1 %v3979_v41  ;;  %704 = vmatprep.subr.mxu0 %v3956_v37 }
  0x6f   :  { %705 = vmatpush1.msra.mxu0 %v3963_v38  ;;  %740 = vmatprep.mubr.f32.mxu0 %v3675_v0 }
  0x70   :  { %706 = vmatprep.subr.mxu0 %v3970_v39  ;;  %821 = vmatprep.subr.mxu1 %v3856_v19 }
  0x71   :  { %707 = vmatpush1.msra.mxu0 %v3979_v41 }
  0x72   :  { %961 = vmatprep.subr.mxu0 %v3856_v19 }
 0x10f   :  { %v229_v49 = vpop.f32.mrf.mxu0  ;;  %v330_v50 = vpop.f32.mrf.mxu1 }
 0x110   :  { %v331_v51 = vadd.f32 %v330_v50, %v229_v49 }
 0x111   :  { %v231_v53 = vpop.f32.mrf.mxu0  ;;  %v332_v54 = vpop.f32.mrf.mxu1 }
 0x112   :  { %v365_v55 = vadd.f32 %v358_v48, %v331_v51  ;;  %v333_v56 = vadd.f32 %v332_v54, %v231_v53 }
 0x113   :  { %v336_v57 = vpop.f32.mrf.mxu1 }
 0x114   :  { %373 = vst [vmem:[#allocation2 + $0x30] sm:$0xff] %v365_v55  ;;  %v366_v58 = vadd.f32 %v362_v52, %v333_v56  ;;  %v235_v59 = vpop.f32.mrf.mxu0 }
 0x115   :  { %v337_v60 = vadd.f32 %v336_v57, %v235_v59  ;;  %v338_v61 = vpop.f32.mrf.mxu1 }
 0x116   :  { %374 = vst [vmem:[#allocation2] sm:$0xff] %v366_v58  ;;  %v237_v62 = vpop.f32.mrf.mxu0 }
 0x117   :  { %v367_v63 = vadd.f32 %v358_v48, %v337_v60  ;;  %v339_v1 = vadd.f32 %v338_v61, %v237_v62  ;;  %v342_v2 = vpop.f32.mrf.mxu1  ;;  %v514_v62 = vpop.permute.xlu1 %513 }
 0x118   :  { %v241_v3 = vpop.f32.mrf.mxu0 }
 0x119   :  { %375 = vst [vmem:[#allocation2 + $0x18] sm:$0xff] %v367_v63  ;;  %v368_v4 = vadd.f32 %v362_v52, %v339_v1  ;;  %v343_v5 = vadd.f32 %v342_v2, %v241_v3  ;;  %v344_v6 = vpop.f32.mrf.mxu1  ;;  %v4048_v2 = vld [vmem:[%s4927_s21] sm:$0xf] }
 0x11a   :  { %v243_v7 = vpop.f32.mrf.mxu0 }
 0x11b   :  { %376 = vst [vmem:[#allocation2 + $0x10] sm:$0xff] %v368_v4  ;;  %v369_v8 = vadd.f32 %v358_v48, %v343_v5  ;;  %v345_v9 = vadd.f32 %v344_v6, %v243_v7  ;;  %v348_v10 = vpop.f32.mrf.mxu1  ;;  %v399_v18 = vld [vmem:[#allocation2 + $0x30] sm:$0xf] }
 0x11c   :  { %v247_v11 = vpop.f32.mrf.mxu0 }
 0x11d   :  { %377 = vst [vmem:[#allocation2 + $0x8] sm:$0xff] %v369_v8  ;;  %v370_v12 = vadd.f32 %v362_v52, %v345_v9  ;;  %v349_v13 = vadd.f32 %v348_v10, %v247_v11  ;;  %v350_v14 = vpop.f32.mrf.mxu1  ;;  %v400_v36 = vld [vmem:[#allocation2] sm:$0xf]  ;;  %v530_v11 = vld [vmem:[#allocation2 + $0x30] sm:$0xf0] }
 0x11e   :  { %v249_v15 = vpop.f32.mrf.mxu0 }
 0x11f   :  { %378 = vst [vmem:[#allocation2 + $0x20] sm:$0xff] %v370_v12  ;;  %v371_v16 = vadd.f32 %v358_v48, %v349_v13  ;;  %v351_v17 = vadd.f32 %v350_v14, %v249_v15 }
 0x120   :  { %v472_v23 = vpop.f32.mrf.mxu0 }
 0x121   :  { %379 = vst [vmem:[#allocation2 + $0x28] sm:$0xff] %v371_v16  ;;  %v372_v24 = vadd.f32 %v362_v52, %v351_v17  ;;  %v477_v29 = vadd.f32 %v472_v23, %v399_v18  ;;  %v494_v52 = vpop.permute.xlu0 %493  ;;  %v531_v16 = vld [vmem:[#allocation2] sm:$0xf0] }
 0x122   :  { %v474_v35 = vpop.f32.mrf.mxu0 }
 0x123   :  { %380 = vst [vmem:[#allocation2 + $0x38] sm:$0xff] %v372_v24  ;;  %v3172_v30 = vmul.f32 -1.442695, %v477_v29  ;;  %v478_v43 = vadd.f32 %v474_v35, %v400_v36 }
 0x125   :  { %3346 = vpow2.f32 %v3172_v30  ;;  %v3173_v48 = vmul.f32 -1.442695, %v478_v43 }
 0x126   :  { %3348 = vtanh.f32 %v478_v43 }
 0x132   :  { %v3347_v46 = vpop.eup %3346 }
 0x133   :  { %v482_v49 = vadd.f32 1.0, %v3347_v46  ;;  %v3349_v50 = vpop.eup %3348 }
 0x135   :  { %3350 = vrcp.f32 %v482_v49 }
 0x136   :  { %3352 = vpow2.f32 %v3173_v48 }
 0x142   :  { %v3351_v51 = vpop.eup %3350 }
 0x143   :  { %v497_v53 = vmul.f32 %v3351_v51, %v3349_v50  ;;  %v3353_v54 = vpop.eup %3352  ;;  %v496_v56 = vmul.f32 %v3351_v51, %v494_v52 }
 0x144   :  { %v489_v55 = vadd.f32 1.0, %v3353_v54 }
 0x145   :  { %499 = vrot.lane.b32.xlu0 %v497_v53, %s3668_s22 }
 0x146   :  { %3354 = vrcp.f32 %v489_v55 }
 0x153   :  { %v3355_v60 = vpop.eup %3354 }
 0x1b7   :  { %v500_v57 = vpop.permute.xlu0 %499 }
 0x1b8   :  { %v502_v58 = vadd.f32 %v500_v57, %v496_v56 }
 0x1ba   :  { %3356 = vtanh.f32 %v502_v58  ;;  %v523_v59 = vsub.f32 %v502_v58, %v494_v52 }
 0x1bc   :  { %525 = vrot.lane.b32.xlu0 %v523_v59, %s3668_s22  ;;  %v4090_v59 = vld [vmem:[%s4927_s21 + $0x4] sm:$0xf] }
 0x1c7   :  { %v3357_v61 = vpop.eup %3356 }
 0x1c8   :  { %v4041_v63 = vmul.f32 %v3357_v61, %v3355_v60 }
 0x1ca   :  { %v516_v1 = vsub.f32 %v4041_v63, %v514_v62 }
 0x1cc   :  { %518 = vrot.lane.b32.xlu1 %v516_v1, %s3668_s22 }
 0x22e   :  { %v526_v3 = vpop.permute.xlu0 %525 }
 0x22f   :  { %v528_v4 = vmul.f32 %v526_v3, %v4048_v2 }
 0x231   :  { %v4052_v5 = vadd.f32 %v528_v4, %v3972_v40 }
 0x233   :  { %v629_v6 = vrot.slane %v4052_v5, 4 }
 0x235   :  { %630 = vrot.lane.b32.xlu1 %v629_v6, %s3668_s22 }
 0x23e   :  { %v519_v7 = vpop.permute.xlu1 %518 }
 0x23f   :  { %v521_v8 = vmul.f32 %v519_v7, %v4048_v2 }
 0x241   :  { %v4058_v9 = vadd.f32 %v521_v8, %v3983_v42 }
 0x243   :  { %3174 = vmatmul.mubr.msk.f32.vlgmr.msra.gmra.mxu1 %vm402_vm1, %v4058_v9  ;;  %v650_v10 = vrot.slane %v4058_v9, 4 }
 0x244   :  { %822 = vmatpush1.msra.mxu1 %v3861_v20  ;;  %869 = vmatprep.mubr.f32.mxu1 %v3675_v0 }
 0x245   :  { %651 = vrot.lane.b32.xlu1 %v650_v10, %s3668_s22  ;;  %823 = vmatprep.subr.mxu1 %v3868_v21  ;;  %v671_v10 = vld [vmem:[#allocation2 + $0x10] sm:$0xf] }
 0x246   :  { %824 = vmatpush1.msra.mxu1 %v3875_v22 }
 0x247   :  { %825 = vmatprep.subr.mxu1 %v3888_v25 }
 0x248   :  { %826 = vmatpush1.msra.mxu1 %v3894_v26 }
 0x249   :  { %827 = vmatprep.subr.mxu1 %v3902_v27 }
 0x24a   :  { %828 = vmatpush1.msra.mxu1 %v3909_v28 }
 0x24b   :  { %829 = vmatprep.subr.mxu1 %v3922_v31 }
 0x24c   :  { %830 = vmatpush1.msra.mxu1 %v3929_v32 }
 0x24d   :  { %831 = vmatprep.subr.mxu1 %v3936_v33 }
 0x24e   :  { %832 = vmatpush1.msra.mxu1 %v3943_v34 }
 0x24f   :  { %833 = vmatprep.subr.mxu1 %v3956_v37 }
 0x250   :  { %834 = vmatpush1.msra.mxu1 %v3963_v38 }
 0x251   :  { %835 = vmatprep.subr.mxu1 %v3970_v39 }
 0x252   :  { %836 = vmatpush1.msra.mxu1 %v3979_v41 }
 0x253   :  { %1090 = vmatprep.subr.mxu1 %v3856_v19 }
 0x2a7   :  { %v631_v43 = vpop.permute.xlu1 %630 }
 0x2b7   :  { %v652_v56 = vpop.permute.xlu1 %651 }
 0x303   :  { %v602_v40 = vpop.f32.mrf.mxu1 }
 0x304   :  { %v609_v42 = vrot.slane %v602_v40, 4 }
 0x305   :  { %v604_v14 = vpop.f32.mrf.mxu1 }
 0x306   :  { %v613_v12 = vadd.f32 %v609_v42, %v530_v11  ;;  %v610_v15 = vrot.slane %v604_v14, 4 }
 0x308   :  { %v3175_v13 = vmul.f32 -1.442695, %v613_v12  ;;  %v614_v17 = vadd.f32 %v610_v15, %v531_v16 }
 0x30a   :  { %3358 = vpow2.f32 %v3175_v13  ;;  %v3176_v35 = vmul.f32 -1.442695, %v614_v17 }
 0x30b   :  { %3360 = vtanh.f32 %v614_v17 }
 0x317   :  { %v3359_v18 = vpop.eup %3358 }
 0x318   :  { %v618_v23 = vadd.f32 1.0, %v3359_v18  ;;  %v3361_v24 = vpop.eup %3360 }
 0x31a   :  { %3362 = vrcp.f32 %v618_v23 }
 0x31b   :  { %3364 = vpow2.f32 %v3176_v35 }
 0x327   :  { %v3363_v29 = vpop.eup %3362 }
 0x328   :  { %v634_v30 = vmul.f32 %v3363_v29, %v3361_v24  ;;  %v3365_v36 = vpop.eup %3364  ;;  %v633_v49 = vmul.f32 %v3363_v29, %v631_v43 }
 0x329   :  { %v625_v46 = vadd.f32 1.0, %v3365_v36 }
 0x32a   :  { %636 = vrot.lane.b32.xlu0 %v634_v30, %s3668_s22 }
 0x32b   :  { %3366 = vrcp.f32 %v625_v46 }
 0x338   :  { %v3367_v54 = vpop.eup %3366 }
 0x39c   :  { %v637_v50 = vpop.permute.xlu0 %636 }
 0x39d   :  { %v639_v51 = vadd.f32 %v637_v50, %v633_v49  ;;  %v4125_v50 = vld [vmem:[%s4927_s21 + $0x8] sm:$0xf] }
 0x39f   :  { %3368 = vtanh.f32 %v639_v51  ;;  %v662_v53 = vsub.f32 %v639_v51, %v631_v43 }
 0x3a1   :  { %v664_v48 = vrot.slane %v662_v53, 4 }
 0x3a3   :  { %665 = vrot.lane.b32.xlu1 %v664_v48, %s3668_s22 }
 0x3ac   :  { %v3369_v52 = vpop.eup %3368 }
 0x3ad   :  { %v4083_v55 = vmul.f32 %v3369_v52, %v3367_v54 }
 0x3af   :  { %v654_v57 = vsub.f32 %v4083_v55, %v652_v56 }
 0x3b1   :  { %v656_v58 = vrot.slane %v654_v57, 4 }
 0x3b3   :  { %657 = vrot.lane.b32.xlu0 %v656_v58, %s3668_s22 }
 0x415   :  { %v666_v60 = vpop.permute.xlu1 %665 }
 0x416   :  { %v668_v61 = vmul.f32 %v666_v60, %v4090_v59 }
 0x418   :  { %v669_v62 = vadd.f32 %v668_v61, %v4052_v5  ;;  %v670_v5 = vld [vmem:[#allocation2 + $0x18] sm:$0xf] }
 0x41a   :  { %763 = vrot.lane.b32.xlu0 %v669_v62, %s3668_s22 }
 0x425   :  { %v658_v1 = vpop.permute.xlu0 %657 }
 0x426   :  { %v660_v3 = vmul.f32 %v658_v1, %v4090_v59 }
 0x428   :  { %v661_v4 = vadd.f32 %v660_v3, %v4058_v9 }
 0x42a   :  { %3177 = vmatmul.mubr.msk.f32.vlgmr.msra.gmra.mxu0 %vm402_vm1, %v661_v4  ;;  %782 = vrot.lane.b32.xlu0 %v661_v4, %s3668_s22 }
 0x42b   :  { %962 = vmatpush1.msra.mxu0 %v3861_v20  ;;  %1009 = vmatprep.mubr.f32.mxu0 %v3675_v0 }
 0x42c   :  { %963 = vmatprep.subr.mxu0 %v3868_v21 }
 0x42d   :  { %964 = vmatpush1.msra.mxu0 %v3875_v22 }
 0x42e   :  { %965 = vmatprep.subr.mxu0 %v3888_v25 }
 0x42f   :  { %966 = vmatpush1.msra.mxu0 %v3894_v26 }
 0x430   :  { %967 = vmatprep.subr.mxu0 %v3902_v27 }
 0x431   :  { %968 = vmatpush1.msra.mxu0 %v3909_v28 }
 0x432   :  { %969 = vmatprep.subr.mxu0 %v3922_v31 }
 0x433   :  { %970 = vmatpush1.msra.mxu0 %v3929_v32 }
 0x434   :  { %971 = vmatprep.subr.mxu0 %v3936_v33 }
 0x435   :  { %972 = vmatpush1.msra.mxu0 %v3943_v34 }
 0x436   :  { %973 = vmatprep.subr.mxu0 %v3956_v37 }
 0x437   :  { %974 = vmatpush1.msra.mxu0 %v3963_v38 }
 0x438   :  { %975 = vmatprep.subr.mxu0 %v3970_v39 }
 0x439   :  { %976 = vmatpush1.msra.mxu0 %v3979_v41 }
 0x43a   :  { %1230 = vmatprep.subr.mxu0 %v3856_v19 }
 0x48c   :  { %v764_v17 = vpop.permute.xlu0 %763 }
 0x49c   :  { %v783_v46 = vpop.permute.xlu0 %782 }
 0x4ea   :  { %v742_v6 = vpop.f32.mrf.mxu0 }
 0x4eb   :  { %v747_v7 = vadd.f32 %v742_v6, %v670_v5  ;;  %v800_v6 = vld [vmem:[#allocation2 + $0x10] sm:$0xf0] }
 0x4ec   :  { %v744_v9 = vpop.f32.mrf.mxu0 }
 0x4ed   :  { %v3178_v8 = vmul.f32 -1.442695, %v747_v7  ;;  %v748_v40 = vadd.f32 %v744_v9, %v671_v10 }
 0x4ef   :  { %3370 = vpow2.f32 %v3178_v8  ;;  %v3179_v15 = vmul.f32 -1.442695, %v748_v40 }
 0x4f0   :  { %3372 = vtanh.f32 %v748_v40 }
 0x4fc   :  { %v3371_v42 = vpop.eup %3370 }
 0x4fd   :  { %v752_v11 = vadd.f32 1.0, %v3371_v42  ;;  %v3373_v12 = vpop.eup %3372 }
 0x4ff   :  { %3374 = vrcp.f32 %v752_v11 }
 0x500   :  { %3376 = vpow2.f32 %v3179_v15 }
 0x50c   :  { %v3375_v13 = vpop.eup %3374 }
 0x50d   :  { %v767_v14 = vmul.f32 %v3375_v13, %v3373_v12  ;;  %v3377_v16 = vpop.eup %3376  ;;  %v766_v23 = vmul.f32 %v3375_v13, %v764_v17 }
 0x50e   :  { %v759_v18 = vadd.f32 1.0, %v3377_v16 }
 0x50f   :  { %769 = vrot.lane.b32.xlu1 %v767_v14, %s3668_s22 }
 0x510   :  { %3378 = vrcp.f32 %v759_v18 }
 0x51d   :  { %v3379_v35 = vpop.eup %3378 }
 0x581   :  { %v770_v24 = vpop.permute.xlu1 %769 }
 0x582   :  { %v772_v29 = vadd.f32 %v770_v24, %v766_v23 }
 0x584   :  { %3380 = vtanh.f32 %v772_v29  ;;  %v792_v30 = vsub.f32 %v772_v29, %v764_v17 }
 0x586   :  { %794 = vrot.lane.b32.xlu0 %v792_v30, %s3668_s22 }
 0x591   :  { %v3381_v36 = vpop.eup %3380 }
 0x592   :  { %v4118_v43 = vmul.f32 %v3381_v36, %v3379_v35 }
 0x594   :  { %v785_v49 = vsub.f32 %v4118_v43, %v783_v46  ;;  %v4165_v46 = vld [vmem:[%s4927_s21 + $0xc] sm:$0xf] }
 0x596   :  { %787 = vrot.lane.b32.xlu1 %v785_v49, %s3668_s22 }
 0x5f8   :  { %v795_v51 = vpop.permute.xlu0 %794 }
 0x5f9   :  { %v797_v53 = vmul.f32 %v795_v51, %v4125_v50 }
 0x5fb   :  { %v4128_v48 = vadd.f32 %v797_v53, %v669_v62  ;;  %v799_v62 = vld [vmem:[#allocation2 + $0x18] sm:$0xf0] }
 0x5fd   :  { %v898_v54 = vrot.slane %v4128_v48, 4 }
 0x5ff   :  { %899 = vrot.lane.b32.xlu1 %v898_v54, %s3668_s22 }
 0x608   :  { %v788_v52 = vpop.permute.xlu1 %787 }
 0x609   :  { %v790_v56 = vmul.f32 %v788_v52, %v4125_v50 }
 0x60b   :  { %v4133_v57 = vadd.f32 %v790_v56, %v661_v4 }
 0x60d   :  { %3180 = vmatmul.mubr.msk.f32.vlgmr.msra.gmra.mxu1 %vm402_vm1, %v4133_v57  ;;  %v919_v58 = vrot.slane %v4133_v57, 4 }
 0x60e   :  { %1091 = vmatpush1.msra.mxu1 %v3861_v20  ;;  %1138 = vmatprep.mubr.f32.mxu1 %v3675_v0 }
 0x60f   :  { %920 = vrot.lane.b32.xlu1 %v919_v58, %s3668_s22  ;;  %1092 = vmatprep.subr.mxu1 %v3868_v21 }
 0x610   :  { %1093 = vmatpush1.msra.mxu1 %v3875_v22 }
 0x611   :  { %1094 = vmatprep.subr.mxu1 %v3888_v25 }
 0x612   :  { %1095 = vmatpush1.msra.mxu1 %v3894_v26 }
 0x613   :  { %1096 = vmatprep.subr.mxu1 %v3902_v27 }
 0x614   :  { %1097 = vmatpush1.msra.mxu1 %v3909_v28 }
 0x615   :  { %1098 = vmatprep.subr.mxu1 %v3922_v31 }
 0x616   :  { %1099 = vmatpush1.msra.mxu1 %v3929_v32 }
 0x617   :  { %1100 = vmatprep.subr.mxu1 %v3936_v33 }
 0x618   :  { %1101 = vmatpush1.msra.mxu1 %v3943_v34 }
 0x619   :  { %1102 = vmatprep.subr.mxu1 %v3956_v37 }
 0x61a   :  { %1103 = vmatpush1.msra.mxu1 %v3963_v38 }
 0x61b   :  { %1104 = vmatprep.subr.mxu1 %v3970_v39 }
 0x61c   :  { %1105 = vmatpush1.msra.mxu1 %v3979_v41 }
 0x61d   :  { %1359 = vmatprep.subr.mxu1 %v3856_v19 }
 0x671   :  { %v900_v12 = vpop.permute.xlu1 %899 }
 0x681   :  { %v921_v30 = vpop.permute.xlu1 %920 }
 0x6cd   :  { %v871_v60 = vpop.f32.mrf.mxu1 }
 0x6ce   :  { %v878_v61 = vrot.slane %v871_v60, 4 }
 0x6cf   :  { %v873_v4 = vpop.f32.mrf.mxu1 }
 0x6d0   :  { %v882_v1 = vadd.f32 %v878_v61, %v799_v62  ;;  %v879_v5 = vrot.slane %v873_v4, 4  ;;  %v940_v62 = vld [vmem:[#allocation2 + $0x20] sm:$0xf] }
 0x6d2   :  { %v3181_v3 = vmul.f32 -1.442695, %v882_v1  ;;  %v883_v7 = vadd.f32 %v879_v5, %v800_v6 }
 0x6d4   :  { %3382 = vpow2.f32 %v3181_v3  ;;  %v3182_v19 = vmul.f32 -1.442695, %v883_v7 }
 0x6d5   :  { %3384 = vtanh.f32 %v883_v7 }
 0x6e1   :  { %v3383_v8 = vpop.eup %3382 }
 0x6e2   :  { %v887_v9 = vadd.f32 1.0, %v3383_v8  ;;  %v3385_v10 = vpop.eup %3384 }
 0x6e4   :  { %3386 = vrcp.f32 %v887_v9 }
 0x6e5   :  { %3388 = vpow2.f32 %v3182_v19 }
 0x6f1   :  { %v3387_v40 = vpop.eup %3386 }
 0x6f2   :  { %v903_v42 = vmul.f32 %v3387_v40, %v3385_v10  ;;  %v3389_v11 = vpop.eup %3388  ;;  %v902_v14 = vmul.f32 %v3387_v40, %v900_v12 }
 0x6f3   :  { %v894_v13 = vadd.f32 1.0, %v3389_v11 }
 0x6f4   :  { %905 = vrot.lane.b32.xlu0 %v903_v42, %s3668_s22 }
 0x6f5   :  { %3390 = vrcp.f32 %v894_v13 }
 0x702   :  { %v3391_v23 = vpop.eup %3390 }
 0x766   :  { %v906_v15 = vpop.permute.xlu0 %905 }
 0x767   :  { %v908_v16 = vadd.f32 %v906_v15, %v902_v14 }
 0x769   :  { %3392 = vtanh.f32 %v908_v16  ;;  %v931_v17 = vsub.f32 %v908_v16, %v900_v12 }
 0x76b   :  { %v933_v18 = vrot.slane %v931_v17, 4 }
 0x76d   :  { %934 = vrot.lane.b32.xlu1 %v933_v18, %s3668_s22  ;;  %v4199_v18 = vld [vmem:[%s4927_s21 + $0x10] sm:$0xf] }
 0x776   :  { %v3393_v24 = vpop.eup %3392 }
 0x777   :  { %v4158_v29 = vmul.f32 %v3393_v24, %v3391_v23 }
 0x779   :  { %v923_v35 = vsub.f32 %v4158_v29, %v921_v30 }
 0x77b   :  { %v925_v36 = vrot.slane %v923_v35, 4 }
 0x77d   :  { %926 = vrot.lane.b32.xlu0 %v925_v36, %s3668_s22 }
 0x7df   :  { %v935_v49 = vpop.permute.xlu1 %934 }
 0x7e0   :  { %v937_v51 = vmul.f32 %v935_v49, %v4165_v46 }
 0x7e2   :  { %v938_v53 = vadd.f32 %v937_v51, %v4128_v48  ;;  %v939_v48 = vld [vmem:[#allocation2 + $0x8] sm:$0xf] }
 0x7e4   :  { %1032 = vrot.lane.b32.xlu0 %v938_v53, %s3668_s22 }
 0x7ef   :  { %v927_v54 = vpop.permute.xlu0 %926 }
 0x7f0   :  { %v929_v52 = vmul.f32 %v927_v54, %v4165_v46 }
 0x7f2   :  { %v930_v56 = vadd.f32 %v929_v52, %v4133_v57 }
 0x7f4   :  { %3183 = vmatmul.mubr.msk.f32.vlgmr.msra.gmra.mxu0 %vm402_vm1, %v930_v56  ;;  %1051 = vrot.lane.b32.xlu0 %v930_v56, %s3668_s22 }
 0x7f5   :  { %1231 = vmatpush1.msra.mxu0 %v3861_v20  ;;  %1278 = vmatprep.mubr.f32.mxu0 %v3675_v0 }
 0x7f6   :  { %1232 = vmatprep.subr.mxu0 %v3868_v21 }
 0x7f7   :  { %1233 = vmatpush1.msra.mxu0 %v3875_v22 }
 0x7f8   :  { %1234 = vmatprep.subr.mxu0 %v3888_v25 }
 0x7f9   :  { %1235 = vmatpush1.msra.mxu0 %v3894_v26 }
 0x7fa   :  { %1236 = vmatprep.subr.mxu0 %v3902_v27 }
 0x7fb   :  { %1237 = vmatpush1.msra.mxu0 %v3909_v28 }
 0x7fc   :  { %1238 = vmatprep.subr.mxu0 %v3922_v31 }
 0x7fd   :  { %1239 = vmatpush1.msra.mxu0 %v3929_v32 }
 0x7fe   :  { %1240 = vmatprep.subr.mxu0 %v3936_v33 }
 0x7ff   :  { %1241 = vmatpush1.msra.mxu0 %v3943_v34 }
 0x800   :  { %1242 = vmatprep.subr.mxu0 %v3956_v37 }
 0x801   :  { %1243 = vmatpush1.msra.mxu0 %v3963_v38 }
 0x802   :  { %1244 = vmatprep.subr.mxu0 %v3970_v39 }
 0x803   :  { %1245 = vmatpush1.msra.mxu0 %v3979_v41 }
 0x856   :  { %v1033_v10 = vpop.permute.xlu0 %1032 }
 0x866   :  { %v1052_v16 = vpop.permute.xlu0 %1051 }
 0x8b4   :  { %v1011_v57 = vpop.f32.mrf.mxu0 }
 0x8b5   :  { %v1016_v58 = vadd.f32 %v1011_v57, %v939_v48 }
 0x8b6   :  { %v1013_v61 = vpop.f32.mrf.mxu0 }
 0x8b7   :  { %v3184_v60 = vmul.f32 -1.442695, %v1016_v58  ;;  %v1017_v1 = vadd.f32 %v1013_v61, %v940_v62 }
 0x8b9   :  { %3394 = vpow2.f32 %v3184_v60  ;;  %v3185_v8 = vmul.f32 -1.442695, %v1017_v1 }
 0x8ba   :  { %3396 = vtanh.f32 %v1017_v1 }
 0x8c6   :  { %v3395_v3 = vpop.eup %3394 }
 0x8c7   :  { %v1021_v4 = vadd.f32 1.0, %v3395_v3  ;;  %v3397_v5 = vpop.eup %3396 }
 0x8c9   :  { %3398 = vrcp.f32 %v1021_v4 }
 0x8ca   :  { %3400 = vpow2.f32 %v3185_v8 }
 0x8d6   :  { %v3399_v6 = vpop.eup %3398 }
 0x8d7   :  { %v1036_v7 = vmul.f32 %v3399_v6, %v3397_v5  ;;  %v3401_v9 = vpop.eup %3400  ;;  %v1035_v42 = vmul.f32 %v3399_v6, %v1033_v10 }
 0x8d8   :  { %v1028_v40 = vadd.f32 1.0, %v3401_v9 }
 0x8d9   :  { %1038 = vrot.lane.b32.xlu1 %v1036_v7, %s3668_s22  ;;  %v4238_v7 = vld [vmem:[%s4927_s21 + $0x14] sm:$0xf] }
 0x8da   :  { %3402 = vrcp.f32 %v1028_v40 }
 0x8e7   :  { %v3403_v13 = vpop.eup %3402 }
 0x94b   :  { %v1039_v19 = vpop.permute.xlu1 %1038 }
 0x94c   :  { %v1041_v11 = vadd.f32 %v1039_v19, %v1035_v42 }
 0x94e   :  { %3404 = vtanh.f32 %v1041_v11  ;;  %v1061_v12 = vsub.f32 %v1041_v11, %v1033_v10  ;;  %v1208_v11 = vld [vmem:[#allocation2 + $0x28] sm:$0xf] }
 0x950   :  { %1063 = vrot.lane.b32.xlu0 %v1061_v12, %s3668_s22 }
 0x95b   :  { %v3405_v14 = vpop.eup %3404 }
 0x95c   :  { %v4192_v15 = vmul.f32 %v3405_v14, %v3403_v13 }
 0x95e   :  { %v1054_v17 = vsub.f32 %v4192_v15, %v1052_v16 }
 0x960   :  { %1056 = vrot.lane.b32.xlu1 %v1054_v17, %s3668_s22  ;;  %v1209_v17 = vld [vmem:[#allocation2 + $0x38] sm:$0xf] }
 0x9c2   :  { %v1064_v23 = vpop.permute.xlu0 %1063 }
 0x9c3   :  { %v1066_v24 = vmul.f32 %v1064_v23, %v4199_v18 }
 0x9c5   :  { %v4202_v30 = vadd.f32 %v1066_v24, %v938_v53 }
 0x9c7   :  { %v1167_v35 = vrot.slane %v4202_v30, 4 }
 0x9c9   :  { %1168 = vrot.lane.b32.xlu1 %v1167_v35, %s3668_s22 }
 0x9d2   :  { %v1057_v36 = vpop.permute.xlu1 %1056 }
 0x9d3   :  { %v1059_v49 = vmul.f32 %v1057_v36, %v4199_v18 }
 0x9d5   :  { %v4207_v51 = vadd.f32 %v1059_v49, %v930_v56 }
 0x9d7   :  { %3186 = vmatmul.mubr.msk.f32.vlgmr.msra.gmra.mxu1 %vm402_vm1, %v4207_v51  ;;  %v1188_v54 = vrot.slane %v4207_v51, 4 }
 0x9d8   :  { %1360 = vmatpush1.msra.mxu1 %v3861_v20  ;;  %1407 = vmatprep.mubr.f32.mxu1 %v3675_v0 }
 0x9d9   :  { %1189 = vrot.lane.b32.xlu1 %v1188_v54, %s3668_s22  ;;  %1361 = vmatprep.subr.mxu1 %v3868_v21 }
 0x9da   :  { %1362 = vmatpush1.msra.mxu1 %v3875_v22  ;;  %v1068_v22 = vld [vmem:[#allocation2 + $0x8] sm:$0xf0] }
 0x9db   :  { %1363 = vmatprep.subr.mxu1 %v3888_v25 }
 0x9dc   :  { %1364 = vmatpush1.msra.mxu1 %v3894_v26 }
 0x9dd   :  { %1365 = vmatprep.subr.mxu1 %v3902_v27 }
 0x9de   :  { %1366 = vmatpush1.msra.mxu1 %v3909_v28 }
 0x9df   :  { %1367 = vmatprep.subr.mxu1 %v3922_v31  ;;  %v1069_v31 = vld [vmem:[#allocation2 + $0x20] sm:$0xf0] }
 0x9e0   :  { %1368 = vmatpush1.msra.mxu1 %v3929_v32 }
 0x9e1   :  { %1369 = vmatprep.subr.mxu1 %v3936_v33 }
 0x9e2   :  { %1370 = vmatpush1.msra.mxu1 %v3943_v34 }
 0x9e3   :  { %1371 = vmatprep.subr.mxu1 %v3956_v37 }
 0x9e4   :  { %1372 = vmatpush1.msra.mxu1 %v3963_v38 }
 0x9e5   :  { %1373 = vmatprep.subr.mxu1 %v3970_v39 }
 0x9e6   :  { %1374 = vmatpush1.msra.mxu1 %v3979_v41 }
 0xa3b   :  { %v1169_v52 = vpop.permute.xlu1 %1168 }
 0xa4b   :  { %v1190_v4 = vpop.permute.xlu1 %1189 }
 0xa97   :  { %v1140_v20 = vpop.f32.mrf.mxu1 }
 0xa98   :  { %v1147_v21 = vrot.slane %v1140_v20, 4 }
 0xa99   :  { %v1142_v27 = vpop.f32.mrf.mxu1 }
 0xa9a   :  { %v1151_v25 = vadd.f32 %v1147_v21, %v1068_v22  ;;  %v1148_v28 = vrot.slane %v1142_v27, 4 }
 0xa9c   :  { %v3187_v26 = vmul.f32 -1.442695, %v1151_v25  ;;  %v1152_v32 = vadd.f32 %v1148_v28, %v1069_v31 }
 0xa9e   :  { %3406 = vpow2.f32 %v3187_v26  ;;  %v3188_v39 = vmul.f32 -1.442695, %v1152_v32 }
 0xa9f   :  { %3408 = vtanh.f32 %v1152_v32 }
 0xaab   :  { %v3407_v33 = vpop.eup %3406 }
 0xaac   :  { %v1156_v34 = vadd.f32 1.0, %v3407_v33  ;;  %v3409_v37 = vpop.eup %3408 }
 0xaae   :  { %3410 = vrcp.f32 %v1156_v34 }
 0xaaf   :  { %3412 = vpow2.f32 %v3188_v39 }
 0xabb   :  { %v3411_v38 = vpop.eup %3410 }
 0xabc   :  { %v1172_v53 = vmul.f32 %v3411_v38, %v3409_v37  ;;  %v3413_v41 = vpop.eup %3412  ;;  %v1171_v48 = vmul.f32 %v3411_v38, %v1169_v52  ;;  %v1210_v37 = vld [vmem:[%s4927_s21 + $0x18] sm:$0xf] }
 0xabd   :  { %v1163_v56 = vadd.f32 1.0, %v3413_v41 }
 0xabe   :  { %1174 = vrot.lane.b32.xlu0 %v1172_v53, %s3668_s22 }
 0xabf   :  { %3414 = vrcp.f32 %v1163_v56 }
 0xacc   :  { %v3415_v62 = vpop.eup %3414 }
 0xb30   :  { %v1175_v57 = vpop.permute.xlu0 %1174 }
 0xb31   :  { %v1177_v58 = vadd.f32 %v1175_v57, %v1171_v48 }
 0xb33   :  { %3416 = vtanh.f32 %v1177_v58  ;;  %v1200_v60 = vsub.f32 %v1177_v58, %v1169_v52 }
 0xb35   :  { %v1202_v61 = vrot.slane %v1200_v60, 4 }
 0xb37   :  { %1203 = vrot.lane.b32.xlu1 %v1202_v61, %s3668_s22 }
 0xb40   :  { %v3417_v1 = vpop.eup %3416 }
 0xb41   :  { %v4231_v3 = vmul.f32 %v3417_v1, %v3415_v62 }
 0xb43   :  { %v1192_v5 = vsub.f32 %v4231_v3, %v1190_v4 }
 0xb45   :  { %v1194_v6 = vrot.slane %v1192_v5, 4 }
 0xb47   :  { %1195 = vrot.lane.b32.xlu0 %v1194_v6, %s3668_s22 }
 0xba9   :  { %v1204_v8 = vpop.permute.xlu1 %1203 }
 0xbaa   :  { %v1206_v9 = vmul.f32 %v1204_v8, %v4238_v7  ;;  %v1337_v8 = vld [vmem:[#allocation2 + $0x28] sm:$0xf0] }
 0xbac   :  { %v1207_v10 = vadd.f32 %v1206_v9, %v4202_v30 }
 0xbae   :  { %1301 = vrot.lane.b32.xlu0 %v1207_v10, %s3668_s22 }
 0xbb9   :  { %v1196_v40 = vpop.permute.xlu0 %1195 }
 0xbba   :  { %v1198_v42 = vmul.f32 %v1196_v40, %v4238_v7 }
 0xbbc   :  { %v1199_v19 = vadd.f32 %v1198_v42, %v4207_v51 }
 0xbbe   :  { %3189 = vmatmul.mubr.msk.f32.vlgmr.msra.gmra.mxu0 %vm402_vm1, %v1199_v19  ;;  %1320 = vrot.lane.b32.xlu0 %v1199_v19, %s3668_s22 }
 0xbbf   :  { %1573 = vmatprep.mubr.f32.mxu0 %v3675_v0 }
 0xc20   :  { %v1302_v20 = vpop.permute.xlu0 %1301 }
 0xc30   :  { %v1321_v33 = vpop.permute.xlu0 %1320 }
 0xc7e   :  { %v1280_v12 = vpop.f32.mrf.mxu0 }
 0xc7f   :  { %v1285_v13 = vadd.f32 %v1280_v12, %v1208_v11 }
 0xc80   :  { %v1282_v16 = vpop.f32.mrf.mxu0 }
 0xc81   :  { %v3190_v14 = vmul.f32 -1.442695, %v1285_v13  ;;  %v1286_v23 = vadd.f32 %v1282_v16, %v1209_v17  ;;  %v1477_v13 = vld [vmem:[%s4906_s9 + $0x60] sm:$0xff]  ;;  %v1475_v16 = vld [vmem:[%s4906_s9 + $0x50] sm:$0xff]  ;;  %v1474_v17 = vld [vmem:[%s4906_s9 + $0x48] sm:$0xff] }
 0xc83   :  { %3418 = vpow2.f32 %v3190_v14  ;;  %v3191_v51 = vmul.f32 -1.442695, %v1286_v23  ;;  %v1476_v14 = vld [vmem:[%s4906_s9 + $0x58] sm:$0xff] }
 0xc84   :  { %3420 = vtanh.f32 %v1286_v23  ;;  %v1473_v23 = vld [vmem:[%s4906_s9 + $0x40] sm:$0xff] }
 0xc90   :  { %v3419_v24 = vpop.eup %3418 }
 0xc91   :  { %v1290_v30 = vadd.f32 1.0, %v3419_v24  ;;  %v3421_v35 = vpop.eup %3420  ;;  %v1472_v24 = vld [vmem:[%s4906_s9 + $0x38] sm:$0xff] }
 0xc93   :  { %3422 = vrcp.f32 %v1290_v30  ;;  %v1471_v30 = vld [vmem:[%s4906_s9 + $0x30] sm:$0xff] }
 0xc94   :  { %3424 = vpow2.f32 %v3191_v51 }
 0xca0   :  { %v3423_v36 = vpop.eup %3422 }
 0xca1   :  { %v1305_v49 = vmul.f32 %v3423_v36, %v3421_v35  ;;  %v3425_v54 = vpop.eup %3424  ;;  %v1304_v22 = vmul.f32 %v3423_v36, %v1302_v20  ;;  %v1470_v35 = vld [vmem:[%s4906_s9 + $0x28] sm:$0xff]  ;;  %v1469_v36 = vld [vmem:[%s4906_s9 + $0x20] sm:$0xff] }
 0xca2   :  { %v1297_v21 = vadd.f32 1.0, %v3425_v54  ;;  %v1467_v54 = vld [vmem:[%s4906_s9 + $0x10] sm:$0xff] }
 0xca3   :  { %1307 = vrot.lane.b32.xlu1 %v1305_v49, %s3668_s22  ;;  %v1468_v49 = vld [vmem:[%s4906_s9 + $0x18] sm:$0xff] }
 0xca4   :  { %3426 = vrcp.f32 %v1297_v21  ;;  %v1466_v21 = vld [vmem:[%s4906_s9 + $0x8] sm:$0xff] }
 0xcb1   :  { %v3427_v28 = vpop.eup %3426 }
 0xd15   :  { %v1308_v25 = vpop.permute.xlu1 %1307 }
 0xd16   :  { %v1310_v26 = vadd.f32 %v1308_v25, %v1304_v22  ;;  %v1465_v25 = vld [vmem:[%s4906_s9] sm:$0xff] }
 0xd18   :  { %3428 = vtanh.f32 %v1310_v26  ;;  %v1330_v27 = vsub.f32 %v1310_v26, %v1302_v20  ;;  %v643_v26 = vrot.slane %v4083_v55, 4  ;;  %v1492_v55 = vld [vmem:[%s4907_s10 + $0x58] sm:$0xff] }
 0xd1a   :  { %1332 = vrot.lane.b32.xlu0 %v1330_v27, %s3668_s22  ;;  %v1496_v27 = vld [vmem:[%s4907_s10 + $0x78] sm:$0xff] }
 0xd1b   :  { %1525 = vmatprep.subr.mxu0 %v1496_v27 }
 0xd25   :  { %v3429_v31 = vpop.eup %3428 }
 0xd26   :  { %v1312_v32 = vmul.f32 %v3429_v31, %v3427_v28  ;;  %v1495_v28 = vld [vmem:[%s4907_s10 + $0x70] sm:$0xff]  ;;  %v1494_v31 = vld [vmem:[%s4907_s10 + $0x68] sm:$0xff] }
 0xd27   :  { %1526 = vmatpush1.msra.mxu0 %v1495_v28 }
 0xd28   :  { %v1323_v34 = vsub.f32 %v1312_v32, %v1321_v33  ;;  %1527 = vmatprep.subr.mxu0 %v1494_v31  ;;  %v1491_v33 = vld [vmem:[%s4907_s10 + $0x50] sm:$0xff] }
 0xd2a   :  { %1325 = vrot.lane.b32.xlu1 %v1323_v34, %s3668_s22 }
 0xd8c   :  { %v1333_v38 = vpop.permute.xlu0 %1332 }
 0xd8d   :  { %v1335_v53 = vmul.f32 %v1333_v38, %v1210_v37 }
 0xd8f   :  { %v1336_v39 = vadd.f32 %v1335_v53, %v1207_v10 }
 0xd91   :  { %v1436_v41 = vrot.slane %v1336_v39, 4 }
 0xd93   :  { %1437 = vrot.lane.b32.xlu1 %v1436_v41, %s3668_s22 }
 0xd97   :  { %1314 = vrot.lane.b32.xlu1 %v1312_v32, %s3668_s22  ;;  %v1493_v32 = vld [vmem:[%s4907_s10 + $0x60] sm:$0xff] }
 0xd98   :  { %1528 = vmatpush1.msra.mxu0 %v1493_v32  ;;  %v1699_v32 = vld [vmem:[%s4909_s12] sm:$0x3] }
 0xd99   :  { %1529 = vmatprep.subr.mxu0 %v1492_v55 }
 0xd9a   :  { %1530 = vmatpush1.msra.mxu0 %v1491_v33  ;;  %v1704_v33 = vrot.slane %v1699_v32, %v357_v45 }
 0xd9b   :  { %506 = vrot.lane.b32.xlu1 %v4041_v63, %s3668_s22  ;;  %v1480_v63 = vld [vmem:[%s4906_s9 + $0x78] sm:$0xff] }
 0xd9c   :  { %v1326_v52 = vpop.permute.xlu1 %1325  ;;  %1626 = vmatprep.subr.mxu1 %v1480_v63  ;;  %v1485_v63 = vld [vmem:[%s4907_s10 + $0x20] sm:$0xff] }
 0xd9d   :  { %v1328_v56 = vmul.f32 %v1326_v52, %v1210_v37 }
 0xd9f   :  { %v1329_v48 = vadd.f32 %v1328_v56, %v1199_v19  ;;  %1045 = vrot.lane.b32.xlu1 %v4192_v15, %s3668_s22  ;;  %v1479_v15 = vld [vmem:[%s4906_s9 + $0x70] sm:$0xff] }
 0xda1   :  { %3192 = vmatmul.mubr.msk.f32.vlgmr.msra.gmra.mxu1 %vm402_vm1, %v1329_v48  ;;  %v1490_v48 = vld [vmem:[%s4907_s10 + $0x48] sm:$0xff] }
 0xda2   :  { %1674 = vmatprep.mubr.f32.mxu1 %v3675_v0  ;;  %1627 = vmatpush1.msra.mxu1 %v1479_v15 }
 0xda3   :  { %776 = vrot.lane.b32.xlu1 %v4118_v43, %s3668_s22  ;;  %1531 = vmatprep.subr.mxu0 %v1490_v48 }
 0xe05   :  { %v4264_v57 = vpop.permute.xlu1 %1437 }
 0xe09   :  { %v1315_v58 = vpop.permute.xlu1 %1314 }
 0xe0a   :  { %v1317_v60 = vmul.f32 %v1315_v58, %v1210_v37  ;;  %v1488_v58 = vld [vmem:[%s4907_s10 + $0x38] sm:$0xff] }
 0xe0c   :  { %1318 = vst.msk [vmem:[#allocation3 + $0x18] sm:$0xf] %vm510_vm2, %v1317_v60  ;;  %1319 = vst.msk [vmem:[#allocation4 + $0x4] sm:$0xf] %vm510_vm2, %v1317_v60  ;;  %v1486_v60 = vld [vmem:[%s4907_s10 + $0x28] sm:$0xff] }
 0xe0d   :  { %v507_v61 = vpop.permute.xlu1 %506 }
 0xe0e   :  { %v509_v43 = vmul.f32 %v507_v61, %v4048_v2  ;;  %v1484_v61 = vld [vmem:[%s4907_s10 + $0x18] sm:$0xff] }
 0xe10   :  { %511 = vst.msk [vmem:[#allocation3] sm:$0xf] %vm510_vm2, %v509_v43  ;;  %512 = vst.msk [vmem:[#allocation4 + $0x1c] sm:$0xf] %vm510_vm2, %v509_v43  ;;  %v1483_v43 = vld [vmem:[%s4907_s10 + $0x10] sm:$0xff] }
 0xe11   :  { %v1046_v62 = vpop.permute.xlu1 %1045 }
 0xe12   :  { %v1048_v1 = vmul.f32 %v1046_v62, %v4199_v18  ;;  %v1338_v18 = vld [vmem:[#allocation2 + $0x38] sm:$0xf0] }
 0xe14   :  { %1049 = vst.msk [vmem:[#allocation3 + $0x10] sm:$0xf] %vm510_vm2, %v1048_v1  ;;  %1050 = vst.msk [vmem:[#allocation4 + $0xc] sm:$0xf] %vm510_vm2, %v1048_v1 }
 0xe15   :  { %v777_v4 = vpop.permute.xlu1 %776 }
 0xe16   :  { %v779_v5 = vmul.f32 %v777_v4, %v4125_v50  ;;  %v1478_v50 = vld [vmem:[%s4906_s9 + $0x68] sm:$0xff] }
 0xe17   :  { %1628 = vmatprep.subr.mxu1 %v1478_v50  ;;  %v1482_v4 = vld [vmem:[%s4907_s10 + $0x8] sm:$0xff]  ;;  %v912_v50 = vrot.slane %v4158_v29, 4  ;;  %v4456_v29 = vld [vmem:[%s4908_s11 + $0x20] sm:$0xff] }
 0xe18   :  { %780 = vst.msk [vmem:[#allocation3 + $0x8] sm:$0xf] %vm510_vm2, %v779_v5  ;;  %781 = vst.msk [vmem:[#allocation4 + $0x14] sm:$0xf] %vm510_vm2, %v779_v5  ;;  %1629 = vmatpush1.msra.mxu1 %v1477_v13  ;;  %v4443_v13 = vld [vmem:[%s4908_s11 + $0x30] sm:$0xff] }
 0xe19   :  { %1630 = vmatprep.subr.mxu1 %v1476_v14  ;;  %v4449_v14 = vld [vmem:[%s4908_s11 + $0x28] sm:$0xff] }
 0xe1a   :  { %1631 = vmatpush1.msra.mxu1 %v1475_v16  ;;  %v4462_v16 = vld [vmem:[%s4908_s11 + $0x18] sm:$0xff] }
 0xe1b   :  { %1632 = vmatprep.subr.mxu1 %v1474_v17  ;;  %v4468_v17 = vld [vmem:[%s4908_s11 + $0x10] sm:$0xff] }
 0xe1c   :  { %1633 = vmatpush1.msra.mxu1 %v1473_v23  ;;  %v4474_v23 = vld [vmem:[%s4908_s11 + $0x8] sm:$0xff] }
 0xe1d   :  { %1634 = vmatprep.subr.mxu1 %v1472_v24  ;;  %v4480_v24 = vld [vmem:[%s4908_s11] sm:$0xff] }
 0xe1e   :  { %1635 = vmatpush1.msra.mxu1 %v1471_v30  ;;  %v4485_v30 = vld [vmem:[#allocation8 + $0x4] sm:$0xf] }
 0xe1f   :  { %1636 = vmatprep.subr.mxu1 %v1470_v35  ;;  %1840 = vrot.lane.b32.xlu1 %v4485_v30, %s3668_s22  ;;  %v4489_v35 = vld [vmem:[#allocation5 + $0x4] sm:$0xf] }
 0xe20   :  { %1637 = vmatpush1.msra.mxu1 %v1469_v36  ;;  %v1339_v36 = vld [vmem:[%s4927_s21 + $0x1c] sm:$0xf] }
 0xe21   :  { %1638 = vmatprep.subr.mxu1 %v1468_v49 }
 0xe22   :  { %1639 = vmatpush1.msra.mxu1 %v1467_v54 }
 0xe23   :  { %1640 = vmatprep.subr.mxu1 %v1466_v21  ;;  %1859 = vrot.lane.b32.xlu1 %v4489_v35, %s3668_s22 }
 0xe24   :  { %1641 = vmatpush1.msra.mxu1 %v1465_v25 }
 0xe61   :  { %v1409_v2 = vpop.f32.mrf.mxu1 }
 0xe62   :  { %v1416_v6 = vrot.slane %v1409_v2, 4  ;;  %v1481_v2 = vld [vmem:[%s4907_s10] sm:$0xff] }
 0xe63   :  { %v1411_v40 = vpop.f32.mrf.mxu1 }
 0xe64   :  { %v1420_v9 = vadd.f32 %v1416_v6, %v1337_v8  ;;  %v1417_v42 = vrot.slane %v1411_v40, 4  ;;  %v4385_v6 = vld [vmem:[%s4908_s11 + $0x78] sm:$0xff]  ;;  %v4404_v40 = vld [vmem:[%s4908_s11 + $0x60] sm:$0xff] }
 0xe65   :  { %1898 = vmatprep.subr.mxu1 %v4385_v6 }
 0xe66   :  { %v3193_v10 = vmul.f32 -1.442695, %v1420_v9  ;;  %v1421_v19 = vadd.f32 %v1417_v42, %v1338_v18  ;;  %v4391_v9 = vld [vmem:[%s4908_s11 + $0x70] sm:$0xff]  ;;  %v4410_v42 = vld [vmem:[%s4908_s11 + $0x58] sm:$0xff]  ;;  %v1181_v18 = vrot.slane %v4231_v3, 4  ;;  %v4430_v3 = vld [vmem:[%s4908_s11 + $0x40] sm:$0xff] }
 0xe68   :  { %3430 = vpow2.f32 %v3193_v10  ;;  %v3194_v34 = vmul.f32 -1.442695, %v1421_v19  ;;  %v4397_v10 = vld [vmem:[%s4908_s11 + $0x68] sm:$0xff] }
 0xe69   :  { %3432 = vtanh.f32 %v1421_v19  ;;  %v4417_v19 = vld [vmem:[%s4908_s11 + $0x50] sm:$0xff] }
 0xe75   :  { %v3431_v11 = vpop.eup %3430 }
 0xe76   :  { %v1425_v12 = vadd.f32 1.0, %v3431_v11  ;;  %v3433_v51 = vpop.eup %3432  ;;  %v4423_v11 = vld [vmem:[%s4908_s11 + $0x48] sm:$0xff] }
 0xe78   :  { %3434 = vrcp.f32 %v1425_v12  ;;  %v4436_v12 = vld [vmem:[%s4908_s11 + $0x38] sm:$0xff] }
 0xe79   :  { %3436 = vpow2.f32 %v3194_v34 }
 0xe85   :  { %v3435_v20 = vpop.eup %3434 }
 0xe86   :  { %v1441_v22 = vmul.f32 %v3435_v20, %v3433_v51  ;;  %v3437_v37 = vpop.eup %3436  ;;  %v1440_v53 = vmul.f32 %v3435_v20, %v4264_v57  ;;  %v1489_v57 = vld [vmem:[%s4907_s10 + $0x40] sm:$0xff] }
 0xe87   :  { %v1432_v38 = vadd.f32 1.0, %v3437_v37  ;;  %1532 = vmatpush1.msra.mxu0 %v1489_v57 }
 0xe88   :  { %1443 = vrot.lane.b32.xlu0 %v1441_v22, %s3668_s22  ;;  %1533 = vmatprep.subr.mxu0 %v1488_v58 }
 0xe89   :  { %3438 = vrcp.f32 %v1432_v38  ;;  %v1708_v38 = vrot.slane %v1699_v32, %v361_v47 }
 0xe8c   :  { %644 = vrot.lane.b32.xlu0 %v643_v26, %s3668_s22 }
 0xe96   :  { %v3439_v62 = vpop.eup %3438 }
 0xefa   :  { %v1444_v39 = vpop.permute.xlu0 %1443 }
 0xefb   :  { %v1446_v41 = vadd.f32 %v1444_v39, %v1440_v53 }
 0xefd   :  { %3440 = vtanh.f32 %v1446_v41 }
 0xefe   :  { %v645_v52 = vpop.permute.xlu0 %644 }
 0xeff   :  { %v647_v56 = vmul.f32 %v645_v52, %v4090_v59  ;;  %v1487_v59 = vld [vmem:[%s4907_s10 + $0x30] sm:$0xff] }
 0xf00   :  { %1534 = vmatpush1.msra.mxu0 %v1487_v59 }
 0xf01   :  { %648 = vst.msk [vmem:[#allocation3 + $0x4] sm:$0xf] %vm510_vm2, %v647_v56  ;;  %649 = vst.msk [vmem:[#allocation4 + $0x18] sm:$0xf] %vm510_vm2, %v647_v56  ;;  %1535 = vmatprep.subr.mxu0 %v1486_v60 }
 0xf02   :  { %1536 = vmatpush1.msra.mxu0 %v1485_v63 }
 0xf03   :  { %1537 = vmatprep.subr.mxu0 %v1484_v61 }
 0xf04   :  { %1538 = vmatpush1.msra.mxu0 %v1483_v43 }
 0xf05   :  { %1539 = vmatprep.subr.mxu0 %v1482_v4 }
 0xf06   :  { %1540 = vmatpush1.msra.mxu0 %v1481_v2 }
 0xf07   :  { %1769 = vmatprep.subr.mxu0 %v4385_v6 }
 0xf08   :  { %v1457_v15 = vld [vmem:[#allocation3] sm:$0xff]  ;;  %v1464_v28 = vld [vmem:[#allocation4 + $0x18] sm:$0xff] }
 0xf09   :  { %3199 = vmatmul.mubr.msk.f32.vlgmr.msra.gmra.mxu1 %vm402_vm1, %v1457_v15 }
 0xf0a   :  { %v3441_v1 = vpop.eup %3440  ;;  %1680 = vmatprep.mubr.f32.mxu1 %v3675_v0  ;;  %1899 = vmatpush1.msra.mxu1 %v4391_v9 }
 0xf0b   :  { %v1448_v5 = vmul.f32 %v3441_v1, %v3439_v62  ;;  %1900 = vmatprep.subr.mxu1 %v4397_v10 }
 0xf0c   :  { %1901 = vmatpush1.msra.mxu1 %v4404_v40 }
 0xf0d   :  { %v1450_v8 = vrot.slane %v1448_v5, 4  ;;  %1902 = vmatprep.subr.mxu1 %v4410_v42 }
 0xf0e   :  { %1903 = vmatpush1.msra.mxu1 %v4417_v19 }
 0xf0f   :  { %1451 = vrot.lane.b32.xlu0 %v1450_v8, %s3668_s22  ;;  %1904 = vmatprep.subr.mxu1 %v4423_v11 }
 0xf10   :  { %1905 = vmatpush1.msra.mxu1 %v4430_v3 }
 0xf11   :  { %1906 = vmatprep.subr.mxu1 %v4436_v12 }
 0xf12   :  { %1907 = vmatpush1.msra.mxu1 %v4443_v13 }
 0xf13   :  { %1182 = vrot.lane.b32.xlu0 %v1181_v18, %s3668_s22  ;;  %1908 = vmatprep.subr.mxu1 %v4449_v14 }
 0xf14   :  { %1909 = vmatpush1.msra.mxu1 %v4456_v29 }
 0xf15   :  { %1910 = vmatprep.subr.mxu1 %v4462_v16 }
 0xf16   :  { %1911 = vmatpush1.msra.mxu1 %v4468_v17 }
 0xf17   :  { %913 = vrot.lane.b32.xlu0 %v912_v50, %s3668_s22  ;;  %1912 = vmatprep.subr.mxu1 %v4474_v23 }
 0xf18   :  { %1913 = vmatpush1.msra.mxu1 %v4480_v24 }
 0xf19   :  { %2167 = vmatprep.subr.mxu1 %v4385_v6 }
 0xf81   :  { %v1452_v49 = vpop.permute.xlu0 %1451 }
 0xf82   :  { %v1454_v51 = vmul.f32 %v1452_v49, %v1339_v36 }
 0xf84   :  { %1455 = vst.msk [vmem:[#allocation3 + $0x1c] sm:$0xf] %vm510_vm2, %v1454_v51  ;;  %1456 = vst.msk [vmem:[#allocation4] sm:$0xf] %vm510_vm2, %v1454_v51 }
 0xf85   :  { %v1183_v54 = vpop.permute.xlu0 %1182 }
 0xf86   :  { %v1185_v20 = vmul.f32 %v1183_v54, %v4238_v7 }
 0xf88   :  { %1186 = vst.msk [vmem:[#allocation3 + $0x14] sm:$0xf] %vm510_vm2, %v1185_v20  ;;  %1187 = vst.msk [vmem:[#allocation4 + $0x8] sm:$0xf] %vm510_vm2, %v1185_v20 }
 0xf89   :  { %v914_v21 = vpop.permute.xlu0 %913 }
 0xf8a   :  { %v916_v22 = vmul.f32 %v914_v21, %v4165_v46 }
 0xf8b   :  { %v1461_v25 = vld [vmem:[#allocation4] sm:$0xff]  ;;  %v1460_v31 = vld [vmem:[#allocation3 + $0x18] sm:$0xff] }
 0xf8c   :  { %917 = vst.msk [vmem:[#allocation3 + $0xc] sm:$0xf] %vm510_vm2, %v916_v22  ;;  %918 = vst.msk [vmem:[#allocation4 + $0x10] sm:$0xf] %vm510_vm2, %v916_v22  ;;  %3195 = vmatmul.mubr.msk.f32.vlgmr.msra.gmra.mxu0 %vm402_vm1, %v1461_v25 }
 0xf8d   :  { %1770 = vmatpush1.msra.mxu0 %v4391_v9  ;;  %1579 = vmatprep.mubr.f32.mxu0 %v3675_v0 }
 0xf8e   :  { %1771 = vmatprep.subr.mxu0 %v4397_v10 }
 0xf8f   :  { %1772 = vmatpush1.msra.mxu0 %v4404_v40  ;;  %v1462_v7 = vld [vmem:[#allocation4 + $0x8] sm:$0xff]  ;;  %v1459_v27 = vld [vmem:[#allocation3 + $0x10] sm:$0xff] }
 0xf90   :  { %3196 = vmatmul.mubr.msk.f32.gmra.mxu0 %vm402_vm1, %v1462_v7  ;;  %1773 = vmatprep.subr.mxu0 %v4410_v42 }
 0xf91   :  { %1774 = vmatpush1.msra.mxu0 %v4417_v19  ;;  %1585 = vmatprep.mubr.f32.mxu0 %v3675_v0 }
 0xf92   :  { %1775 = vmatprep.subr.mxu0 %v4423_v11 }
 0xf93   :  { %1776 = vmatpush1.msra.mxu0 %v4430_v3  ;;  %v1463_v46 = vld [vmem:[#allocation4 + $0x10] sm:$0xff]  ;;  %v1458_v26 = vld [vmem:[#allocation3 + $0x8] sm:$0xff] }
 0xf94   :  { %3197 = vmatmul.mubr.msk.f32.gmra.mxu0 %vm402_vm1, %v1463_v46  ;;  %3200 = vmatmul.mubr.msk.f32.gmra.mxu1 %vm402_vm1, %v1458_v26 }
 0xf95   :  { %1777 = vmatprep.subr.mxu0 %v4436_v12  ;;  %1591 = vmatprep.mubr.f32.mxu0 %v3675_v0 }
 0xf96   :  { %1778 = vmatpush1.msra.mxu0 %v4443_v13  ;;  %1686 = vmatprep.mubr.f32.mxu1 %v3675_v0 }
 0xf97   :  { %1779 = vmatprep.subr.mxu0 %v4449_v14 }
 0xf98   :  { %1780 = vmatpush1.msra.mxu0 %v4456_v29  ;;  %3201 = vmatmul.mubr.msk.f32.gmra.mxu1 %vm402_vm1, %v1459_v27 }
 0xf99   :  { %3198 = vmatmul.mubr.msk.f32.gmra.mxu0 %vm402_vm1, %v1464_v28  ;;  %1781 = vmatprep.subr.mxu0 %v4462_v16 }
 0xf9a   :  { %1782 = vmatpush1.msra.mxu0 %v4468_v17  ;;  %1692 = vmatprep.mubr.f32.mxu1 %v3675_v0 }
 0xf9b   :  { %1783 = vmatprep.subr.mxu0 %v4474_v23  ;;  %1817 = vmatprep.mubr.f32.mxu0 %v3675_v0 }
 0xf9c   :  { %1784 = vmatpush1.msra.mxu0 %v4480_v24  ;;  %3202 = vmatmul.mubr.msk.f32.gmra.mxu1 %vm402_vm1, %v1460_v31 }
 0xf9d   :  { %3203 = vmatmul.mubr.msk.f32.vlgmr.msra.gmra.mxu0 %vm402_vm1, %v4489_v35  ;;  %1946 = vmatprep.mubr.f32.mxu1 %v3675_v0 }
 0xf9e   :  { %2038 = vmatprep.subr.mxu0 %v4385_v6  ;;  %2086 = vmatprep.mubr.f32.mxu0 %v3675_v0 }
 0xf9f   :  { %2039 = vmatpush1.msra.mxu0 %v4391_v9 }
 0xfa0   :  { %2040 = vmatprep.subr.mxu0 %v4397_v10 }
 0xfa1   :  { %2041 = vmatpush1.msra.mxu0 %v4404_v40 }
 0xfa2   :  { %2042 = vmatprep.subr.mxu0 %v4410_v42 }
 0xfa3   :  { %2043 = vmatpush1.msra.mxu0 %v4417_v19 }
 0xfa4   :  { %2044 = vmatprep.subr.mxu0 %v4423_v11 }
 0xfa5   :  { %2045 = vmatpush1.msra.mxu0 %v4430_v3 }
 0xfa6   :  { %2046 = vmatprep.subr.mxu0 %v4436_v12 }
 0xfa7   :  { %2047 = vmatpush1.msra.mxu0 %v4443_v13 }
 0xfa8   :  { %2048 = vmatprep.subr.mxu0 %v4449_v14 }
 0xfa9   :  { %2049 = vmatpush1.msra.mxu0 %v4456_v29 }
 0xfaa   :  { %2050 = vmatprep.subr.mxu0 %v4462_v16 }
 0xfab   :  { %2051 = vmatpush1.msra.mxu0 %v4468_v17 }
 0xfac   :  { %2052 = vmatprep.subr.mxu0 %v4474_v23 }
 0xfad   :  { %2053 = vmatpush1.msra.mxu0 %v4480_v24 }
 0xfae   :  { %2307 = vmatprep.subr.mxu0 %v4385_v6 }
 0xfc9   :  { %v1676_v55 = vpop.f32.mrf.mxu1 }
 0xfcb   :  { %v1678_v53 = vpop.f32.mrf.mxu1 }
0x104c   :  { %v1575_v34 = vpop.f32.mrf.mxu0 }
0x104d   :  { %v1677_v37 = vadd.f32 %v1676_v55, %v1575_v34 }
0x104e   :  { %v1577_v39 = vpop.f32.mrf.mxu0 }
0x104f   :  { %v1711_v41 = vadd.f32 %v1704_v33, %v1677_v37  ;;  %v1679_v52 = vadd.f32 %v1678_v53, %v1577_v39  ;;  %v1841_v37 = vpop.permute.xlu1 %1840 }
0x1050   :  { %v1581_v56 = vpop.f32.mrf.mxu0 }
0x1051   :  { %1719 = vst [vmem:[#allocation2 + $0x30] sm:$0xff] %v1711_v41  ;;  %v1712_v48 = vadd.f32 %v1708_v38, %v1679_v52 }
0x1052   :  { %v1583_v57 = vpop.f32.mrf.mxu0 }
0x1053   :  { %1720 = vst [vmem:[#allocation2] sm:$0xff] %v1712_v48 }
0x1054   :  { %v1587_v58 = vpop.f32.mrf.mxu0  ;;  %v1682_v59 = vpop.f32.mrf.mxu1 }
0x1055   :  { %v1683_v60 = vadd.f32 %v1682_v59, %v1581_v56 }
0x1056   :  { %v1589_v63 = vpop.f32.mrf.mxu0  ;;  %v1684_v15 = vpop.f32.mrf.mxu1 }
0x1057   :  { %v1713_v45 = vadd.f32 %v1704_v33, %v1683_v60  ;;  %v1685_v61 = vadd.f32 %v1684_v15, %v1583_v57  ;;  %v1860_v57 = vpop.permute.xlu1 %1859  ;;  %v4569_v60 = vld [vmem:[%s4927_s21] sm:$0xf] }
0x1058   :  { %v1688_v43 = vpop.f32.mrf.mxu1  ;;  %v1747_v36 = vld [vmem:[#allocation2 + $0x30] sm:$0xf] }
0x1059   :  { %1721 = vst [vmem:[#allocation2 + $0x18] sm:$0xff] %v1713_v45  ;;  %v1714_v44 = vadd.f32 %v1708_v38, %v1685_v61  ;;  %v1593_v47 = vpop.f32.mrf.mxu0  ;;  %v1689_v62 = vadd.f32 %v1688_v43, %v1587_v58 }
0x105a   :  { %v1690_v1 = vpop.f32.mrf.mxu1  ;;  %v1748_v46 = vld [vmem:[#allocation2] sm:$0xf] }
0x105b   :  { %1722 = vst [vmem:[#allocation2 + $0x10] sm:$0xff] %v1714_v44  ;;  %v1715_v4 = vadd.f32 %v1704_v33, %v1689_v62  ;;  %v1595_v5 = vpop.f32.mrf.mxu0  ;;  %v1691_v2 = vadd.f32 %v1690_v1, %v1589_v63  ;;  %v1876_v1 = vld [vmem:[#allocation2 + $0x30] sm:$0xf0] }
0x105c   :  { %v1694_v8 = vpop.f32.mrf.mxu1 }
0x105d   :  { %1723 = vst [vmem:[#allocation2 + $0x8] sm:$0xff] %v1715_v4  ;;  %v1716_v18 = vadd.f32 %v1708_v38, %v1691_v2  ;;  %v1695_v50 = vadd.f32 %v1694_v8, %v1593_v47  ;;  %v1819_v49 = vpop.f32.mrf.mxu0 }
0x105e   :  { %v1824_v51 = vadd.f32 %v1819_v49, %v1747_v36  ;;  %v1696_v54 = vpop.f32.mrf.mxu1 }
0x105f   :  { %1724 = vst [vmem:[#allocation2 + $0x20] sm:$0xff] %v1716_v18  ;;  %v1717_v20 = vadd.f32 %v1704_v33, %v1695_v50  ;;  %v1697_v21 = vadd.f32 %v1696_v54, %v1595_v5  ;;  %v1821_v7 = vpop.f32.mrf.mxu0  ;;  %v1877_v18 = vld [vmem:[#allocation2] sm:$0xf0] }
0x1060   :  { %v3204_v22 = vmul.f32 -1.442695, %v1824_v51  ;;  %v1825_v26 = vadd.f32 %v1821_v7, %v1748_v46 }
0x1061   :  { %1725 = vst [vmem:[#allocation2 + $0x28] sm:$0xff] %v1717_v20  ;;  %v1718_v25 = vadd.f32 %v1708_v38, %v1697_v21 }
0x1062   :  { %3442 = vpow2.f32 %v3204_v22  ;;  %v3205_v34 = vmul.f32 -1.442695, %v1825_v26 }
0x1063   :  { %1726 = vst [vmem:[#allocation2 + $0x38] sm:$0xff] %v1718_v25  ;;  %3444 = vtanh.f32 %v1825_v26 }
0x106f   :  { %v3443_v27 = vpop.eup %3442 }
0x1070   :  { %v1829_v28 = vadd.f32 1.0, %v3443_v27  ;;  %v3445_v31 = vpop.eup %3444 }
0x1072   :  { %3446 = vrcp.f32 %v1829_v28 }
0x1073   :  { %3448 = vpow2.f32 %v3205_v34 }
0x107f   :  { %v3447_v32 = vpop.eup %3446 }
0x1080   :  { %v1844_v55 = vmul.f32 %v3447_v32, %v3445_v31  ;;  %v3449_v33 = vpop.eup %3448  ;;  %v1843_v38 = vmul.f32 %v3447_v32, %v1841_v37 }
0x1081   :  { %v1836_v53 = vadd.f32 1.0, %v3449_v33 }
0x1082   :  { %1846 = vrot.lane.b32.xlu0 %v1844_v55, %s3668_s22 }
0x1083   :  { %3450 = vrcp.f32 %v1836_v53 }
0x1090   :  { %v3451_v56 = vpop.eup %3450 }
0x10f4   :  { %v1847_v39 = vpop.permute.xlu0 %1846 }
0x10f5   :  { %v1849_v41 = vadd.f32 %v1847_v39, %v1843_v38  ;;  %v4611_v38 = vld [vmem:[%s4927_s21 + $0x4] sm:$0xf] }
0x10f7   :  { %3452 = vtanh.f32 %v1849_v41  ;;  %v1869_v52 = vsub.f32 %v1849_v41, %v1841_v37 }
0x10f9   :  { %1871 = vrot.lane.b32.xlu1 %v1869_v52, %s3668_s22 }
0x1104   :  { %v3453_v48 = vpop.eup %3452 }
0x1105   :  { %v4562_v58 = vmul.f32 %v3453_v48, %v3451_v56 }
0x1107   :  { %v1862_v59 = vsub.f32 %v4562_v58, %v1860_v57 }
0x1109   :  { %1864 = vrot.lane.b32.xlu0 %v1862_v59, %s3668_s22  ;;  %v2016_v59 = vld [vmem:[#allocation2 + $0x18] sm:$0xf] }
0x116b   :  { %v1872_v63 = vpop.permute.xlu1 %1871 }
0x116c   :  { %v1874_v15 = vmul.f32 %v1872_v63, %v4569_v60 }
0x116e   :  { %v4573_v45 = vadd.f32 %v1874_v15, %v4485_v30 }
0x1170   :  { %v1975_v61 = vrot.slane %v4573_v45, 4 }
0x1172   :  { %1976 = vrot.lane.b32.xlu0 %v1975_v61, %s3668_s22 }
0x117b   :  { %v1865_v43 = vpop.permute.xlu0 %1864 }
0x117c   :  { %v1867_v44 = vmul.f32 %v1865_v43, %v4569_v60  ;;  %v2017_v43 = vld [vmem:[#allocation2 + $0x10] sm:$0xf] }
0x117e   :  { %v4579_v47 = vadd.f32 %v1867_v44, %v4489_v35 }
0x1180   :  { %3206 = vmatmul.mubr.msk.f32.vlgmr.msra.gmra.mxu1 %vm402_vm1, %v4579_v47  ;;  %v1996_v62 = vrot.slane %v4579_v47, 4 }
0x1181   :  { %2168 = vmatpush1.msra.mxu1 %v4391_v9  ;;  %2215 = vmatprep.mubr.f32.mxu1 %v3675_v0 }
0x1182   :  { %1997 = vrot.lane.b32.xlu0 %v1996_v62, %s3668_s22  ;;  %2169 = vmatprep.subr.mxu1 %v4397_v10 }
0x1183   :  { %2170 = vmatpush1.msra.mxu1 %v4404_v40 }
0x1184   :  { %2171 = vmatprep.subr.mxu1 %v4410_v42 }
0x1185   :  { %2172 = vmatpush1.msra.mxu1 %v4417_v19 }
0x1186   :  { %2173 = vmatprep.subr.mxu1 %v4423_v11 }
0x1187   :  { %2174 = vmatpush1.msra.mxu1 %v4430_v3 }
0x1188   :  { %2175 = vmatprep.subr.mxu1 %v4436_v12 }
0x1189   :  { %2176 = vmatpush1.msra.mxu1 %v4443_v13 }
0x118a   :  { %2177 = vmatprep.subr.mxu1 %v4449_v14 }
0x118b   :  { %2178 = vmatpush1.msra.mxu1 %v4456_v29 }
0x118c   :  { %2179 = vmatprep.subr.mxu1 %v4462_v16 }
0x118d   :  { %2180 = vmatpush1.msra.mxu1 %v4468_v17 }
0x118e   :  { %2181 = vmatprep.subr.mxu1 %v4474_v23 }
0x118f   :  { %2182 = vmatpush1.msra.mxu1 %v4480_v24 }
0x1190   :  { %2436 = vmatprep.subr.mxu1 %v4385_v6 }
0x11e4   :  { %v1977_v25 = vpop.permute.xlu0 %1976 }
0x11f4   :  { %v1998_v33 = vpop.permute.xlu0 %1997 }
0x1240   :  { %v1948_v30 = vpop.f32.mrf.mxu1 }
0x1241   :  { %v1955_v35 = vrot.slane %v1948_v30, 4 }
0x1242   :  { %v1950_v2 = vpop.f32.mrf.mxu1 }
0x1243   :  { %v1959_v4 = vadd.f32 %v1955_v35, %v1876_v1  ;;  %v1956_v8 = vrot.slane %v1950_v2, 4 }
0x1245   :  { %v3207_v5 = vmul.f32 -1.442695, %v1959_v4  ;;  %v1960_v50 = vadd.f32 %v1956_v8, %v1877_v18 }
0x1247   :  { %3454 = vpow2.f32 %v3207_v5  ;;  %v3208_v21 = vmul.f32 -1.442695, %v1960_v50 }
0x1248   :  { %3456 = vtanh.f32 %v1960_v50 }
0x1254   :  { %v3455_v36 = vpop.eup %3454 }
0x1255   :  { %v1964_v49 = vadd.f32 1.0, %v3455_v36  ;;  %v3457_v51 = vpop.eup %3456 }
0x1257   :  { %3458 = vrcp.f32 %v1964_v49 }
0x1258   :  { %3460 = vpow2.f32 %v3208_v21 }
0x1264   :  { %v3459_v54 = vpop.eup %3458 }
0x1265   :  { %v1980_v20 = vmul.f32 %v3459_v54, %v3457_v51  ;;  %v3461_v22 = vpop.eup %3460  ;;  %v1979_v46 = vmul.f32 %v3459_v54, %v1977_v25 }
0x1266   :  { %v1971_v7 = vadd.f32 1.0, %v3461_v22 }
0x1267   :  { %1982 = vrot.lane.b32.xlu1 %v1980_v20, %s3668_s22 }
0x1268   :  { %3462 = vrcp.f32 %v1971_v7 }
0x1275   :  { %v3463_v32 = vpop.eup %3462 }
0x12d9   :  { %v1983_v26 = vpop.permute.xlu1 %1982 }
0x12da   :  { %v1985_v27 = vadd.f32 %v1983_v26, %v1979_v46 }
0x12dc   :  { %3464 = vtanh.f32 %v1985_v27  ;;  %v2008_v28 = vsub.f32 %v1985_v27, %v1977_v25  ;;  %v4646_v25 = vld [vmem:[%s4927_s21 + $0x8] sm:$0xf] }
0x12de   :  { %v2010_v31 = vrot.slane %v2008_v28, 4 }
0x12e0   :  { %2011 = vrot.lane.b32.xlu0 %v2010_v31, %s3668_s22 }
0x12e9   :  { %v3465_v55 = vpop.eup %3464 }
0x12ea   :  { %v4604_v34 = vmul.f32 %v3465_v55, %v3463_v32 }
0x12ec   :  { %v2000_v37 = vsub.f32 %v4604_v34, %v1998_v33 }
0x12ee   :  { %v2002_v53 = vrot.slane %v2000_v37, 4 }
0x12f0   :  { %2003 = vrot.lane.b32.xlu1 %v2002_v53, %s3668_s22  ;;  %v2145_v53 = vld [vmem:[#allocation2 + $0x18] sm:$0xf0] }
0x1352   :  { %v2012_v39 = vpop.permute.xlu0 %2011 }
0x1353   :  { %v2014_v41 = vmul.f32 %v2012_v39, %v4611_v38 }
0x1355   :  { %v2015_v52 = vadd.f32 %v2014_v41, %v4573_v45 }
0x1357   :  { %2109 = vrot.lane.b32.xlu1 %v2015_v52, %s3668_s22 }
0x1362   :  { %v2004_v56 = vpop.permute.xlu1 %2003 }
0x1363   :  { %v2006_v48 = vmul.f32 %v2004_v56, %v4611_v38 }
0x1365   :  { %v2007_v57 = vadd.f32 %v2006_v48, %v4579_v47  ;;  %v2146_v48 = vld [vmem:[#allocation2 + $0x10] sm:$0xf0] }
0x1367   :  { %2128 = vrot.lane.b32.xlu1 %v2007_v57, %s3668_s22  ;;  %3209 = vmatmul.mubr.msk.f32.vlgmr.msra.gmra.mxu0 %vm402_vm1, %v2007_v57 }
0x1368   :  { %2308 = vmatpush1.msra.mxu0 %v4391_v9  ;;  %2355 = vmatprep.mubr.f32.mxu0 %v3675_v0 }
0x1369   :  { %2309 = vmatprep.subr.mxu0 %v4397_v10 }
0x136a   :  { %2310 = vmatpush1.msra.mxu0 %v4404_v40 }
0x136b   :  { %2311 = vmatprep.subr.mxu0 %v4410_v42 }
0x136c   :  { %2312 = vmatpush1.msra.mxu0 %v4417_v19 }
0x136d   :  { %2313 = vmatprep.subr.mxu0 %v4423_v11 }
0x136e   :  { %2314 = vmatpush1.msra.mxu0 %v4430_v3 }
0x136f   :  { %2315 = vmatprep.subr.mxu0 %v4436_v12 }
0x1370   :  { %2316 = vmatpush1.msra.mxu0 %v4443_v13 }
0x1371   :  { %2317 = vmatprep.subr.mxu0 %v4449_v14 }
0x1372   :  { %2318 = vmatpush1.msra.mxu0 %v4456_v29 }
0x1373   :  { %2319 = vmatprep.subr.mxu0 %v4462_v16 }
0x1374   :  { %2320 = vmatpush1.msra.mxu0 %v4468_v17 }
0x1375   :  { %2321 = vmatprep.subr.mxu0 %v4474_v23 }
0x1376   :  { %2322 = vmatpush1.msra.mxu0 %v4480_v24 }
0x1377   :  { %2576 = vmatprep.subr.mxu0 %v4385_v6 }
0x13c9   :  { %v2110_v2 = vpop.permute.xlu1 %2109 }
0x13d9   :  { %v2129_v21 = vpop.permute.xlu1 %2128 }
0x1427   :  { %v2088_v63 = vpop.f32.mrf.mxu0 }
0x1428   :  { %v2093_v15 = vadd.f32 %v2088_v63, %v2016_v59 }
0x1429   :  { %v2090_v61 = vpop.f32.mrf.mxu0 }
0x142a   :  { %v3210_v45 = vmul.f32 -1.442695, %v2093_v15  ;;  %v2094_v44 = vadd.f32 %v2090_v61, %v2017_v43 }
0x142c   :  { %3466 = vpow2.f32 %v3210_v45  ;;  %v3211_v4 = vmul.f32 -1.442695, %v2094_v44 }
0x142d   :  { %3468 = vtanh.f32 %v2094_v44 }
0x1439   :  { %v3467_v47 = vpop.eup %3466 }
0x143a   :  { %v2098_v62 = vadd.f32 1.0, %v3467_v47  ;;  %v3469_v30 = vpop.eup %3468 }
0x143c   :  { %3470 = vrcp.f32 %v2098_v62 }
0x143d   :  { %3472 = vpow2.f32 %v3211_v4 }
0x1449   :  { %v3471_v35 = vpop.eup %3470 }
0x144a   :  { %v2113_v1 = vmul.f32 %v3471_v35, %v3469_v30  ;;  %v3473_v5 = vpop.eup %3472  ;;  %v2112_v18 = vmul.f32 %v3471_v35, %v2110_v2 }
0x144b   :  { %v2105_v8 = vadd.f32 1.0, %v3473_v5 }
0x144c   :  { %2115 = vrot.lane.b32.xlu0 %v2113_v1, %s3668_s22 }
0x144d   :  { %3474 = vrcp.f32 %v2105_v8 }
0x145a   :  { %v3475_v51 = vpop.eup %3474 }
0x14be   :  { %v2116_v50 = vpop.permute.xlu0 %2115 }
0x14bf   :  { %v2118_v36 = vadd.f32 %v2116_v50, %v2112_v18 }
0x14c1   :  { %3476 = vtanh.f32 %v2118_v36  ;;  %v2138_v49 = vsub.f32 %v2118_v36, %v2110_v2 }
0x14c3   :  { %2140 = vrot.lane.b32.xlu1 %v2138_v49, %s3668_s22  ;;  %v4686_v49 = vld [vmem:[%s4927_s21 + $0xc] sm:$0xf] }
0x14ce   :  { %v3477_v54 = vpop.eup %3476 }
0x14cf   :  { %v4639_v20 = vmul.f32 %v3477_v54, %v3475_v51 }
0x14d1   :  { %v2131_v22 = vsub.f32 %v4639_v20, %v2129_v21 }
0x14d3   :  { %2133 = vrot.lane.b32.xlu0 %v2131_v22, %s3668_s22 }
0x1535   :  { %v2141_v7 = vpop.permute.xlu1 %2140 }
0x1536   :  { %v2143_v46 = vmul.f32 %v2141_v7, %v4646_v25 }
0x1538   :  { %v4649_v26 = vadd.f32 %v2143_v46, %v2015_v52 }
0x153a   :  { %v2244_v27 = vrot.slane %v4649_v26, 4 }
0x153c   :  { %2245 = vrot.lane.b32.xlu0 %v2244_v27, %s3668_s22 }
0x1545   :  { %v2134_v28 = vpop.permute.xlu0 %2133 }
0x1546   :  { %v2136_v31 = vmul.f32 %v2134_v28, %v4646_v25 }
0x1548   :  { %v4654_v32 = vadd.f32 %v2136_v31, %v2007_v57 }
0x154a   :  { %3212 = vmatmul.mubr.msk.f32.vlgmr.msra.gmra.mxu1 %vm402_vm1, %v4654_v32  ;;  %v2265_v55 = vrot.slane %v4654_v32, 4 }
0x154b   :  { %2437 = vmatpush1.msra.mxu1 %v4391_v9  ;;  %2484 = vmatprep.mubr.f32.mxu1 %v3675_v0 }
0x154c   :  { %2266 = vrot.lane.b32.xlu0 %v2265_v55, %s3668_s22  ;;  %2438 = vmatprep.subr.mxu1 %v4397_v10  ;;  %v2286_v55 = vld [vmem:[#allocation2 + $0x20] sm:$0xf] }
0x154d   :  { %2439 = vmatpush1.msra.mxu1 %v4404_v40 }
0x154e   :  { %2440 = vmatprep.subr.mxu1 %v4410_v42 }
0x154f   :  { %2441 = vmatpush1.msra.mxu1 %v4417_v19 }
0x1550   :  { %2442 = vmatprep.subr.mxu1 %v4423_v11 }
0x1551   :  { %2443 = vmatpush1.msra.mxu1 %v4430_v3 }
0x1552   :  { %2444 = vmatprep.subr.mxu1 %v4436_v12 }
0x1553   :  { %2445 = vmatpush1.msra.mxu1 %v4443_v13 }
0x1554   :  { %2446 = vmatprep.subr.mxu1 %v4449_v14 }
0x1555   :  { %2447 = vmatpush1.msra.mxu1 %v4456_v29 }
0x1556   :  { %2448 = vmatprep.subr.mxu1 %v4462_v16 }
0x1557   :  { %2449 = vmatpush1.msra.mxu1 %v4468_v17 }
0x1558   :  { %2450 = vmatprep.subr.mxu1 %v4474_v23 }
0x1559   :  { %2451 = vmatpush1.msra.mxu1 %v4480_v24 }
0x155a   :  { %2705 = vmatprep.subr.mxu1 %v4385_v6 }
0x15ae   :  { %v2246_v44 = vpop.permute.xlu0 %2245 }
0x15be   :  { %v2267_v18 = vpop.permute.xlu0 %2266 }
0x160a   :  { %v2217_v33 = vpop.f32.mrf.mxu1 }
0x160b   :  { %v2224_v37 = vrot.slane %v2217_v33, 4 }
0x160c   :  { %v2219_v52 = vpop.f32.mrf.mxu1 }
0x160d   :  { %v2228_v39 = vadd.f32 %v2224_v37, %v2145_v53  ;;  %v2225_v56 = vrot.slane %v2219_v52, 4 }
0x160f   :  { %v3213_v41 = vmul.f32 -1.442695, %v2228_v39  ;;  %v2229_v57 = vadd.f32 %v2225_v56, %v2146_v48 }
0x1611   :  { %3478 = vpow2.f32 %v3213_v41  ;;  %v3214_v6 = vmul.f32 -1.442695, %v2229_v57 }
0x1612   :  { %3480 = vtanh.f32 %v2229_v57 }
0x161e   :  { %v3479_v59 = vpop.eup %3478 }
0x161f   :  { %v2233_v63 = vadd.f32 1.0, %v3479_v59  ;;  %v3481_v15 = vpop.eup %3480 }
0x1621   :  { %3482 = vrcp.f32 %v2233_v63 }
0x1622   :  { %3484 = vpow2.f32 %v3214_v6 }
0x162e   :  { %v3483_v45 = vpop.eup %3482 }
0x162f   :  { %v2249_v61 = vmul.f32 %v3483_v45, %v3481_v15  ;;  %v3485_v43 = vpop.eup %3484  ;;  %v2248_v62 = vmul.f32 %v3483_v45, %v2246_v44 }
0x1630   :  { %v2240_v47 = vadd.f32 1.0, %v3485_v43 }
0x1631   :  { %2251 = vrot.lane.b32.xlu1 %v2249_v61, %s3668_s22 }
0x1632   :  { %3486 = vrcp.f32 %v2240_v47 }
0x163f   :  { %v3487_v5 = vpop.eup %3486 }
0x16a3   :  { %v2252_v30 = vpop.permute.xlu1 %2251 }
0x16a4   :  { %v2254_v35 = vadd.f32 %v2252_v30, %v2248_v62  ;;  %v4720_v30 = vld [vmem:[%s4927_s21 + $0x10] sm:$0xf] }
0x16a6   :  { %3488 = vtanh.f32 %v2254_v35  ;;  %v2277_v1 = vsub.f32 %v2254_v35, %v2246_v44 }
0x16a8   :  { %v2279_v4 = vrot.slane %v2277_v1, 4 }
0x16aa   :  { %2280 = vrot.lane.b32.xlu0 %v2279_v4, %s3668_s22 }
0x16b3   :  { %v3489_v2 = vpop.eup %3488 }
0x16b4   :  { %v4679_v8 = vmul.f32 %v3489_v2, %v3487_v5 }
0x16b6   :  { %v2269_v50 = vsub.f32 %v4679_v8, %v2267_v18 }
0x16b8   :  { %v2271_v36 = vrot.slane %v2269_v50, 4 }
0x16ba   :  { %2272 = vrot.lane.b32.xlu1 %v2271_v36, %s3668_s22 }
0x171c   :  { %v2281_v51 = vpop.permute.xlu0 %2280 }
0x171d   :  { %v2283_v54 = vmul.f32 %v2281_v51, %v4686_v49 }
0x171f   :  { %v2284_v21 = vadd.f32 %v2283_v54, %v4649_v26  ;;  %v2285_v26 = vld [vmem:[#allocation2 + $0x8] sm:$0xf] }
0x1721   :  { %2378 = vrot.lane.b32.xlu1 %v2284_v21, %s3668_s22 }
0x172c   :  { %v2273_v22 = vpop.permute.xlu1 %2272 }
0x172d   :  { %v2275_v7 = vmul.f32 %v2273_v22, %v4686_v49 }
0x172f   :  { %v2276_v46 = vadd.f32 %v2275_v7, %v4654_v32 }
0x1731   :  { %2397 = vrot.lane.b32.xlu1 %v2276_v46, %s3668_s22  ;;  %3215 = vmatmul.mubr.msk.f32.vlgmr.msra.gmra.mxu0 %vm402_vm1, %v2276_v46 }
0x1732   :  { %2577 = vmatpush1.msra.mxu0 %v4391_v9  ;;  %2624 = vmatprep.mubr.f32.mxu0 %v3675_v0 }
0x1733   :  { %2578 = vmatprep.subr.mxu0 %v4397_v10 }
0x1734   :  { %2579 = vmatpush1.msra.mxu0 %v4404_v40 }
0x1735   :  { %2580 = vmatprep.subr.mxu0 %v4410_v42 }
0x1736   :  { %2581 = vmatpush1.msra.mxu0 %v4417_v19 }
0x1737   :  { %2582 = vmatprep.subr.mxu0 %v4423_v11 }
0x1738   :  { %2583 = vmatpush1.msra.mxu0 %v4430_v3 }
0x1739   :  { %2584 = vmatprep.subr.mxu0 %v4436_v12 }
0x173a   :  { %2585 = vmatpush1.msra.mxu0 %v4443_v13 }
0x173b   :  { %2586 = vmatprep.subr.mxu0 %v4449_v14 }
0x173c   :  { %2587 = vmatpush1.msra.mxu0 %v4456_v29 }
0x173d   :  { %2588 = vmatprep.subr.mxu0 %v4462_v16 }
0x173e   :  { %2589 = vmatpush1.msra.mxu0 %v4468_v17 }
0x173f   :  { %2590 = vmatprep.subr.mxu0 %v4474_v23 }
0x1740   :  { %2591 = vmatpush1.msra.mxu0 %v4480_v24 }
0x1793   :  { %v2379_v57 = vpop.permute.xlu1 %2378 }
0x17a3   :  { %v2398_v47 = vpop.permute.xlu1 %2397 }
0x17f1   :  { %v2357_v27 = vpop.f32.mrf.mxu0 }
0x17f2   :  { %v2362_v28 = vadd.f32 %v2357_v27, %v2285_v26 }
0x17f3   :  { %v2359_v32 = vpop.f32.mrf.mxu0 }
0x17f4   :  { %v3216_v31 = vmul.f32 -1.442695, %v2362_v28  ;;  %v2363_v33 = vadd.f32 %v2359_v32, %v2286_v55 }
0x17f6   :  { %3490 = vpow2.f32 %v3216_v31  ;;  %v3217_v56 = vmul.f32 -1.442695, %v2363_v33 }
0x17f7   :  { %3492 = vtanh.f32 %v2363_v33 }
0x1803   :  { %v3491_v37 = vpop.eup %3490 }
0x1804   :  { %v2367_v53 = vadd.f32 1.0, %v3491_v37  ;;  %v3493_v39 = vpop.eup %3492 }
0x1806   :  { %3494 = vrcp.f32 %v2367_v53  ;;  %v4759_v53 = vld [vmem:[%s4927_s21 + $0x14] sm:$0xf] }
0x1807   :  { %3496 = vpow2.f32 %v3217_v56 }
0x1813   :  { %v3495_v41 = vpop.eup %3494 }
0x1814   :  { %v2382_v52 = vmul.f32 %v3495_v41, %v3493_v39  ;;  %v3497_v48 = vpop.eup %3496  ;;  %v2381_v63 = vmul.f32 %v3495_v41, %v2379_v57 }
0x1815   :  { %v2374_v59 = vadd.f32 1.0, %v3497_v48 }
0x1816   :  { %2384 = vrot.lane.b32.xlu0 %v2382_v52, %s3668_s22 }
0x1817   :  { %3498 = vrcp.f32 %v2374_v59  ;;  %v2554_v59 = vld [vmem:[#allocation2 + $0x28] sm:$0xf] }
0x1824   :  { %v3499_v6 = vpop.eup %3498 }
0x1888   :  { %v2385_v15 = vpop.permute.xlu0 %2384 }
0x1889   :  { %v2387_v45 = vadd.f32 %v2385_v15, %v2381_v63 }
0x188b   :  { %3500 = vtanh.f32 %v2387_v45  ;;  %v2407_v61 = vsub.f32 %v2387_v45, %v2379_v57 }
0x188d   :  { %2409 = vrot.lane.b32.xlu1 %v2407_v61, %s3668_s22 }
0x1898   :  { %v3501_v43 = vpop.eup %3500 }
0x1899   :  { %v4713_v44 = vmul.f32 %v3501_v43, %v3499_v6  ;;  %v2555_v6 = vld [vmem:[#allocation2 + $0x38] sm:$0xf] }
0x189b   :  { %v2400_v62 = vsub.f32 %v4713_v44, %v2398_v47 }
0x189d   :  { %2402 = vrot.lane.b32.xlu0 %v2400_v62, %s3668_s22 }
0x18ff   :  { %v2410_v35 = vpop.permute.xlu1 %2409 }
0x1900   :  { %v2412_v1 = vmul.f32 %v2410_v35, %v4720_v30 }
0x1902   :  { %v4723_v4 = vadd.f32 %v2412_v1, %v2284_v21 }
0x1904   :  { %v2513_v5 = vrot.slane %v4723_v4, 4 }
0x1906   :  { %2514 = vrot.lane.b32.xlu0 %v2513_v5, %s3668_s22 }
0x190f   :  { %v2403_v2 = vpop.permute.xlu0 %2402 }
0x1910   :  { %v2405_v18 = vmul.f32 %v2403_v2, %v4720_v30 }
0x1912   :  { %v4728_v50 = vadd.f32 %v2405_v18, %v2276_v46 }
0x1914   :  { %3218 = vmatmul.mubr.msk.f32.vlgmr.msra.gmra.mxu1 %vm402_vm1, %v4728_v50  ;;  %v2534_v36 = vrot.slane %v4728_v50, 4 }
0x1915   :  { %2706 = vmatpush1.msra.mxu1 %v4391_v9  ;;  %2753 = vmatprep.mubr.f32.mxu1 %v3675_v0 }
0x1916   :  { %2535 = vrot.lane.b32.xlu0 %v2534_v36, %s3668_s22  ;;  %2707 = vmatprep.subr.mxu1 %v4397_v10 }
0x1917   :  { %2708 = vmatpush1.msra.mxu1 %v4404_v40  ;;  %v2414_v40 = vld [vmem:[#allocation2 + $0x8] sm:$0xf0] }
0x1918   :  { %2709 = vmatprep.subr.mxu1 %v4410_v42 }
0x1919   :  { %2710 = vmatpush1.msra.mxu1 %v4417_v19 }
0x191a   :  { %2711 = vmatprep.subr.mxu1 %v4423_v11 }
0x191b   :  { %2712 = vmatpush1.msra.mxu1 %v4430_v3 }
0x191c   :  { %2713 = vmatprep.subr.mxu1 %v4436_v12  ;;  %v2415_v12 = vld [vmem:[#allocation2 + $0x20] sm:$0xf0] }
0x191d   :  { %2714 = vmatpush1.msra.mxu1 %v4443_v13 }
0x191e   :  { %2715 = vmatprep.subr.mxu1 %v4449_v14 }
0x191f   :  { %2716 = vmatpush1.msra.mxu1 %v4456_v29 }
0x1920   :  { %2717 = vmatprep.subr.mxu1 %v4462_v16 }
0x1921   :  { %2718 = vmatpush1.msra.mxu1 %v4468_v17 }
0x1922   :  { %2719 = vmatprep.subr.mxu1 %v4474_v23 }
0x1923   :  { %2720 = vmatpush1.msra.mxu1 %v4480_v24 }
0x1978   :  { %v2515_v54 = vpop.permute.xlu0 %2514 }
0x1988   :  { %v2536_v55 = vpop.permute.xlu0 %2535 }
0x19d4   :  { %v2486_v9 = vpop.f32.mrf.mxu1 }
0x19d5   :  { %v2493_v10 = vrot.slane %v2486_v9, 4 }
0x19d6   :  { %v2488_v11 = vpop.f32.mrf.mxu1 }
0x19d7   :  { %v2497_v42 = vadd.f32 %v2493_v10, %v2414_v40  ;;  %v2494_v3 = vrot.slane %v2488_v11, 4 }
0x19d9   :  { %v3219_v19 = vmul.f32 -1.442695, %v2497_v42  ;;  %v2498_v13 = vadd.f32 %v2494_v3, %v2415_v12 }
0x19db   :  { %3502 = vpow2.f32 %v3219_v19  ;;  %v3220_v23 = vmul.f32 -1.442695, %v2498_v13 }
0x19dc   :  { %3504 = vtanh.f32 %v2498_v13  ;;  %v2556_v13 = vld [vmem:[%s4927_s21 + $0x18] sm:$0xf] }
0x19e8   :  { %v3503_v14 = vpop.eup %3502 }
0x19e9   :  { %v2502_v29 = vadd.f32 1.0, %v3503_v14  ;;  %v3505_v16 = vpop.eup %3504 }
0x19eb   :  { %3506 = vrcp.f32 %v2502_v29 }
0x19ec   :  { %3508 = vpow2.f32 %v3220_v23 }
0x19f8   :  { %v3507_v17 = vpop.eup %3506 }
0x19f9   :  { %v2518_v51 = vmul.f32 %v3507_v17, %v3505_v16  ;;  %v3509_v24 = vpop.eup %3508  ;;  %v2517_v22 = vmul.f32 %v3507_v17, %v2515_v54 }
0x19fa   :  { %v2509_v21 = vadd.f32 1.0, %v3509_v24 }
0x19fb   :  { %2520 = vrot.lane.b32.xlu1 %v2518_v51, %s3668_s22 }
0x19fc   :  { %3510 = vrcp.f32 %v2509_v21 }
0x1a09   :  { %v3511_v28 = vpop.eup %3510 }
0x1a6d   :  { %v2521_v7 = vpop.permute.xlu1 %2520 }
0x1a6e   :  { %v2523_v46 = vadd.f32 %v2521_v7, %v2517_v22 }
0x1a70   :  { %3512 = vtanh.f32 %v2523_v46  ;;  %v2546_v26 = vsub.f32 %v2523_v46, %v2515_v54 }
0x1a72   :  { %v2548_v27 = vrot.slane %v2546_v26, 4 }
0x1a74   :  { %2549 = vrot.lane.b32.xlu0 %v2548_v27, %s3668_s22 }
0x1a7d   :  { %v3513_v31 = vpop.eup %3512 }
0x1a7e   :  { %v4752_v32 = vmul.f32 %v3513_v31, %v3511_v28  ;;  %v2683_v28 = vld [vmem:[#allocation2 + $0x28] sm:$0xf0] }
0x1a80   :  { %v2538_v33 = vsub.f32 %v4752_v32, %v2536_v55 }
0x1a82   :  { %v2540_v37 = vrot.slane %v2538_v33, 4 }
0x1a84   :  { %2541 = vrot.lane.b32.xlu1 %v2540_v37, %s3668_s22 }
0x1ae6   :  { %v2550_v39 = vpop.permute.xlu0 %2549 }
0x1ae7   :  { %v2552_v41 = vmul.f32 %v2550_v39, %v4759_v53 }
0x1ae9   :  { %v2553_v52 = vadd.f32 %v2552_v41, %v4723_v4 }
0x1aeb   :  { %2647 = vrot.lane.b32.xlu1 %v2553_v52, %s3668_s22 }
0x1af6   :  { %v2542_v56 = vpop.permute.xlu1 %2541 }
0x1af7   :  { %v2544_v48 = vmul.f32 %v2542_v56, %v4759_v53 }
0x1af9   :  { %v2545_v57 = vadd.f32 %v2544_v48, %v4728_v50 }
0x1afb   :  { %2666 = vrot.lane.b32.xlu1 %v2545_v57, %s3668_s22  ;;  %3221 = vmatmul.mubr.msk.f32.vlgmr.msra.gmra.mxu0 %vm402_vm1, %v2545_v57 }
0x1b5d   :  { %v2648_v18 = vpop.permute.xlu1 %2647 }
0x1b6d   :  { %v2667_v3 = vpop.permute.xlu1 %2666 }
0x1bbb   :  { %v2626_v63 = vpop.f32.mrf.mxu0 }
0x1bbc   :  { %v2631_v15 = vadd.f32 %v2626_v63, %v2554_v59  ;;  %v2527_v59 = vrot.slane %v4752_v32, 4  ;;  %v2826_v63 = vld [vmem:[#allocation10 + $0x38] sm:$0xff] }
0x1bbd   :  { %v2628_v61 = vpop.f32.mrf.mxu0  ;;  %3271 = vmatprep.subr.mxu0 %v2826_v63 }
0x1bbe   :  { %v3222_v45 = vmul.f32 -1.442695, %v2631_v15  ;;  %v2632_v43 = vadd.f32 %v2628_v61, %v2555_v6  ;;  %v2825_v15 = vld [vmem:[#allocation10 + $0x30] sm:$0xff]  ;;  %3272 = vmatpush3.msra.mxu0 %v2826_v63  ;;  %v2824_v61 = vld [vmem:[#allocation10 + $0x28] sm:$0xff] }
0x1bbf   :  { %3273 = vmatprep.subr.mxu0 %v2825_v15 }
0x1bc0   :  { %3514 = vpow2.f32 %v3222_v45  ;;  %v3223_v5 = vmul.f32 -1.442695, %v2632_v43  ;;  %v2818_v45 = vld [vmem:[%s4910_s13 + $0x38] sm:$0xff]  ;;  %3274 = vmatpush3.msra.mxu0 %v2825_v15  ;;  %v3054_v15 = vld [vmem:[%s4913_s16 + $0x8] sm:$0xff] }
0x1bc1   :  { %3516 = vtanh.f32 %v2632_v43  ;;  %3293 = vmatprep.subr.mxu1 %v2818_v45  ;;  %3275 = vmatprep.subr.mxu0 %v2824_v61 }
0x1bc2   :  { %3276 = vmatpush3.msra.mxu0 %v2824_v61  ;;  %v3053_v61 = vld [vmem:[%s4913_s16] sm:$0xff] }
0x1bcd   :  { %v3515_v47 = vpop.eup %3514 }
0x1bce   :  { %v2636_v62 = vadd.f32 1.0, %v3515_v47  ;;  %v3517_v35 = vpop.eup %3516 }
0x1bd0   :  { %3518 = vrcp.f32 %v2636_v62 }
0x1bd1   :  { %3520 = vpow2.f32 %v3223_v5  ;;  %v2823_v5 = vld [vmem:[#allocation10 + $0x20] sm:$0xff] }
0x1bd2   :  { %3277 = vmatprep.subr.mxu0 %v2823_v5 }
0x1bd3   :  { %3278 = vmatpush3.msra.mxu0 %v2823_v5 }
0x1bdd   :  { %v3519_v1 = vpop.eup %3518 }
0x1bde   :  { %v2651_v4 = vmul.f32 %v3519_v1, %v3517_v35  ;;  %v3521_v2 = vpop.eup %3520  ;;  %v2650_v36 = vmul.f32 %v3519_v1, %v2648_v18 }
0x1bdf   :  { %v2643_v50 = vadd.f32 1.0, %v3521_v2  ;;  %v2817_v2 = vld [vmem:[%s4910_s13 + $0x30] sm:$0xff] }
0x1be0   :  { %2653 = vrot.lane.b32.xlu0 %v2651_v4, %s3668_s22 }
0x1be1   :  { %3522 = vrcp.f32 %v2643_v50  ;;  %v2822_v50 = vld [vmem:[#allocation10 + $0x18] sm:$0xff] }
0x1be2   :  { %3279 = vmatprep.subr.mxu0 %v2822_v50 }
0x1be3   :  { %3280 = vmatpush3.msra.mxu0 %v2822_v50 }
0x1bee   :  { %v3523_v42 = vpop.eup %3522 }
0x1c52   :  { %v2654_v9 = vpop.permute.xlu0 %2653 }
0x1c53   :  { %v2656_v10 = vadd.f32 %v2654_v9, %v2650_v36  ;;  %v2821_v36 = vld [vmem:[#allocation10 + $0x10] sm:$0xff] }
0x1c54   :  { %3281 = vmatprep.subr.mxu0 %v2821_v36 }
0x1c55   :  { %3524 = vtanh.f32 %v2656_v10  ;;  %v2676_v40 = vsub.f32 %v2656_v10, %v2648_v18  ;;  %3282 = vmatpush3.msra.mxu0 %v2821_v36  ;;  %v2820_v10 = vld [vmem:[#allocation10 + $0x8] sm:$0xff] }
0x1c56   :  { %3283 = vmatprep.subr.mxu0 %v2820_v10 }
0x1c57   :  { %2678 = vrot.lane.b32.xlu1 %v2676_v40, %s3668_s22  ;;  %v2814_v40 = vld [vmem:[%s4910_s13 + $0x18] sm:$0xff]  ;;  %3284 = vmatpush3.msra.mxu0 %v2820_v10  ;;  %v3236_v10 = vld [vmem:[#allocation13] ss:$0 sm:$0xff] }
0x1c62   :  { %v3525_v19 = vpop.eup %3524 }
0x1c63   :  { %v2658_v11 = vmul.f32 %v3525_v19, %v3523_v42  ;;  %v2819_v19 = vld [vmem:[#allocation10] sm:$0xff] }
0x1c64   :  { %3285 = vmatprep.subr.mxu0 %v2819_v19 }
0x1c65   :  { %v2669_v12 = vsub.f32 %v2658_v11, %v2667_v3  ;;  %3286 = vmatpush3.msra.mxu0 %v2819_v19 }
0x1c66   :  { %3315 = vmatprep.subr.mxu0 %v3675_v0 }
0x1c67   :  { %2671 = vrot.lane.b32.xlu0 %v2669_v12, %s3668_s22 }
0x1cc9   :  { %v2679_v14 = vpop.permute.xlu1 %2678 }
0x1cca   :  { %v2681_v29 = vmul.f32 %v2679_v14, %v2556_v13 }
0x1ccc   :  { %v2682_v16 = vadd.f32 %v2681_v29, %v2553_v52  ;;  %v2811_v29 = vld [vmem:[%s4910_s13] sm:$0xff] }
0x1cce   :  { %v2782_v17 = vrot.slane %v2682_v16, 4  ;;  %v2258_v16 = vrot.slane %v4679_v8, 4 }
0x1cd0   :  { %2783 = vrot.lane.b32.xlu0 %v2782_v17, %s3668_s22  ;;  %v2685_v17 = vld [vmem:[%s4927_s21 + $0x1c] sm:$0xf] }
0x1cd4   :  { %1853 = vrot.lane.b32.xlu0 %v4562_v58, %s3668_s22 }
0x1cd8   :  { %2660 = vrot.lane.b32.xlu0 %v2658_v11, %s3668_s22  ;;  %v2813_v11 = vld [vmem:[%s4910_s13 + $0x10] sm:$0xff] }
0x1cd9   :  { %v2672_v51 = vpop.permute.xlu0 %2671 }
0x1cda   :  { %v2674_v23 = vmul.f32 %v2672_v51, %v2556_v13 }
0x1cdc   :  { %v2675_v24 = vadd.f32 %v2674_v23, %v2545_v57  ;;  %2391 = vrot.lane.b32.xlu0 %v4713_v44, %s3668_s22  ;;  %v1989_v57 = vrot.slane %v4604_v34, 4 }
0x1cde   :  { %3224 = vmatmul.mubr.msk.f32.vlgmr.msra.gmra.mxu1 %vm402_vm1, %v2675_v24 }
0x1cdf   :  { %3294 = vmatpush3.msra.mxu1 %v2818_v45 }
0x1ce0   :  { %2122 = vrot.lane.b32.xlu0 %v4639_v20, %s3668_s22  ;;  %3295 = vmatprep.subr.mxu1 %v2817_v2 }
0x1ce1   :  { %3296 = vmatpush3.msra.mxu1 %v2817_v2 }
0x1d42   :  { %v2784_v54 = vpop.permute.xlu0 %2783 }
0x1d46   :  { %v1854_v21 = vpop.permute.xlu0 %1853 }
0x1d47   :  { %v1856_v22 = vmul.f32 %v1854_v21, %v4569_v60 }
0x1d49   :  { %1857 = vst.msk [vmem:[#allocation3] sm:$0xf] %vm510_vm2, %v1856_v22  ;;  %1858 = vst.msk [vmem:[#allocation4 + $0x1c] sm:$0xf] %vm510_vm2, %v1856_v22 }
0x1d4a   :  { %v2661_v58 = vpop.permute.xlu0 %2660 }
0x1d4b   :  { %v2663_v7 = vmul.f32 %v2661_v58, %v2556_v13  ;;  %v2812_v13 = vld [vmem:[%s4910_s13 + $0x8] sm:$0xff] }
0x1d4d   :  { %2664 = vst.msk [vmem:[#allocation3 + $0x18] sm:$0xf] %vm510_vm2, %v2663_v7  ;;  %2665 = vst.msk [vmem:[#allocation4 + $0x4] sm:$0xf] %vm510_vm2, %v2663_v7  ;;  %v3060_v7 = vld [vmem:[%s4913_s16 + $0x38] sm:$0xff] }
0x1d4e   :  { %v2392_v44 = vpop.permute.xlu0 %2391 }
0x1d4f   :  { %v2394_v46 = vmul.f32 %v2392_v44, %v4720_v30  ;;  %v2684_v30 = vld [vmem:[#allocation2 + $0x38] sm:$0xf0] }
0x1d50   :  { %v3036_v8 = vld [vmem:[#allocation3] sm:$0xf] }
0x1d51   :  { %2395 = vst.msk [vmem:[#allocation3 + $0x10] sm:$0xf] %vm510_vm2, %v2394_v46  ;;  %2396 = vst.msk [vmem:[#allocation4 + $0xc] sm:$0xf] %vm510_vm2, %v2394_v46 }
0x1d52   :  { %v2123_v20 = vpop.permute.xlu0 %2122 }
0x1d53   :  { %v2125_v60 = vmul.f32 %v2123_v20, %v4646_v25 }
0x1d55   :  { %2126 = vst.msk [vmem:[#allocation3 + $0x8] sm:$0xf] %vm510_vm2, %v2125_v60  ;;  %2127 = vst.msk [vmem:[#allocation4 + $0x14] sm:$0xf] %vm510_vm2, %v2125_v60 }
0x1d5c   :  { %v3040_v46 = vld [vmem:[#allocation3 + $0x8] sm:$0xf] }
0x1d9e   :  { %v2755_v26 = vpop.f32.mrf.mxu1 }
0x1d9f   :  { %v2762_v27 = vrot.slane %v2755_v26, 4 }
0x1da0   :  { %v2757_v33 = vpop.f32.mrf.mxu1 }
0x1da1   :  { %v2766_v31 = vadd.f32 %v2762_v27, %v2683_v28  ;;  %v2763_v37 = vrot.slane %v2757_v33, 4  ;;  %v3058_v28 = vld [vmem:[%s4913_s16 + $0x28] sm:$0xff] }
0x1da3   :  { %v3225_v55 = vmul.f32 -1.442695, %v2766_v31  ;;  %v2767_v39 = vadd.f32 %v2763_v37, %v2684_v30  ;;  %v3044_v37 = vld [vmem:[#allocation3 + $0x10] sm:$0xf]  ;;  %v3057_v30 = vld [vmem:[%s4913_s16 + $0x20] sm:$0xff] }
0x1da5   :  { %3526 = vpow2.f32 %v3225_v55  ;;  %v3226_v34 = vmul.f32 -1.442695, %v2767_v39 }
0x1da6   :  { %3528 = vtanh.f32 %v2767_v39 }
0x1db2   :  { %v3527_v41 = vpop.eup %3526 }
0x1db3   :  { %v2771_v52 = vadd.f32 1.0, %v3527_v41  ;;  %v3529_v56 = vpop.eup %3528 }
0x1db5   :  { %3530 = vrcp.f32 %v2771_v52 }
0x1db6   :  { %3532 = vpow2.f32 %v3226_v34 }
0x1dc2   :  { %v3531_v25 = vpop.eup %3530 }
0x1dc3   :  { %v2787_v48 = vmul.f32 %v3531_v25, %v3529_v56  ;;  %v3533_v32 = vpop.eup %3532  ;;  %v2786_v43 = vmul.f32 %v3531_v25, %v2784_v54  ;;  %v3056_v56 = vld [vmem:[%s4913_s16 + $0x18] sm:$0xff] }
0x1dc4   :  { %v2778_v6 = vadd.f32 1.0, %v3533_v32 }
0x1dc5   :  { %2789 = vrot.lane.b32.xlu1 %v2787_v48, %s3668_s22  ;;  %v3048_v48 = vld [vmem:[#allocation3 + $0x18] sm:$0xf] }
0x1dc6   :  { %3534 = vrcp.f32 %v2778_v6 }
0x1dc9   :  { %1990 = vrot.lane.b32.xlu1 %v1989_v57, %s3668_s22  ;;  %v3055_v57 = vld [vmem:[%s4913_s16 + $0x10] sm:$0xff] }
0x1dcd   :  { %2528 = vrot.lane.b32.xlu1 %v2527_v59, %s3668_s22 }
0x1dd3   :  { %v3535_v42 = vpop.eup %3534 }
0x1e37   :  { %v2790_v47 = vpop.permute.xlu1 %2789 }
0x1e38   :  { %v2792_v62 = vadd.f32 %v2790_v47, %v2786_v43  ;;  %v3235_v47 = vld [vmem:[#allocation11] ss:$0 sm:$0xff] }
0x1e3a   :  { %3536 = vtanh.f32 %v2792_v62 }
0x1e3b   :  { %v1991_v35 = vpop.permute.xlu1 %1990 }
0x1e3c   :  { %v1993_v1 = vmul.f32 %v1991_v35, %v4611_v38  ;;  %v2816_v38 = vld [vmem:[%s4910_s13 + $0x28] sm:$0xff] }
0x1e3d   :  { %3297 = vmatprep.subr.mxu1 %v2816_v38 }
0x1e3e   :  { %1994 = vst.msk [vmem:[#allocation3 + $0x4] sm:$0xf] %vm510_vm2, %v1993_v1  ;;  %1995 = vst.msk [vmem:[#allocation4 + $0x18] sm:$0xf] %vm510_vm2, %v1993_v1  ;;  %3298 = vmatpush3.msra.mxu1 %v2816_v38 }
0x1e3f   :  { %v2529_v4 = vpop.permute.xlu1 %2528 }
0x1e40   :  { %v2531_v18 = vmul.f32 %v2529_v4, %v4759_v53  ;;  %v2815_v53 = vld [vmem:[%s4910_s13 + $0x20] sm:$0xff] }
0x1e41   :  { %3299 = vmatprep.subr.mxu1 %v2815_v53 }
0x1e42   :  { %2532 = vst.msk [vmem:[#allocation3 + $0x14] sm:$0xf] %vm510_vm2, %v2531_v18  ;;  %2533 = vst.msk [vmem:[#allocation4 + $0x8] sm:$0xf] %vm510_vm2, %v2531_v18  ;;  %3300 = vmatpush3.msra.mxu1 %v2815_v53 }
0x1e43   :  { %3301 = vmatprep.subr.mxu1 %v2814_v40 }
0x1e44   :  { %3302 = vmatpush3.msra.mxu1 %v2814_v40 }
0x1e45   :  { %v2803_v9 = vld [vmem:[#allocation3] sm:$0xff]  ;;  %3303 = vmatprep.subr.mxu1 %v2813_v11  ;;  %v2810_v55 = vld [vmem:[#allocation4 + $0x18] sm:$0xff] }
0x1e46   :  { %3309 = vmatprep.mubr.msk.f32.mxu1 %vm402_vm1, %v2803_v9  ;;  %3304 = vmatpush3.msra.mxu1 %v2813_v11  ;;  %v3038_v21 = vld [vmem:[#allocation3 + $0x4] sm:$0xf] }
0x1e47   :  { %v3537_v3 = vpop.eup %3536  ;;  %3305 = vmatprep.subr.mxu1 %v2812_v13  ;;  %v3039_v22 = vadd.f32 %v3038_v21, %v3036_v8 }
0x1e48   :  { %v2794_v12 = vmul.f32 %v3537_v3, %v3535_v42  ;;  %3306 = vmatpush3.msra.mxu1 %v2812_v13 }
0x1e49   :  { %3307 = vmatprep.subr.mxu1 %v2811_v29  ;;  %v2808_v44 = vld [vmem:[#allocation4 + $0x8] sm:$0xff]  ;;  %v3041_v20 = vadd.f32 %v3040_v46, %v3039_v22  ;;  %v2805_v33 = vld [vmem:[#allocation3 + $0x10] sm:$0xff] }
0x1e4a   :  { %v2796_v14 = vrot.slane %v2794_v12, 4  ;;  %3308 = vmatpush3.msra.mxu1 %v2811_v29  ;;  %v3046_v41 = vld [vmem:[#allocation3 + $0x14] sm:$0xf] }
0x1e4c   :  { %2797 = vrot.lane.b32.xlu1 %v2796_v14, %s3668_s22 }
0x1e50   :  { %2259 = vrot.lane.b32.xlu1 %v2258_v16, %s3668_s22 }
0x1ebe   :  { %v2798_v51 = vpop.permute.xlu1 %2797 }
0x1ebf   :  { %v2800_v23 = vmul.f32 %v2798_v51, %v2685_v17 }
0x1ec1   :  { %2801 = vst.msk [vmem:[#allocation3 + $0x1c] sm:$0xf] %vm510_vm2, %v2800_v23  ;;  %2802 = vst.msk [vmem:[#allocation4] sm:$0xf] %vm510_vm2, %v2800_v23 }
0x1ec2   :  { %v2260_v24 = vpop.permute.xlu1 %2259 }
0x1ec3   :  { %v2262_v54 = vmul.f32 %v2260_v24, %v4686_v49  ;;  %v3059_v49 = vld [vmem:[%s4913_s16 + $0x30] sm:$0xff] }
0x1ec5   :  { %2263 = vst.msk [vmem:[#allocation3 + $0xc] sm:$0xf] %vm510_vm2, %v2262_v54  ;;  %2264 = vst.msk [vmem:[#allocation4 + $0x10] sm:$0xf] %vm510_vm2, %v2262_v54 }
0x1ec8   :  { %v2807_v58 = vld [vmem:[#allocation4] sm:$0xff]  ;;  %v2806_v52 = vld [vmem:[#allocation3 + $0x18] sm:$0xff] }
0x1ec9   :  { %3287 = vmatprep.mubr.msk.f32.mxu0 %vm402_vm1, %v2807_v58  ;;  %v3050_v63 = vld [vmem:[#allocation3 + $0x1c] sm:$0xf] }
0x1eca   :  { %3288 = vmatmul.mubr.msk.f32.vlgmr.msra.gmra.mxu0 %vm402_vm1, %v2808_v44 }
0x1ecb   :  { %3316 = vmatpush3.msra.mxu0 %v3060_v7 }
0x1ecc   :  { %3317 = vmatprep.subr.mxu0 %v3675_v0  ;;  %v2809_v60 = vld [vmem:[#allocation4 + $0x10] sm:$0xff]  ;;  %v2804_v26 = vld [vmem:[#allocation3 + $0x8] sm:$0xff] }
0x1ecd   :  { %v3042_v27 = vld [vmem:[#allocation3 + $0xc] sm:$0xf]  ;;  %3318 = vmatpush3.msra.mxu0 %v3059_v49  ;;  %3290 = vmatprep.mubr.msk.f32.mxu0 %vm402_vm1, %v2809_v60 }
0x1ece   :  { %v3043_v31 = vadd.f32 %v3042_v27, %v3041_v20  ;;  %3310 = vmatmul.mubr.msk.f32.vlgmr.msra.gmra.mxu1 %vm402_vm1, %v2804_v26  ;;  %3319 = vmatprep.subr.mxu0 %v3675_v0 }
0x1ecf   :  { %3291 = vmatmul.mubr.msk.f32.gmra.mxu0 %vm402_vm1, %v2810_v55  ;;  %3312 = vmatprep.mubr.msk.f32.mxu1 %vm402_vm1, %v2805_v33 }
0x1ed0   :  { %v3045_v39 = vadd.f32 %v3044_v37, %v3043_v31  ;;  %3320 = vmatpush3.msra.mxu0 %v3058_v28  ;;  %3331 = vmatprep.mubr.msk.f32.mxu0 %vm3676_vm3, %v3675_v0 }
0x1ed1   :  { %3321 = vmatprep.subr.mxu0 %v3675_v0 }
0x1ed2   :  { %v3047_v25 = vadd.f32 %v3046_v41, %v3045_v39  ;;  %3322 = vmatpush3.msra.mxu0 %v3057_v30  ;;  %3313 = vmatmul.mubr.msk.f32.gmra.mxu1 %vm402_vm1, %v2806_v52 }
0x1ed3   :  { %3323 = vmatprep.subr.mxu0 %v3675_v0 }
0x1ed4   :  { %v3049_v59 = vadd.f32 %v3048_v48, %v3047_v25  ;;  %3324 = vmatpush3.msra.mxu0 %v3056_v56 }
0x1ed5   :  { %3325 = vmatprep.subr.mxu0 %v3675_v0 }
0x1ed6   :  { %v3051_v45 = vadd.f32 %v3050_v63, %v3049_v59  ;;  %3326 = vmatpush3.msra.mxu0 %v3055_v57 }
0x1ed7   :  { %3327 = vmatprep.subr.mxu0 %v3675_v0 }
0x1ed8   :  { %v3052_v34 = vmul.f32 0.125, %v3051_v45  ;;  %3328 = vmatpush3.msra.mxu0 %v3054_v15 }
0x1ed9   :  { %3329 = vmatprep.subr.mxu0 %v3675_v0 }
0x1eda   :  { %3330 = vmatpush3.msra.mxu0 %v3053_v61 }
0x1edb   :  { %3332 = vmatmul.mubr.msk.f32.vlgmr.msra.gmra.mxu0 %vm402_vm1, %v3052_v34 }
0x1f8a   :  { %v3289_v32 = vpop.f32.mrf.mxu0 }
0x1f8c   :  { %v2905_v6 = vpop.f32.mrf.mxu0 }
0x1f8e   :  { %v3311_v43 = vpop.f32.mrf.mxu1 }
0x1f8f   :  { %v3008_v62 = vadd.f32 %v3311_v43, %v3289_v32  ;;  %v3292_v35 = vpop.f32.mrf.mxu0 }
0x1f90   :  { %v3002_v1 = vpop.f32.mrf.mxu1 }
0x1f91   :  { %v3029_v4 = vadd.f32 %v3235_v47, %v3008_v62  ;;  %v3003_v5 = vadd.f32 %v3002_v1, %v2905_v6  ;;  %v2915_v0 = vpop.f32.mrf.mxu0 }
0x1f92   :  { %v3314_v2 = vpop.f32.mrf.mxu1 }
0x1f93   :  { %3033 = vst [vmem:[%s4915_s18 + $0x8] sm:$0xff] %v3029_v4  ;;  %v3028_v18 = vadd.f32 %v3235_v47, %v3003_v5  ;;  %v3018_v50 = vadd.f32 %v3314_v2, %v3292_v35 }
0x1f94   :  { %v3012_v38 = vpop.f32.mrf.mxu1 }
0x1f95   :  { %3032 = vst [vmem:[%s4915_s18] sm:$0xff] %v3028_v18  ;;  %v3031_v36 = vadd.f32 %v3235_v47, %v3018_v50  ;;  %v3013_v53 = vadd.f32 %v3012_v38, %v2915_v0 }
0x1f97   :  { %3035 = vst [vmem:[%s4915_s18 + $0x18] sm:$0xff] %v3031_v36  ;;  %v3030_v9 = vadd.f32 %v3235_v47, %v3013_v53 }
0x1f99   :  { %3034 = vst [vmem:[%s4915_s18 + $0x10] sm:$0xff] %v3030_v9 }
0x1f9b   :  { %v3137_v40 = vpop.f32.mrf.mxu0 }
0x1f9c   :  { %v3138_v42 = vadd.f32 %v3236_v10, %v3137_v40 }
0x1f9d   :  { %v3333_v19 = vpop.f32.mrf.mxu0 }
0x1f9e   :  { %3141 = vst [vmem:[#allocation14] sm:$0xf] %v3138_v42 }
0x1f9f   :  { %3649 = shalt.err (!%p3646_p1)
}
0x1fa0   :  { %3153 = dma.vmem_to_hbm [thread:$0]  %s3151_s26, 64, %s4916_s19, [#allocation7]  }
0x1fa1   :  { %3664 = dma.done.wait [#allocation7], 64  }
0x1fa2   :  { %3665 = vsyncadd [#allocation7], 4294967232 }
0x1fa3   :  { %3159 = vsyncpa [#allocation6], 1 }
0x1fa4   :  { %3160 = vsyncpa [#allocation9], 1 }
0x1fa5   :  { %3161 = vsyncpa [#allocation12], 1 }
0x1fa6   :  { %3162 = vsyncpa [#allocation7], 1 }

</bundles_post_ra>
